<compile_context>
chip_gen: v5e
topology: v5e:2x2
jax: 0.10.0
libtpu: 0.0.40
codegen_flags: <defaults>
</compile_context>

<pallas_src>
import functools

import jax
import jax.numpy as jnp
from jax.experimental import pallas as pl
from jax.experimental.pallas import tpu as pltpu


def _round_up(x, m):
    return (x + m - 1) // m * m


def _largest_divisor_leq(n, cap):
    cap = max(1, min(n, cap))
    for d in range(cap, 0, -1):
        if n % d == 0:
            return d
    return 1


def _basic_conv_kernel(x_ref, w_ref, bias_ref, o_ref, lhs_ref, *,
                       kh_size, kw_size, stride, apply_relu):
    """One grid step: one (batch, cout-tile, row-tile) output block.

    x_ref:    (1, Hp, Wp, Cin_p)       spatially/channel padded input (bf16)
    w_ref:    (KH*KW*Cin_p, Cout_t)    BN-scale-folded, tap-flattened weights
    bias_ref: (1, Cout_t)              folded BN bias (f32)
    o_ref:    (1, row_tile, Wo, Cout_t)
    lhs_ref:  (row_tile*Wo, KH*KW*Cin_p) VMEM staging buffer for the folded LHS
    """
    _, row_tile, wo, cout_t = o_ref.shape
    cin_p = x_ref.shape[3]
    m = row_tile * wo

    row_step = row_tile * stride
    r0 = pl.multiple_of(pl.program_id(2) * row_step, row_step)

    def tap_slice(kh_i, kw_i):
        if stride == 1:
            h_sl = pl.ds(r0 + kh_i, row_tile)
            w_sl = pl.ds(kw_i, wo)
        else:
            h_sl = pl.ds(r0 + kh_i, row_tile, stride=stride)
            w_sl = pl.ds(kw_i, wo, stride=stride)
        return x_ref[0, h_sl, w_sl, :].reshape(m, cin_p)

    if kh_size * kw_size == 1:
        lhs = tap_slice(0, 0)                         # 1x1 conv: no staging
    else:
        t = 0
        for kh_i in range(kh_size):
            for kw_i in range(kw_size):
                lhs_ref[:, t * cin_p:(t + 1) * cin_p] = tap_slice(kh_i, kw_i)
                t += 1
        lhs = lhs_ref[...]                            # (m, KH*KW*Cin_p)

    # Single MXU contraction over the folded K dim, f32 accumulation.
    acc = jnp.dot(lhs, w_ref[...], preferred_element_type=jnp.float32)

    y = acc + bias_ref[...]                           # folded-BN bias (f32)
    if apply_relu:
        y = jnp.maximum(y, 0.0)
    o_ref[...] = y.reshape(1, row_tile, wo, cout_t).astype(o_ref.dtype)


def basic_conv_nhwc(x_nhwc, weight_oihw, gamma, beta, running_mean, running_var,
                    *, stride=1, padding=0, eps=1e-5, relu=True, bn=True,
                    compute_dtype=jnp.bfloat16, out_dtype=None):
    """BasicConv forward, NHWC activations / OIHW (PyTorch) weights."""
    n, h, w, cin = x_nhwc.shape
    cout, cin_w, kh, kw = weight_oihw.shape
    assert cin == cin_w, "groups != 1 not supported"

    out_dtype = x_nhwc.dtype if out_dtype is None else out_dtype

    ho = (h + 2 * padding - kh) // stride + 1
    wo = (w + 2 * padding - kw) // stride + 1

    # ---- folded (eval-mode) BatchNorm --------------------------------------
    if bn:
        scale = (gamma / jnp.sqrt(running_var + eps)).astype(jnp.float32)
        bias = (beta - running_mean * scale).astype(jnp.float32)
    else:
        scale = jnp.ones((cout,), jnp.float32)
        bias = jnp.zeros((cout,), jnp.float32)

    # ---- channel padding / K folding ---------------------------------------
    cin_pack = 8 * (4 // jnp.dtype(compute_dtype).itemsize)   # 16 for bf16
    cin_p = _round_up(cin, cin_pack)
    k_fold = kh * kw * cin_p

    # Cout tiling: small Cout stays unpadded (masked stores are cheaper than
    # 16x extra output bytes); wide Cout is tiled in 256-lane blocks.
    if cout <= 256:
        cout_t = cout
        cout_p = cout
    else:
        cout_t = 256
        cout_p = _round_up(cout, cout_t)
    n_ct = cout_p // cout_t

    # ---- layout glue (plain JAX; one pass each) -----------------------------
    x_pad = jnp.pad(
        x_nhwc,
        ((0, 0), (padding, padding), (padding, padding), (0, cin_p - cin)),
    ).astype(compute_dtype)
    hp, wp = x_pad.shape[1], x_pad.shape[2]

    w_hwio = jnp.transpose(weight_oihw, (2, 3, 1, 0)).astype(jnp.float32)
    w_hwio = w_hwio * scale[None, None, None, :]              # fold BN scale
    w_hwio = jnp.pad(w_hwio,
                     ((0, 0), (0, 0), (0, cin_p - cin), (0, cout_p - cout)))
    w_fold = w_hwio.astype(compute_dtype).reshape(k_fold, cout_p)

    bias_p = jnp.pad(bias, (0, cout_p - cout)).reshape(1, cout_p)

    # ---- row tiling: M ~ 256 MXU rows, divides Ho (no partial blocks) -------
    row_tile = _largest_divisor_leq(ho, max(1, 256 // max(wo, 1)))
    n_rt = ho // row_tile
    m = row_tile * wo

    grid = (n, n_ct, n_rt)

    kernel = functools.partial(_basic_conv_kernel, kh_size=kh, kw_size=kw,
                               stride=stride, apply_relu=relu)

    # ---- explicit VMEM budget ------------------------------------------------
    itemsize_c = jnp.dtype(compute_dtype).itemsize
    itemsize_o = jnp.dtype(out_dtype).itemsize
    vmem_need = (2 * hp * wp * cin_p * itemsize_c            # input block (x2 buf)
                 + 2 * k_fold * cout_t * itemsize_c          # weight block
                 + 2 * cout_t * 4                            # bias block
                 + 2 * m * cout_t * itemsize_o               # output block
                 + m * k_fold * itemsize_c                   # LHS staging scratch
                 + 2 * m * cout_t * 4)                       # f32 epilogue temps
    vmem_limit = int(min(max(2 * vmem_need, 32 << 20), 64 << 20))

    out = pl.pallas_call(
        kernel,
        out_shape=jax.ShapeDtypeStruct((n, ho, wo, cout_p), out_dtype),
        grid_spec=pltpu.PrefetchScalarGridSpec(
            num_scalar_prefetch=0,
            grid=grid,
            in_specs=[
                pl.BlockSpec((1, hp, wp, cin_p), lambda b, c, r: (b, 0, 0, 0)),
                pl.BlockSpec((k_fold, cout_t), lambda b, c, r: (0, c)),
                pl.BlockSpec((1, cout_t), lambda b, c, r: (0, c)),
            ],
            out_specs=pl.BlockSpec((1, row_tile, wo, cout_t),
                                   lambda b, c, r: (b, r, 0, c)),
            scratch_shapes=[pltpu.VMEM((m, k_fold), compute_dtype)],
        ),
        compiler_params=pltpu.CompilerParams(
            dimension_semantics=("parallel", "parallel", "parallel"),
            vmem_limit_bytes=vmem_limit),
    )(x_pad, w_fold, bias_p)

    if cout_p != cout:
        out = out[..., :cout]
    return out


def basic_conv(x_nchw, weight_oihw, gamma, beta, running_mean, running_var, *,
               stride=1, padding=0, eps=1e-5, relu=True, bn=True,
               compute_dtype=jnp.bfloat16, out_dtype=None):
    """PyTorch-layout (NCHW) convenience wrapper around the NHWC kernel."""
    x_nhwc = jnp.transpose(x_nchw, (0, 2, 3, 1))
    out_nhwc = basic_conv_nhwc(
        x_nhwc, weight_oihw, gamma, beta, running_mean, running_var,
        stride=stride, padding=padding, eps=eps, relu=relu, bn=bn,
        compute_dtype=compute_dtype, out_dtype=out_dtype)
    return jnp.transpose(out_nhwc, (0, 3, 1, 2))


if __name__ == "__main__":
    # BasicConv(in_planes=4, out_planes=8, kernel_size=3, stride=1, padding=1)
    N, CIN, H, W = 2, 4, 16, 16
    COUT, KH, KW = 8, 3, 3
    STRIDE, PAD = 1, 1

    key = jax.random.PRNGKey(0)
    kx, kw_, kg, kb, km, kv = jax.random.split(key, 6)

    x = jax.random.normal(kx, (N, CIN, H, W), dtype=jnp.float32)
    weight = jax.random.normal(kw_, (COUT, CIN, KH, KW), dtype=jnp.float32) * 0.1
    gamma = 1.0 + 0.1 * jax.random.normal(kg, (COUT,), dtype=jnp.float32)
    beta = 0.1 * jax.random.normal(kb, (COUT,), dtype=jnp.float32)
    running_mean = 0.1 * jax.random.normal(km, (COUT,), dtype=jnp.float32)
    running_var = jnp.abs(1.0 + 0.1 * jax.random.normal(kv, (COUT,), jnp.float32))

    out = basic_conv(x, weight, gamma, beta, running_mean, running_var,
                     stride=STRIDE, padding=PAD, relu=True, bn=True)
    out = jax.block_until_ready(out)

    # ---- reference: same folded-BN + bf16-cast operands, pure JAX -----------
    scale = gamma / jnp.sqrt(running_var + 1e-5)
    bias = beta - running_mean * scale
    x_q = x.astype(jnp.bfloat16).astype(jnp.float32)
    w_q = (weight * scale.reshape(COUT, 1, 1, 1)
           ).astype(jnp.bfloat16).astype(jnp.float32)
    ref = jax.lax.conv_general_dilated(
        x_q, w_q, window_strides=(STRIDE, STRIDE),
        padding=((PAD, PAD), (PAD, PAD)),
        dimension_numbers=("NCHW", "OIHW", "NCHW"))
    ref = jnp.maximum(ref + bias.reshape(1, COUT, 1, 1), 0.0)

    assert out.shape == (N, COUT, H, W)
    assert jnp.allclose(out, ref, atol=2e-3, rtol=2e-3), (
        float(jnp.max(jnp.abs(out - ref))))

    print("KERNEL_OK")
</pallas_src>

<mosaic_0001>
module attributes {stable_mosaic.version = 11 : i64} {
  func.func @_basic_conv_kernel(%arg0: i32, %arg1: i32, %arg2: i32, %arg3: memref<1x18x18x16xbf16, #tpu.memory_space<vmem>>, %arg4: memref<144x8xbf16, #tpu.memory_space<vmem>>, %arg5: memref<1x8xf32, #tpu.memory_space<vmem>>, %arg6: memref<1x16x16x8xf32, #tpu.memory_space<vmem>>, %arg7: memref<256x144xbf16, #tpu.memory_space<vmem>>) attributes {dimension_semantics = [#tpu.dimension_semantics<parallel>, #tpu.dimension_semantics<parallel>, #tpu.dimension_semantics<parallel>], iteration_bounds = array<i64: 2, 1, 1>, scalar_prefetch = 0 : i64, scratch_operands = 1 : i64, tpu.core_type = #tpu.core_type<tc>, window_params = [{transform_indices = @transform_0, window_bounds = array<i64: 1, 18, 18, 16>}, {transform_indices = @transform_1, window_bounds = array<i64: 144, 8>}, {transform_indices = @transform_2, window_bounds = array<i64: 1, 8>}, {transform_indices = @transform_3, window_bounds = array<i64: 1, 16, 16, 8>}]} {
    %c16_i32 = arith.constant 16 : i32
    %0 = arith.muli %arg2, %c16_i32 : i32
    %1 = tpu.assume_multiple %0, 16 : i32
    %c0_i32 = arith.constant 0 : i32
    %2 = arith.addi %1, %c0_i32 : i32
    %c0 = arith.constant 0 : index
    %3 = arith.index_cast %2 : i32 to index
    %c0_0 = arith.constant 0 : index
    %c0_1 = arith.constant 0 : index
    %4 = vector.load %arg3[%c0, %3, %c0_0, %c0_1] : memref<1x18x18x16xbf16, #tpu.memory_space<vmem>>, vector<1x16x16x16xbf16>
    %5 = vector.shape_cast %4 : vector<1x16x16x16xbf16> to vector<16x16x16xbf16>
    %6 = vector.shape_cast %5 : vector<16x16x16xbf16> to vector<256x16xbf16>
    %c0_2 = arith.constant 0 : index
    %c0_3 = arith.constant 0 : index
    %7 = vector.load %arg7[%c0_2, %c0_3] : memref<256x144xbf16, #tpu.memory_space<vmem>>, vector<256x16xbf16>
    tpu.vector_store %arg7[%c0_2, %c0_3], %6 {strides = array<i32>} : memref<256x144xbf16, #tpu.memory_space<vmem>>, vector<256x16xbf16>,
    %c0_i32_4 = arith.constant 0 : i32
    %8 = arith.addi %1, %c0_i32_4 : i32
    %c0_5 = arith.constant 0 : index
    %9 = arith.index_cast %8 : i32 to index
    %c1 = arith.constant 1 : index
    %c0_6 = arith.constant 0 : index
    %10 = vector.load %arg3[%c0_5, %9, %c1, %c0_6] : memref<1x18x18x16xbf16, #tpu.memory_space<vmem>>, vector<1x16x16x16xbf16>
    %11 = vector.shape_cast %10 : vector<1x16x16x16xbf16> to vector<16x16x16xbf16>
    %12 = vector.shape_cast %11 : vector<16x16x16xbf16> to vector<256x16xbf16>
    %c0_7 = arith.constant 0 : index
    %c16 = arith.constant 16 : index
    %13 = vector.load %arg7[%c0_7, %c16] : memref<256x144xbf16, #tpu.memory_space<vmem>>, vector<256x16xbf16>
    tpu.vector_store %arg7[%c0_7, %c16], %12 {strides = array<i32>} : memref<256x144xbf16, #tpu.memory_space<vmem>>, vector<256x16xbf16>,
    %c0_i32_8 = arith.constant 0 : i32
    %14 = arith.addi %1, %c0_i32_8 : i32
    %c0_9 = arith.constant 0 : index
    %15 = arith.index_cast %14 : i32 to index
    %c2 = arith.constant 2 : index
    %c0_10 = arith.constant 0 : index
    %16 = vector.load %arg3[%c0_9, %15, %c2, %c0_10] : memref<1x18x18x16xbf16, #tpu.memory_space<vmem>>, vector<1x16x16x16xbf16>
    %17 = vector.shape_cast %16 : vector<1x16x16x16xbf16> to vector<16x16x16xbf16>
    %18 = vector.shape_cast %17 : vector<16x16x16xbf16> to vector<256x16xbf16>
    %c0_11 = arith.constant 0 : index
    %c32 = arith.constant 32 : index
    %19 = vector.load %arg7[%c0_11, %c32] : memref<256x144xbf16, #tpu.memory_space<vmem>>, vector<256x16xbf16>
    tpu.vector_store %arg7[%c0_11, %c32], %18 {strides = array<i32>} : memref<256x144xbf16, #tpu.memory_space<vmem>>, vector<256x16xbf16>,
    %c1_i32 = arith.constant 1 : i32
    %20 = arith.addi %1, %c1_i32 : i32
    %c0_12 = arith.constant 0 : index
    %21 = arith.index_cast %20 : i32 to index
    %c0_13 = arith.constant 0 : index
    %c0_14 = arith.constant 0 : index
    %22 = vector.load %arg3[%c0_12, %21, %c0_13, %c0_14] : memref<1x18x18x16xbf16, #tpu.memory_space<vmem>>, vector<1x16x16x16xbf16>
    %23 = vector.shape_cast %22 : vector<1x16x16x16xbf16> to vector<16x16x16xbf16>
    %24 = vector.shape_cast %23 : vector<16x16x16xbf16> to vector<256x16xbf16>
    %c0_15 = arith.constant 0 : index
    %c48 = arith.constant 48 : index
    %25 = vector.load %arg7[%c0_15, %c48] : memref<256x144xbf16, #tpu.memory_space<vmem>>, vector<256x16xbf16>
    tpu.vector_store %arg7[%c0_15, %c48], %24 {strides = array<i32>} : memref<256x144xbf16, #tpu.memory_space<vmem>>, vector<256x16xbf16>,
    %c1_i32_16 = arith.constant 1 : i32
    %26 = arith.addi %1, %c1_i32_16 : i32
    %c0_17 = arith.constant 0 : index
    %27 = arith.index_cast %26 : i32 to index
    %c1_18 = arith.constant 1 : index
    %c0_19 = arith.constant 0 : index
    %28 = vector.load %arg3[%c0_17, %27, %c1_18, %c0_19] : memref<1x18x18x16xbf16, #tpu.memory_space<vmem>>, vector<1x16x16x16xbf16>
    %29 = vector.shape_cast %28 : vector<1x16x16x16xbf16> to vector<16x16x16xbf16>
    %30 = vector.shape_cast %29 : vector<16x16x16xbf16> to vector<256x16xbf16>
    %c0_20 = arith.constant 0 : index
    %c64 = arith.constant 64 : index
    %31 = vector.load %arg7[%c0_20, %c64] : memref<256x144xbf16, #tpu.memory_space<vmem>>, vector<256x16xbf16>
    tpu.vector_store %arg7[%c0_20, %c64], %30 {strides = array<i32>} : memref<256x144xbf16, #tpu.memory_space<vmem>>, vector<256x16xbf16>,
    %c1_i32_21 = arith.constant 1 : i32
    %32 = arith.addi %1, %c1_i32_21 : i32
    %c0_22 = arith.constant 0 : index
    %33 = arith.index_cast %32 : i32 to index
    %c2_23 = arith.constant 2 : index
    %c0_24 = arith.constant 0 : index
    %34 = vector.load %arg3[%c0_22, %33, %c2_23, %c0_24] : memref<1x18x18x16xbf16, #tpu.memory_space<vmem>>, vector<1x16x16x16xbf16>
    %35 = vector.shape_cast %34 : vector<1x16x16x16xbf16> to vector<16x16x16xbf16>
    %36 = vector.shape_cast %35 : vector<16x16x16xbf16> to vector<256x16xbf16>
    %c0_25 = arith.constant 0 : index
    %c80 = arith.constant 80 : index
    %37 = vector.load %arg7[%c0_25, %c80] : memref<256x144xbf16, #tpu.memory_space<vmem>>, vector<256x16xbf16>
    tpu.vector_store %arg7[%c0_25, %c80], %36 {strides = array<i32>} : memref<256x144xbf16, #tpu.memory_space<vmem>>, vector<256x16xbf16>,
    %c2_i32 = arith.constant 2 : i32
    %38 = arith.addi %1, %c2_i32 : i32
    %c0_26 = arith.constant 0 : index
    %39 = arith.index_cast %38 : i32 to index
    %c0_27 = arith.constant 0 : index
    %c0_28 = arith.constant 0 : index
    %40 = vector.load %arg3[%c0_26, %39, %c0_27, %c0_28] : memref<1x18x18x16xbf16, #tpu.memory_space<vmem>>, vector<1x16x16x16xbf16>
    %41 = vector.shape_cast %40 : vector<1x16x16x16xbf16> to vector<16x16x16xbf16>
    %42 = vector.shape_cast %41 : vector<16x16x16xbf16> to vector<256x16xbf16>
    %c0_29 = arith.constant 0 : index
    %c96 = arith.constant 96 : index
    %43 = vector.load %arg7[%c0_29, %c96] : memref<256x144xbf16, #tpu.memory_space<vmem>>, vector<256x16xbf16>
    tpu.vector_store %arg7[%c0_29, %c96], %42 {strides = array<i32>} : memref<256x144xbf16, #tpu.memory_space<vmem>>, vector<256x16xbf16>,
    %c2_i32_30 = arith.constant 2 : i32
    %44 = arith.addi %1, %c2_i32_30 : i32
    %c0_31 = arith.constant 0 : index
    %45 = arith.index_cast %44 : i32 to index
    %c1_32 = arith.constant 1 : index
    %c0_33 = arith.constant 0 : index
    %46 = vector.load %arg3[%c0_31, %45, %c1_32, %c0_33] : memref<1x18x18x16xbf16, #tpu.memory_space<vmem>>, vector<1x16x16x16xbf16>
    %47 = vector.shape_cast %46 : vector<1x16x16x16xbf16> to vector<16x16x16xbf16>
    %48 = vector.shape_cast %47 : vector<16x16x16xbf16> to vector<256x16xbf16>
    %c0_34 = arith.constant 0 : index
    %c112 = arith.constant 112 : index
    %49 = vector.load %arg7[%c0_34, %c112] : memref<256x144xbf16, #tpu.memory_space<vmem>>, vector<256x16xbf16>
    tpu.vector_store %arg7[%c0_34, %c112], %48 {strides = array<i32>} : memref<256x144xbf16, #tpu.memory_space<vmem>>, vector<256x16xbf16>,
    %c2_i32_35 = arith.constant 2 : i32
    %50 = arith.addi %1, %c2_i32_35 : i32
    %c0_36 = arith.constant 0 : index
    %51 = arith.index_cast %50 : i32 to index
    %c2_37 = arith.constant 2 : index
    %c0_38 = arith.constant 0 : index
    %52 = vector.load %arg3[%c0_36, %51, %c2_37, %c0_38] : memref<1x18x18x16xbf16, #tpu.memory_space<vmem>>, vector<1x16x16x16xbf16>
    %53 = vector.shape_cast %52 : vector<1x16x16x16xbf16> to vector<16x16x16xbf16>
    %54 = vector.shape_cast %53 : vector<16x16x16xbf16> to vector<256x16xbf16>
    %c0_39 = arith.constant 0 : index
    %c128 = arith.constant 128 : index
    %55 = vector.load %arg7[%c0_39, %c128] : memref<256x144xbf16, #tpu.memory_space<vmem>>, vector<256x16xbf16>
    tpu.vector_store %arg7[%c0_39, %c128], %54 {strides = array<i32>} : memref<256x144xbf16, #tpu.memory_space<vmem>>, vector<256x16xbf16>,
    %c0_40 = arith.constant 0 : index
    %c0_41 = arith.constant 0 : index
    %56 = vector.load %arg7[%c0_40, %c0_41] : memref<256x144xbf16, #tpu.memory_space<vmem>>, vector<256x144xbf16>
    %c0_42 = arith.constant 0 : index
    %c0_43 = arith.constant 0 : index
    %57 = vector.load %arg4[%c0_42, %c0_43] : memref<144x8xbf16, #tpu.memory_space<vmem>>, vector<144x8xbf16>
    %cst = arith.constant dense<0.000000e+00> : vector<256x8xf32>
    %58 = tpu.matmul %56, %57, %cst {dimension_numbers = #tpu.dot_dimension_numbers<[1], [0], [0], [1], [0, 0, 1, 1], [], []>} : vector<256x144xbf16>, vector<144x8xbf16>, vector<256x8xf32> -> vector<256x8xf32>
    %c0_44 = arith.constant 0 : index
    %c0_45 = arith.constant 0 : index
    %59 = vector.load %arg5[%c0_44, %c0_45] : memref<1x8xf32, #tpu.memory_space<vmem>>, vector<1x8xf32>
    %60 = vector.broadcast %59 : vector<1x8xf32> to vector<256x8xf32>
    %61 = arith.addf %58, %60 : vector<256x8xf32>
    %cst_46 = arith.constant 0.000000e+00 : f32
    %62 = vector.broadcast %cst_46 : f32 to vector<256x8xf32>
    %63 = arith.maximumf %61, %62 : vector<256x8xf32>
    %64 = vector.shape_cast %63 : vector<256x8xf32> to vector<1x16x16x8xf32>
    %c0_47 = arith.constant 0 : index
    %c0_48 = arith.constant 0 : index
    %c0_49 = arith.constant 0 : index
    %c0_50 = arith.constant 0 : index
    %65 = vector.load %arg6[%c0_47, %c0_48, %c0_49, %c0_50] : memref<1x16x16x8xf32, #tpu.memory_space<vmem>>, vector<1x16x16x8xf32>
    tpu.vector_store %arg6[%c0_47, %c0_48, %c0_49, %c0_50], %64 {strides = array<i32>} : memref<1x16x16x8xf32, #tpu.memory_space<vmem>>, vector<1x16x16x8xf32>,
    return
  }
  func.func @transform_0(%arg0: i32, %arg1: i32, %arg2: i32) -> (i32, i32, i32, i32) {
    %c0_i32 = arith.constant 0 : i32
    %c0_i32_0 = arith.constant 0 : i32
    %c0_i32_1 = arith.constant 0 : i32
    %c0_i32_2 = arith.constant 0 : i32
    return %arg0, %c0_i32, %c0_i32_0, %c0_i32_1 : i32, i32, i32, i32
  }
  func.func @transform_1(%arg0: i32, %arg1: i32, %arg2: i32) -> (i32, i32) {
    %c0_i32 = arith.constant 0 : i32
    %c0_i32_0 = arith.constant 0 : i32
    return %c0_i32, %arg1 : i32, i32
  }
  func.func @transform_2(%arg0: i32, %arg1: i32, %arg2: i32) -> (i32, i32) {
    %c0_i32 = arith.constant 0 : i32
    %c0_i32_0 = arith.constant 0 : i32
    return %c0_i32, %arg1 : i32, i32
  }
  func.func @transform_3(%arg0: i32, %arg1: i32, %arg2: i32) -> (i32, i32, i32, i32) {
    %c0_i32 = arith.constant 0 : i32
    %c0_i32_0 = arith.constant 0 : i32
    return %arg0, %arg2, %c0_i32, %arg1 : i32, i32, i32, i32
  }
}

</mosaic_0001>

<bundles_post_ra>
// kernel: tpu_custom_call.1
= control target key start
LH: loop header
LB: loop body
LE: loop exit
PB: predicated region body
PF: predicated region fallthrough
CT: control target
= control target key end

     0   :  { %s4653_s12 = smov 0   ;;  %s4655_s13 = smov 0   ;;  %s6425_s0 = inlined_call_operand.vmem [shape: bf16[2,18,18,16], index: 0, kind: input, shape index: {}]   ;;  %s6426_s1 = inlined_call_operand.vmem [shape: bf16[144,8], index: 1, kind: input, shape index: {}]   ;;  %s6427_s2 = inlined_call_operand.vmem [shape: f32[1,8], index: 2, kind: input, shape index: {}]   ;;  %s6428_s3 = inlined_call_operand.vmem [shape: f32[2,16,16,8], index: 3, kind: output, shape index: {}]  }
   0x1   :  { %s4657_s14 = smov 0  }
   0x2 LB: > { %s32_s15 = sadd.s32 1, %s4620_s13  ;;  %p4028_p0 = scmp.ge.s32.totalorder %s4624_s14, 1  ;;  %s4624_s14 = sphi %s4657_s14, %s13_s14   ;;  %s4620_s13 = sphi %s4655_s13, %s6434_s13   ;;  %s4616_s12 = sphi %s4653_s12, %s6433_s12  }
   0x3   : > { %p34_p1 = scmp.ge.s32.totalorder %s32_s15, 2  ;;  %p177_p2 = scmp.lt.s32.totalorder %s4624_s14, 3 }
   0x5   : > { %s6436_s15 = smov (%p34_p1, %s32_s15), 0  ;;  %p178_p3 = pnand %p4028_p0, %p177_p2 }
   0x6   : > { %p216_p4 = scmp.lt.s32.totalorder (!%p178_p3), %s4616_s12, 1  ;;  %s4626_s20 = smov (!%p178_p3), 16  }
   0x7   : > { %181 = sbr.rel (%p178_p3) target bundleno = 885 (0x375), region = 32  ;;  %s4627_s21 = smov (!%p178_p3), 32  }
   0x8   : > { %s4628_s22 = smov (!%p178_p3), 48   ;;  %s4629_s23 = smov (!%p178_p3), 64  }
   0x9   : > { %s4630_s26 = smov (!%p178_p3), 80   ;;  %s4631_s27 = smov (!%p178_p3), 96  }
   0xa   : > { %s4632_s28 = smov (!%p178_p3), 112  }
   0xc   : > { %s6438_s12 = smov (!%p216_p4, %s4616_s12), 1  ;;  %vm360_vm0 = vsmask.f32 3328  ;;  %vm361_vm1 = vsmask.f32 7440  ;;  %vm972_vm3 = vcmask 1042432  }
   0xd   : > { %s4569_s16 = smul.u32 216, %s6438_s12  ;;  %vm4688_vm2 = vmor %vm360_vm0, %vm361_vm1  ;;  %vm973_vm4 = vcmask 1046532   ;;  %vm279_vm6 = vcmask 125952   ;;  %vm843_vm7 = vcmask 257152   ;;  %vm1183_vm8 = vcmask 388352   ;;  %s4518_s25 = sshll.u32 %s6438_s12, 8 }
   0xe   : > { %vm4878_vm5 = vmor %vm972_vm3, %vm973_vm4  ;;  %vm1380_vm9 = vcmask 519552   ;;  %vm3593_vm10 = vcmask 130048   ;;  %vm1941_vm11 = vcmask 650752   ;;  %vm2278_vm12 = vcmask 781952   ;;  %s6240_s30 = scalar_lea.vmem %s6428_s3, %s4518_s25 }
   0xf   : > { %s4677_s19 = scalar_lea.vmem %s6425_s0, %s4569_s16  ;;  %vm2475_vm13 = vcmask 913152   ;;  %vm3036_vm14 = vcmask 1044352   ;;  %vm3852_vm15 = vcmask 64512  }
  0x10   : > { %v315_v0 = vld [vmem:[%s4677_s19 + $0xc] sm:$0xf]  ;;  %v316_v1 = vld [vmem:[%s4677_s19 + $0x10] sm:$0xf]  ;;  %v312_v2 = vld [vmem:[%s4677_s19] sm:$0xf] }
  0x11   : > { %v388_v3 = vshrl.u32 %v315_v0, 16  ;;  %v391_v4 = vshll.u32 %v315_v0, 16  ;;  %v397_v5 = vshll.u32 %v316_v1, 16  ;;  %v401_v6 = vshrl.u32 %v316_v1, 16  ;;  %v313_v7 = vld [vmem:[%s4677_s19 + $0x4] sm:$0xf] }
  0x12   : > { %v364_v8 = vshrl.u32 %v312_v2, 16  ;;  %v367_v9 = vshll.u32 %v312_v2, 16  ;;  %v373_v10 = vshll.u32 %v313_v7, 16  ;;  %v377_v11 = vshrl.u32 %v313_v7, 16  ;;  %v317_v16 = vld [vmem:[%s4677_s19 + $0x14] sm:$0x1] }
  0x13   : > { %v390_v12 = vrot.slane %v388_v3, 4  ;;  %v393_v13 = vrot.slane %v391_v4, 5  ;;  %v399_v14 = vrot.slane %v397_v5, 5  ;;  %v403_v15 = vrot.slane %v401_v6, 4  ;;  %v322_v20 = vld [vmem:[%s4677_s19 + $0x28] sm:$0xf] }
  0x14   : > { %v366_v17 = vrot.slane %v364_v8, 4  ;;  %v369_v18 = vrot.slane %v367_v9, 5  ;;  %v379_v19 = vrot.slane %v377_v11, 4  ;;  %v375_v22 = vrot.slane %v373_v10, 5  ;;  %v314_v24 = vld [vmem:[%s4677_s19 + $0x8] sm:$0x1] }
  0x15   : > { %v394_v21 = vor.u32 %v393_v13, %v390_v12  ;;  %v404_v23 = vor.u32 %v403_v15, %v399_v14  ;;  %v407_v27 = vshll.u32 %v317_v16, 16  ;;  %v445_v28 = vshll.u32 %v322_v20, 16  ;;  %v321_v30 = vld [vmem:[%s4677_s19 + $0x24] sm:$0xf]  ;;  %v323_v42 = vld [vmem:[%s4677_s19 + $0x2c] sm:$0x1] }
  0x16   : > { %v370_v26 = vor.u32 %v369_v18, %v366_v17  ;;  %v449_v29 = vshrl.u32 %v322_v20, 16  ;;  %v380_v33 = vor.u32 %v379_v19, %v375_v22  ;;  %v383_v34 = vshll.u32 %v314_v24, 16  ;;  %v327_v44 = vld [vmem:[%s4677_s19 + $0x3c] sm:$0xf]  ;;  %v325_v45 = vld [vmem:[%s4677_s19 + $0x34] sm:$0xf] }
  0x17   : > { %v395_v31 = vrot.slane %v394_v21, 4  ;;  %v4695_v36 = vrot.slane %v445_v28, 5  ;;  %v436_v38 = vshrl.u32 %v321_v30, 16  ;;  %v405_v40 = vrot.slane %v404_v23, 4  ;;  %v318_v50 = vld [vmem:[%s4677_s19 + $0x18] sm:$0xf] }
  0x18   : > { %v371_v32 = vrot.slane %v370_v26, 4  ;;  %v451_v37 = vrot.slane %v449_v29, 4  ;;  %v409_v41 = vrot.slane %v407_v27, 5  ;;  %v439_v43 = vshll.u32 %v321_v30, 16  ;;  %v319_v53 = vld [vmem:[%s4677_s19 + $0x1c] sm:$0xf] }
  0x19   : > { %v400_v35 = vsel %vm4688_vm2, %v395_v31, %v399_v14  ;;  %v381_v46 = vrot.slane %v380_v33, 4  ;;  %v385_v47 = vrot.slane %v383_v34, 5  ;;  %v438_v48 = vrot.slane %v436_v38, 4  ;;  %v4713_v4 = vld [vmem:[%s4677_s19 + $0x40] sm:$0xf] }
  0x1a   : > { %751 = vrot.lane.b32.xlu1 %v400_v35, %s4626_s20  ;;  %v376_v39 = vsel %vm4688_vm2, %v371_v32, %v375_v22  ;;  %v441_v49 = vrot.slane %v439_v43, 5  ;;  %v452_v51 = vor.u32 %v451_v37, %v4695_v36  ;;  %v455_v52 = vshll.u32 %v323_v42, 16  ;;  %v326_v6 = vld [vmem:[%s4677_s19 + $0x38] sm:$0x1]  ;;  %v320_v12 = vld [vmem:[%s4677_s19 + $0x20] sm:$0x1] }
  0x1b   : > { %747 = vrot.lane.b32.xlu0 %v376_v39, %s4626_s20  ;;  %v410_v54 = vsel %vm4688_vm2, %v405_v40, %v409_v41  ;;  %v484_v55 = vshrl.u32 %v327_v44, 16  ;;  %v487_v56 = vshll.u32 %v327_v44, 16  ;;  %v469_v57 = vshll.u32 %v325_v45, 16  ;;  %v331_v16 = vld [vmem:[%s4677_s19 + $0x4c] sm:$0xf] }
  0x1c   : > { %v473_v58 = vshrl.u32 %v325_v45, 16  ;;  %v412_v59 = vshrl.u32 %v318_v50, 16  ;;  %v386_v60 = vsel %vm4688_vm2, %v381_v46, %v385_v47  ;;  %v442_v61 = vor.u32 %v441_v49, %v438_v48  ;;  %v330_v19 = vld [vmem:[%s4677_s19 + $0x48] sm:$0xf]  ;;  %v324_v33 = vld [vmem:[%s4677_s19 + $0x30] sm:$0xf] }
  0x1d   : > { %v415_v62 = vshll.u32 %v318_v50, 16  ;;  %v421_v63 = vshll.u32 %v319_v53, 16  ;;  %v453_v0 = vrot.slane %v452_v51, 4  ;;  %v457_v1 = vrot.slane %v455_v52, 5  ;;  %v336_v39 = vld [vmem:[%s4677_s19 + $0x60] sm:$0xf] }
  0x1e   : > { %v414_v2 = vrot.slane %v412_v59, 4  ;;  %v425_v3 = vshrl.u32 %v319_v53, 16  ;;  %v486_v5 = vrot.slane %v484_v55, 4  ;;  %v489_v8 = vrot.slane %v487_v56, 5  ;;  %v332_v43 = vld [vmem:[%s4677_s19 + $0x50] sm:$0x1] }
  0x1f   : > { %v417_v7 = vrot.slane %v415_v62, 5  ;;  %v4717_v9 = vrot.slane %v469_v57, 5  ;;  %v475_v10 = vrot.slane %v473_v58, 4  ;;  %v443_v13 = vrot.slane %v442_v61, 4  ;;  %v334_v50 = vld [vmem:[%s4677_s19 + $0x58] sm:$0xf] }
  0x20   : > { %v427_v11 = vrot.slane %v425_v3, 4  ;;  %v423_v15 = vrot.slane %v421_v63, 5  ;;  %v458_v17 = vsel %vm4688_vm2, %v453_v0, %v457_v1  ;;  %v493_v18 = vshll.u32 %v4713_v4, 16  ;;  %v4754_v1 = vld [vmem:[%s4677_s19 + $0x64] sm:$0xf] }
  0x21   : > { %v418_v14 = vor.u32 %v417_v7, %v414_v2  ;;  %v479_v20 = vshll.u32 %v326_v6, 16  ;;  %v431_v23 = vshll.u32 %v320_v12, 16  ;;  %v490_v24 = vor.u32 %v489_v8, %v486_v5  ;;  %v340_v6 = vld [vmem:[%s4677_s19 + $0x70] sm:$0xf]  ;;  %v329_v7 = vld [vmem:[%s4677_s19 + $0x44] sm:$0x1] }
  0x22   : > { %753 = vrot.lane.b32.xlu1 %v410_v54, %s4626_s20  ;;  %v428_v22 = vor.u32 %v427_v11, %v423_v15  ;;  %v476_v26 = vor.u32 %v475_v10, %v4717_v9  ;;  %v517_v27 = vshll.u32 %v331_v16, 16  ;;  %v521_v28 = vshrl.u32 %v331_v16, 16  ;;  %v339_v12 = vld [vmem:[%s4677_s19 + $0x6c] sm:$0xf]  ;;  %v333_v16 = vld [vmem:[%s4677_s19 + $0x54] sm:$0xf] }
  0x23   : > { %749 = vrot.lane.b32.xlu0 %v386_v60, %s4626_s20  ;;  %v419_v21 = vrot.slane %v418_v14, 4  ;;  %v448_v29 = vsel %vm4688_vm2, %v443_v13, %v4695_v36  ;;  %v508_v31 = vshrl.u32 %v330_v19, 16  ;;  %v511_v32 = vshll.u32 %v330_v19, 16 }
  0x24   : > { %v4734_v34 = vrot.slane %v493_v18, 5  ;;  %v481_v35 = vrot.slane %v479_v20, 5  ;;  %v429_v37 = vrot.slane %v428_v22, 4  ;;  %v433_v38 = vrot.slane %v431_v23, 5 }
  0x25   : > { %v424_v30 = vsel %vm4688_vm2, %v419_v21, %v423_v15  ;;  %v491_v36 = vrot.slane %v490_v24, 4  ;;  %v477_v40 = vrot.slane %v476_v26, 4  ;;  %v4738_v41 = vrot.slane %v517_v27, 5  ;;  %v335_v15 = vld [vmem:[%s4677_s19 + $0x5c] sm:$0x1] }
  0x26   : > { %755 = vrot.lane.b32.xlu2 %v424_v30, %s4626_s20  ;;  %v523_v42 = vrot.slane %v521_v28, 4  ;;  %v510_v44 = vrot.slane %v508_v31, 4  ;;  %v513_v45 = vrot.slane %v511_v32, 5  ;;  %v460_v46 = vshrl.u32 %v324_v33, 16  ;;  %v341_v32 = vld [vmem:[%s4677_s19 + $0x74] sm:$0x1] }
  0x27   : > { %v463_v47 = vshll.u32 %v324_v33, 16  ;;  %v556_v48 = vshrl.u32 %v336_v39, 16  ;;  %v559_v49 = vshll.u32 %v336_v39, 16  ;;  %v497_v51 = vshrl.u32 %v4713_v4, 16 }
  0x28   : > { %v434_v52 = vsel %vm4688_vm2, %v429_v37, %v433_v38  ;;  %v462_v53 = vrot.slane %v460_v46, 4  ;;  %v496_v55 = vsel %vm4688_vm2, %v491_v36, %v4734_v34  ;;  %v482_v56 = vsel %vm4688_vm2, %v477_v40, %v481_v35 }
  0x29   : > { %v465_v54 = vrot.slane %v463_v47, 5  ;;  %v524_v57 = vor.u32 %v523_v42, %v4738_v41  ;;  %v527_v58 = vshll.u32 %v332_v43, 16  ;;  %v514_v59 = vor.u32 %v513_v45, %v510_v44  ;;  %v345_v43 = vld [vmem:[%s4677_s19 + $0x84] sm:$0xf]  ;;  %v343_v45 = vld [vmem:[%s4677_s19 + $0x7c] sm:$0xf] }
  0x2a   : > { %761 = vrot.lane.b32.xlu1 %v458_v17, %s4626_s20  ;;  %v541_v60 = vshll.u32 %v334_v50, 16  ;;  %v545_v61 = vshrl.u32 %v334_v50, 16  ;;  %v558_v63 = vrot.slane %v556_v48, 4  ;;  %v561_v0 = vrot.slane %v559_v49, 5 }
  0x2b   : > { %759 = vrot.lane.b32.xlu0 %v448_v29, %s4626_s20  ;;  %v466_v62 = vor.u32 %v465_v54, %v462_v53  ;;  %v499_v3 = vrot.slane %v497_v51, 4  ;;  %v525_v4 = vrot.slane %v524_v57, 4  ;;  %v529_v5 = vrot.slane %v527_v58, 5 }
  0x2c   : > { %v515_v8 = vrot.slane %v514_v59, 4  ;;  %v4759_v10 = vrot.slane %v541_v60, 5  ;;  %v547_v11 = vrot.slane %v545_v61, 4  ;;  %v562_v13 = vor.u32 %v561_v0, %v558_v63  ;;  %v349_v59 = vld [vmem:[%s4677_s19 + $0x94] sm:$0xf] }
  0x2d   : > { %v467_v2 = vrot.slane %v466_v62, 4  ;;  %v565_v14 = vshll.u32 %v4754_v1, 16  ;;  %v589_v18 = vshll.u32 %v340_v6, 16  ;;  %v500_v19 = vor.u32 %v499_v3, %v4734_v34  ;;  %v338_v60 = vld [vmem:[%s4677_s19 + $0x68] sm:$0x1] }
  0x2e   : > { %757 = vrot.lane.b32.xlu2 %v434_v52, %s4626_s20  ;;  %v503_v20 = vshll.u32 %v329_v7, 16  ;;  %v530_v21 = vsel %vm4688_vm2, %v525_v4, %v529_v5  ;;  %v593_v22 = vshrl.u32 %v340_v6, 16  ;;  %v580_v23 = vshrl.u32 %v339_v12, 16  ;;  %v346_v3 = vld [vmem:[%s4677_s19 + $0x88] sm:$0xf] }
  0x2f   : > { %v472_v17 = vsel %vm4688_vm2, %v467_v2, %v4717_v9  ;;  %v583_v24 = vshll.u32 %v339_v12, 16  ;;  %v520_v26 = vsel %vm4688_vm2, %v515_v8, %v4738_v41  ;;  %v548_v27 = vor.u32 %v547_v11, %v4759_v10  ;;  %v342_v2 = vld [vmem:[%s4677_s19 + $0x78] sm:$0xf]  ;;  %v344_v4 = vld [vmem:[%s4677_s19 + $0x80] sm:$0x1] }
  0x30   : > { %v551_v28 = vshll.u32 %v335_v15, 16  ;;  %v532_v29 = vshrl.u32 %v333_v16, 16  ;;  %v563_v9 = vrot.slane %v562_v13, 4  ;;  %v4775_v30 = vrot.slane %v565_v14, 5  ;;  %v348_v11 = vld [vmem:[%s4677_s19 + $0x90] sm:$0xf] }
  0x31   : > { %v535_v31 = vshll.u32 %v333_v16, 16  ;;  %v4780_v33 = vrot.slane %v589_v18, 5  ;;  %v501_v34 = vrot.slane %v500_v19, 4  ;;  %v505_v35 = vrot.slane %v503_v20, 5 }
  0x32   : > { %767 = vrot.lane.b32.xlu1 %v496_v55, %s4626_s20  ;;  %v534_v37 = vrot.slane %v532_v29, 4  ;;  %v595_v38 = vrot.slane %v593_v22, 4  ;;  %v582_v39 = vrot.slane %v580_v23, 4  ;;  %v585_v36 = vrot.slane %v583_v24, 5 }
  0x33   : > { %765 = vrot.lane.b32.xlu0 %v482_v56, %s4626_s20  ;;  %v537_v40 = vrot.slane %v535_v31, 5  ;;  %v549_v41 = vrot.slane %v548_v27, 4  ;;  %v553_v42 = vrot.slane %v551_v28, 5  ;;  %v599_v44 = vshll.u32 %v341_v32, 16  ;;  %v350_v27 = vld [vmem:[%s4677_s19 + $0x98] sm:$0x1] }
  0x34   : > { %v568_v46 = vsel %vm4688_vm2, %v563_v9, %v4775_v30  ;;  %v569_v47 = vshrl.u32 %v4754_v1, 16  ;;  %v506_v48 = vsel %vm4688_vm2, %v501_v34, %v505_v35  ;;  %v596_v50 = vor.u32 %v595_v38, %v4780_v33  ;;  %v354_v38 = vld [vmem:[%s4677_s19 + $0xa8] sm:$0xf] }
  0x35   : > { %v538_v49 = vor.u32 %v537_v40, %v534_v37  ;;  %v586_v51 = vor.u32 %v585_v36, %v582_v39  ;;  %v628_v52 = vshrl.u32 %v345_v43, 16  ;;  %v631_v53 = vshll.u32 %v345_v43, 16  ;;  %v352_v40 = vld [vmem:[%s4677_s19 + $0xa0] sm:$0xf] }
  0x36   : > { %763 = vrot.lane.b32.xlu2 %v472_v17, %s4626_s20  ;;  %v554_v54 = vsel %vm4688_vm2, %v549_v41, %v553_v42  ;;  %v613_v55 = vshll.u32 %v343_v45, 16  ;;  %v617_v56 = vshrl.u32 %v343_v45, 16  ;;  %v601_v57 = vrot.slane %v599_v44, 5 }
  0x37   : > { %v539_v58 = vrot.slane %v538_v49, 4  ;;  %v571_v61 = vrot.slane %v569_v47, 4  ;;  %v597_v62 = vrot.slane %v596_v50, 4  ;;  %v587_v63 = vrot.slane %v586_v51, 4 }
  0x38   : > { %v630_v0 = vrot.slane %v628_v52, 4  ;;  %v633_v1 = vrot.slane %v631_v53, 5  ;;  %v4802_v5 = vrot.slane %v613_v55, 5  ;;  %v619_v6 = vrot.slane %v617_v56, 4  ;;  %v355_v53 = vld [vmem:[%s4677_s19 + $0xac] sm:$0xf] }
  0x39   : > { %v661_v7 = vshll.u32 %v349_v59, 16  ;;  %v665_v8 = vshrl.u32 %v349_v59, 16  ;;  %v575_v12 = vshll.u32 %v338_v60, 16  ;;  %v544_v13 = vsel %vm4688_vm2, %v539_v58, %v4759_v10  ;;  %v347_v55 = vld [vmem:[%s4677_s19 + $0x8c] sm:$0x1] }
  0x3a   : > { %773 = vrot.lane.b32.xlu1 %v530_v21, %s4626_s20  ;;  %v572_v14 = vor.u32 %v571_v61, %v4775_v30  ;;  %v604_v15 = vshrl.u32 %v342_v2, 16  ;;  %v607_v16 = vshll.u32 %v342_v2, 16  ;;  %v602_v17 = vsel %vm4688_vm2, %v597_v62, %v601_v57  ;;  %v353_v59 = vld [vmem:[%s4677_s19 + $0xa4] sm:$0x1]  ;;  %v351_v60 = vld [vmem:[%s4677_s19 + $0x9c] sm:$0xf] }
  0x3b   : > { %771 = vrot.lane.b32.xlu0 %v520_v26, %s4626_s20  ;;  %v592_v18 = vsel %vm4688_vm2, %v587_v63, %v4780_v33  ;;  %v634_v19 = vor.u32 %v633_v1, %v630_v0  ;;  %v637_v20 = vshll.u32 %v346_v3, 16  ;;  %v620_v21 = vor.u32 %v619_v6, %v4802_v5  ;;  %v358_v0 = vld [vmem:[%s4677_s19 + $0xb8] sm:$0xf] }
  0x3c   : > { %v623_v22 = vshll.u32 %v344_v4, 16  ;;  %v652_v23 = vshrl.u32 %v348_v11, 16  ;;  %v655_v24 = vshll.u32 %v348_v11, 16  ;;  %v4816_v10 = vrot.slane %v661_v7, 5 }
  0x3d   : > { %v667_v26 = vrot.slane %v665_v8, 4  ;;  %v573_v28 = vrot.slane %v572_v14, 4  ;;  %v577_v29 = vrot.slane %v575_v12, 5  ;;  %v606_v9 = vrot.slane %v604_v15, 4 }
  0x3e   : > { %769 = vrot.lane.b32.xlu2 %v506_v48, %s4626_s20  ;;  %v609_v30 = vrot.slane %v607_v16, 5  ;;  %v635_v31 = vrot.slane %v634_v19, 4  ;;  %v639_v32 = vrot.slane %v637_v20, 5  ;;  %v621_v33 = vrot.slane %v620_v21, 4 }
  0x3f   : > { %v625_v34 = vrot.slane %v623_v22, 5  ;;  %v654_v35 = vrot.slane %v652_v23, 4  ;;  %v657_v37 = vrot.slane %v655_v24, 5  ;;  %v668_v39 = vor.u32 %v667_v26, %v4816_v10 }
  0x40   : > { %v671_v36 = vshll.u32 %v350_v27, 16  ;;  %v641_v41 = vshrl.u32 %v346_v3, 16  ;;  %v578_v42 = vsel %vm4688_vm2, %v573_v28, %v577_v29  ;;  %v610_v43 = vor.u32 %v609_v30, %v606_v9  ;;  %v357_v3 = vld [vmem:[%s4677_s19 + $0xb4] sm:$0xf]  ;;  %v359_v29 = vld [vmem:[%s4677_s19 + $0xbc] sm:$0x1] }
  0x41   : > { %v640_v44 = vsel %vm4688_vm2, %v635_v31, %v639_v32  ;;  %v700_v45 = vshrl.u32 %v354_v38, 16  ;;  %v626_v47 = vsel %vm4688_vm2, %v621_v33, %v625_v34  ;;  %v658_v48 = vor.u32 %v657_v37, %v654_v35 }
  0x42   : > { %779 = vrot.lane.b32.xlu1 %v568_v46, %s4626_s20  ;;  %v703_v46 = vshll.u32 %v354_v38, 16  ;;  %v685_v49 = vshll.u32 %v352_v40, 16  ;;  %v689_v50 = vshrl.u32 %v352_v40, 16  ;;  %v669_v51 = vrot.slane %v668_v39, 4 }
  0x43   : > { %777 = vrot.lane.b32.xlu0 %v554_v54, %s4626_s20  ;;  %v673_v52 = vrot.slane %v671_v36, 5  ;;  %v611_v54 = vrot.slane %v610_v43, 4  ;;  %v643_v56 = vrot.slane %v641_v41, 4  ;;  %v702_v57 = vrot.slane %v700_v45, 4  ;;  %v356_v43 = vld [vmem:[%s4677_s19 + $0xb0] sm:$0x1] }
  0x44   : > { %v705_v58 = vrot.slane %v703_v46, 5  ;;  %v659_v61 = vrot.slane %v658_v48, 4  ;;  %v4837_v62 = vrot.slane %v685_v49, 5  ;;  %v691_v63 = vrot.slane %v689_v50, 4  ;;  %v877_v45 = vld [vmem:[%s4677_s19 + $0x4] sm:$0xf] }
  0x45   : > { %v674_v1 = vsel %vm4688_vm2, %v669_v51, %v673_v52  ;;  %v709_v2 = vshll.u32 %v355_v53, 16  ;;  %v647_v4 = vshll.u32 %v347_v55, 16  ;;  %v616_v6 = vsel %vm4688_vm2, %v611_v54, %v4802_v5  ;;  %v879_v50 = vld [vmem:[%s4677_s19 + $0xc] sm:$0xe]  ;;  %v878_v54 = vld [vmem:[%s4677_s19 + $0x8] sm:$0x1] }
  0x46   : > { %775 = vrot.lane.b32.xlu2 %v544_v13, %s4626_s20  ;;  %v644_v7 = vor.u32 %v643_v56, %v639_v32  ;;  %v676_v8 = vshrl.u32 %v351_v60, 16  ;;  %v679_v11 = vshll.u32 %v351_v60, 16  ;;  %v706_v12 = vor.u32 %v705_v58, %v702_v57 }
  0x47   : > { %v695_v13 = vshll.u32 %v353_v59, 16  ;;  %v733_v14 = vshll.u32 %v358_v0, 16  ;;  %v737_v15 = vshrl.u32 %v358_v0, 16  ;;  %v664_v16 = vsel %vm4688_vm2, %v659_v61, %v4816_v10  ;;  %v247_v0 = vld [vmem:[%s4677_s19] sm:$0xf] }
  0x48   : > { %v727_v19 = vshll.u32 %v357_v3, 16  ;;  %v645_v5 = vrot.slane %v644_v7, 4  ;;  %v649_v20 = vrot.slane %v647_v4, 5  ;;  %v678_v21 = vrot.slane %v676_v8, 4  ;;  %280 = vst.msk [vmem:[#allocation2] sm:$0xf] %vm279_vm6, %v247_v0 }
  0x49   : > { %v681_v22 = vrot.slane %v679_v11, 5  ;;  %v707_v23 = vrot.slane %v706_v12, 4  ;;  %v711_v24 = vrot.slane %v709_v2, 5  ;;  %v735_v26 = vrot.slane %v733_v14, 5  ;;  %v251_v2 = vld [vmem:[%s4677_s19 + $0x18] sm:$0xf] }
  0x4a   : > { %785 = vrot.lane.b32.xlu1 %v602_v17, %s4626_s20  ;;  %v692_v17 = vor.u32 %v691_v63, %v4837_v62  ;;  %v739_v27 = vrot.slane %v737_v15, 4  ;;  %v697_v28 = vrot.slane %v695_v13, 5  ;;  %v729_v30 = vrot.slane %v727_v19, 5  ;;  %v249_v63 = vld [vmem:[%s4677_s19 + $0xc] sm:$0xf] }
  0x4b   : > { %783 = vrot.lane.b32.xlu0 %v592_v18, %s4626_s20  ;;  %v724_v18 = vshrl.u32 %v357_v3, 16  ;;  %v713_v31 = vshrl.u32 %v355_v53, 16  ;;  %v650_v32 = vsel %vm4688_vm2, %v645_v5, %v649_v20  ;;  %v682_v33 = vor.u32 %v681_v22, %v678_v21  ;;  %v880_v53 = vld [vmem:[%s4677_s19 + $0x10] sm:$0xf]  ;;  %282 = vst.msk [vmem:[#allocation2 + $0x10] sm:$0xf] %vm279_vm6, %v249_v63 }
  0x4c   : > { %v693_v10 = vrot.slane %v692_v17, 4  ;;  %v712_v34 = vsel %vm4688_vm2, %v707_v23, %v711_v24  ;;  %v740_v35 = vor.u32 %v739_v27, %v735_v26  ;;  %v743_v37 = vshll.u32 %v359_v29, 16  ;;  %284 = vst.msk [vmem:[#allocation2 + $0x20] sm:$0xf] %vm279_vm6, %v251_v2  ;;  %v884_v8 = vld [vmem:[%s4677_s19 + $0x20] sm:$0x1] }
  0x4d   : > { %v726_v9 = vrot.slane %v724_v18, 4  ;;  %v683_v36 = vrot.slane %v682_v33, 4  ;;  %v715_v40 = vrot.slane %v713_v31, 4  ;;  %v719_v48 = vshll.u32 %v356_v43, 16  ;;  %v882_v11 = vld [vmem:[%s4677_s19 + $0x18] sm:$0xe] }
  0x4e   : > { %781 = vrot.lane.b32.xlu2 %v578_v42, %s4626_s20  ;;  %v698_v38 = vsel %vm4688_vm2, %v693_v10, %v697_v28  ;;  %v741_v41 = vrot.slane %v740_v35, 4  ;;  %v745_v42 = vrot.slane %v743_v37, 5  ;;  %v977_v51 = vrot.slane %v877_v45, 5  ;;  %v250_v17 = vld [vmem:[%s4677_s19 + $0x10] sm:$0xf] }
  0x4f   : > { %v730_v39 = vor.u32 %v729_v30, %v726_v9  ;;  %v688_v46 = vsel %vm4688_vm2, %v683_v36, %v4837_v62  ;;  %v4033_v55 = vrot.slane %v879_v50, 9  ;;  %v721_v57 = vrot.slane %v719_v48, 5  ;;  %v883_v62 = vld [vmem:[%s4677_s19 + $0x1c] sm:$0xf]  ;;  %v248_v18 = vld [vmem:[%s4677_s19 + $0x4] sm:$0xf] }
  0x50   : > { %v746_v49 = vsel %vm4688_vm2, %v741_v41, %v745_v42  ;;  %v984_v59 = vrot.slane %v880_v53, 5  ;;  %v979_v60 = vrot.slane %v977_v51, 4  ;;  %v980_v61 = vrot.slane %v878_v54, 5  ;;  %283 = vst.msk [vmem:[#allocation2 + $0x18] sm:$0xf] %vm279_vm6, %v250_v17 }
  0x51   : > { %v991_v4 = vrot.slane %v883_v62, 5  ;;  %v994_v14 = vrot.slane %v884_v8, 5  ;;  %v4034_v15 = vrot.slane %v882_v11, 9  ;;  %281 = vst.msk [vmem:[#allocation2 + $0x8] sm:$0xf] %vm279_vm6, %v248_v18 }
  0x52   : > { %791 = vrot.lane.b32.xlu1 %v640_v44, %s4626_s20  ;;  %v731_v44 = vrot.slane %v730_v39, 4  ;;  %v985_v3 = vsel %vm4878_vm5, %v4033_v55, %v984_v59  ;;  %v981_v7 = vsel %vm4878_vm5, %v979_v60, %v980_v61  ;;  %v252_v5 = vld [vmem:[%s4677_s19 + $0x1c] sm:$0xf]  ;;  %v881_v22 = vld [vmem:[%s4677_s19 + $0x14] sm:$0x1]  ;;  %v986_v10 = vrot.slane %v984_v59, 4 }
  0x53   : > { %789 = vrot.lane.b32.xlu0 %v626_v47, %s4626_s20  ;;  %v716_v47 = vor.u32 %v715_v40, %v711_v24  ;;  %v993_v13 = vrot.slane %v991_v4, 4  ;;  %285 = vst.msk [vmem:[#allocation2 + $0x28] sm:$0xf] %vm279_vm6, %v252_v5  ;;  %v992_v23 = vsel %vm4878_vm5, %v4034_v15, %v991_v4  ;;  %v888_v24 = vld [vmem:[%s4677_s19 + $0x30] sm:$0xe]  ;;  %v987_v28 = vrot.slane %v881_v22, 5 }
  0x54   : > { %v736_v52 = vsel %vm4688_vm2, %v731_v44, %v735_v26  ;;  %v889_v26 = vld [vmem:[%s4677_s19 + $0x34] sm:$0xf]  ;;  %v887_v27 = vld [vmem:[%s4677_s19 + $0x2c] sm:$0x1]  ;;  %v4036_v29 = vrot.slane %v888_v24, 9 }
  0x55   : > { %v717_v56 = vrot.slane %v716_v47, 4  ;;  %v995_v20 = vsel %vm4878_vm5, %v993_v13, %v994_v14  ;;  %v1005_v9 = vrot.slane %v889_v26, 5  ;;  %v1001_v31 = vrot.slane %v887_v27, 5  ;;  %v254_v33 = vld [vmem:[%s4677_s19 + $0x28] sm:$0xf] }
  0x56   : > { %787 = vrot.lane.b32.xlu2 %v616_v6, %s4626_s20  ;;  %v876_v6 = vld [vmem:[%s4677_s19] sm:$0xe]  ;;  %287 = vst.msk [vmem:[#allocation2 + $0x38] sm:$0xf] %vm279_vm6, %v254_v33  ;;  %v988_v35 = vsel %vm4878_vm5, %v986_v10, %v987_v28  ;;  %v255_v37 = vld [vmem:[%s4677_s19 + $0x30] sm:$0xf] }
  0x57   : > { %v4032_v12 = vrot.slane %v876_v6, 9  ;;  %v885_v36 = vld [vmem:[%s4677_s19 + $0x24] sm:$0xe]  ;;  %288 = vst.msk [vmem:[#allocation2 + $0x40] sm:$0xf] %vm279_vm6, %v255_v37  ;;  %v1007_v61 = vrot.slane %v1005_v9, 4 }
  0x58   : > { %v893_v41 = vld [vmem:[%s4677_s19 + $0x44] sm:$0x1]  ;;  %v891_v42 = vld [vmem:[%s4677_s19 + $0x3c] sm:$0xe]  ;;  %v4035_v43 = vrot.slane %v885_v36, 9 }
  0x59   : > { %v978_v19 = vsel %vm4878_vm5, %v4032_v12, %v977_v51  ;;  %v1015_v45 = vrot.slane %v893_v41, 5  ;;  %v4941_v48 = vld [vmem:[%s4677_s19 + $0x4c] sm:$0xf]  ;;  %v256_v50 = vld [vmem:[%s4677_s19 + $0x34] sm:$0xf] }
  0x5a   : > { %797 = vrot.lane.b32.xlu1 %v674_v1, %s4626_s20  ;;  %v722_v1 = vsel %vm4688_vm2, %v717_v56, %v721_v57  ;;  %289 = vst.msk [vmem:[#allocation2 + $0x48] sm:$0xf] %vm279_vm6, %v256_v50  ;;  %v1019_v54 = vrot.slane %v4941_v48, 5  ;;  %v890_v55 = vld [vmem:[%s4677_s19 + $0x38] sm:$0x1] }
  0x5b   : > { %795 = vrot.lane.b32.xlu0 %v664_v16, %s4626_s20  ;;  %v886_v16 = vld [vmem:[%s4677_s19 + $0x28] sm:$0xf]  ;;  %v897_v57 = vld [vmem:[%s4677_s19 + $0x54] sm:$0xe]  ;;  %v898_v59 = vld [vmem:[%s4677_s19 + $0x58] sm:$0xf] }
  0x5c   : > { %v998_v21 = vrot.slane %v886_v16, 5  ;;  %v896_v60 = vld [vmem:[%s4677_s19 + $0x50] sm:$0x1]  ;;  %v1008_v62 = vrot.slane %v890_v55, 5  ;;  %v4039_v63 = vrot.slane %v897_v57, 9  ;;  %v1026_v0 = vrot.slane %v898_v59, 5 }
  0x5d   : > { %v1022_v2 = vrot.slane %v896_v60, 5  ;;  %v901_v6 = vld [vmem:[%s4677_s19 + $0x64] sm:$0xf]  ;;  %v259_v11 = vld [vmem:[%s4677_s19 + $0x48] sm:$0xf] }
  0x5e   : > { %793 = vrot.lane.b32.xlu2 %v650_v32, %s4626_s20  ;;  %v1000_v30 = vrot.slane %v998_v21, 4  ;;  %v892_v32 = vld [vmem:[%s4677_s19 + $0x40] sm:$0xf]  ;;  %v999_v51 = vsel %vm4878_vm5, %v4035_v43, %v998_v21  ;;  %v1009_v12 = vsel %vm4878_vm5, %v1007_v61, %v1008_v62  ;;  %v261_v13 = vld [vmem:[%s4677_s19 + $0x54] sm:$0xf]  ;;  %v1027_v14 = vsel %vm4878_vm5, %v4039_v63, %v1026_v0 }
  0x5f   : > { %v1012_v39 = vrot.slane %v892_v32, 5  ;;  %v1033_v15 = vrot.slane %v901_v6, 5  ;;  %v894_v16 = vld [vmem:[%s4677_s19 + $0x48] sm:$0xe]  ;;  %v902_v18 = vld [vmem:[%s4677_s19 + $0x68] sm:$0x1] }
  0x60   : > { %v1002_v40 = vsel %vm4878_vm5, %v1000_v30, %v1001_v31  ;;  %292 = vst.msk [vmem:[#allocation2 + $0x60] sm:$0xf] %vm279_vm6, %v259_v11  ;;  %v4038_v5 = vrot.slane %v894_v16, 9  ;;  %v1036_v21 = vrot.slane %v902_v18, 5  ;;  %v4988_v26 = vld [vmem:[%s4677_s19 + $0x70] sm:$0xf] }
  0x61   : > { %v1014_v44 = vrot.slane %v1012_v39, 4  ;;  %294 = vst.msk [vmem:[#allocation2 + $0x70] sm:$0xf] %vm279_vm6, %v261_v13  ;;  %v263_v27 = vld [vmem:[%s4677_s19 + $0x60] sm:$0xf]  ;;  %v1040_v32 = vrot.slane %v4988_v26, 5 }
  0x62   : > { %803 = vrot.lane.b32.xlu1 %v712_v34, %s4626_s20  ;;  %v253_v34 = vld [vmem:[%s4677_s19 + $0x24] sm:$0xf]  ;;  %v262_v28 = vld [vmem:[%s4677_s19 + $0x58] sm:$0xf]  ;;  %v899_v33 = vld [vmem:[%s4677_s19 + $0x5c] sm:$0x1] }
  0x63   : > { %801 = vrot.lane.b32.xlu0 %v698_v38, %s4626_s20  ;;  %286 = vst.msk [vmem:[#allocation2 + $0x30] sm:$0xf] %vm279_vm6, %v253_v34  ;;  %v1006_v38 = vsel %vm4878_vm5, %v4036_v29, %v1005_v9  ;;  %v1016_v53 = vsel %vm4878_vm5, %v1014_v44, %v1015_v45  ;;  %v906_v29 = vld [vmem:[%s4677_s19 + $0x78] sm:$0xe]  ;;  %v1020_v9 = vsel %vm4878_vm5, %v4038_v5, %v1019_v54  ;;  %v264_v30 = vld [vmem:[%s4677_s19 + $0x64] sm:$0xf] }
  0x64   : > { %296 = vst.msk [vmem:[#allocation2 + $0x80] sm:$0xf] %vm279_vm6, %v263_v27  ;;  %v905_v37 = vld [vmem:[%s4677_s19 + $0x74] sm:$0x1]  ;;  %v4042_v36 = vrot.slane %v906_v29, 9  ;;  %v1042_v41 = vrot.slane %v1040_v32, 4 }
  0x65   : > { %295 = vst.msk [vmem:[#allocation2 + $0x78] sm:$0xf] %vm279_vm6, %v262_v28  ;;  %v910_v45 = vld [vmem:[%s4677_s19 + $0x88] sm:$0xf]  ;;  %v265_v48 = vld [vmem:[%s4677_s19 + $0x6c] sm:$0xf] }
  0x66   : > { %799 = vrot.lane.b32.xlu2 %v688_v46, %s4626_s20  ;;  %v4037_v46 = vrot.slane %v891_v42, 9  ;;  %297 = vst.msk [vmem:[#allocation2 + $0x88] sm:$0xf] %vm279_vm6, %v264_v30  ;;  %v1043_v42 = vrot.slane %v905_v37, 5  ;;  %v267_v50 = vld [vmem:[%s4677_s19 + $0x78] sm:$0xf] }
  0x67   : > { %v911_v55 = vld [vmem:[%s4677_s19 + $0x8c] sm:$0x1]  ;;  %298 = vst.msk [vmem:[#allocation2 + $0x90] sm:$0xf] %vm279_vm6, %v265_v48  ;;  %v271_v27 = vld [vmem:[%s4677_s19 + $0x90] sm:$0xf] }
  0x68   : > { %v1013_v56 = vsel %vm4878_vm5, %v4037_v46, %v1012_v39  ;;  %v1029_v39 = vrot.slane %v899_v33, 5  ;;  %v266_v46 = vld [vmem:[%s4677_s19 + $0x70] sm:$0xf]  ;;  %300 = vst.msk [vmem:[#allocation2 + $0xa0] sm:$0xf] %vm279_vm6, %v267_v50  ;;  %v1057_v60 = vrot.slane %v911_v55, 5 }
  0x69   : > { %299 = vst.msk [vmem:[#allocation2 + $0x98] sm:$0xf] %vm279_vm6, %v266_v46  ;;  %v273_v28 = vld [vmem:[%s4677_s19 + $0x9c] sm:$0xf]  ;;  %v912_v30 = vld [vmem:[%s4677_s19 + $0x90] sm:$0xe] }
  0x6a   : > { %809 = vrot.lane.b32.xlu1 %v746_v49, %s4626_s20  ;;  %v257_v49 = vld [vmem:[%s4677_s19 + $0x3c] sm:$0xf]  ;;  %304 = vst.msk [vmem:[#allocation2 + $0xc0] sm:$0xf] %vm279_vm6, %v271_v27  ;;  %v918_v33 = vld [vmem:[%s4677_s19 + $0xa8] sm:$0xe] }
  0x6b   : > { %807 = vrot.lane.b32.xlu0 %v736_v52, %s4626_s20  ;;  %290 = vst.msk [vmem:[#allocation2 + $0x50] sm:$0xf] %vm279_vm6, %v257_v49  ;;  %v258_v52 = vld [vmem:[%s4677_s19 + $0x40] sm:$0xf]  ;;  %v923_v50 = vld [vmem:[%s4677_s19 + $0xbc] sm:$0x1] }
  0x6c   : > { %291 = vst.msk [vmem:[#allocation2 + $0x58] sm:$0xf] %vm279_vm6, %v258_v52  ;;  %v1054_v52 = vrot.slane %v910_v45, 5  ;;  %v276_v45 = vld [vmem:[%s4677_s19 + $0xac] sm:$0xf] }
  0x6d   : > { %306 = vst.msk [vmem:[#allocation2 + $0xd0] sm:$0xf] %vm279_vm6, %v273_v28  ;;  %v4060_v27 = vld [vmem:[%s4677_s19 + $0x54] sm:$0xf] }
  0x6e   : > { %805 = vrot.lane.b32.xlu2 %v722_v1, %s4626_s20  ;;  %v1021_v1 = vrot.slane %v1019_v54, 4  ;;  %v1044_v54 = vsel %vm4878_vm5, %v1042_v41, %v1043_v42  ;;  %v1056_v59 = vrot.slane %v1054_v52, 4  ;;  %v922_v42 = vld [vmem:[%s4677_s19 + $0xb8] sm:$0xf]  ;;  %309 = vst.msk [vmem:[#allocation2 + $0xe8] sm:$0xf] %vm279_vm6, %v276_v45 }
  0x70   : > { %v1023_v17 = vsel %vm4878_vm5, %v1021_v1, %v1022_v2  ;;  %v269_v1 = vld [vmem:[%s4677_s19 + $0x84] sm:$0xf] }
  0x71   : > { %302 = vst.msk [vmem:[#allocation2 + $0xb0] sm:$0xf] %vm279_vm6, %v269_v1 }
  0x72   : > { %1091 = vrot.lane.b32.xlu1 %v985_v3, %s4627_s21 }
  0x73   : > { %1089 = vrot.lane.b32.xlu0 %v981_v7, %s4627_s21  ;;  %v260_v7 = vld [vmem:[%s4677_s19 + $0x4c] sm:$0xf] }
  0x74   : > { %293 = vst.msk [vmem:[#allocation2 + $0x68] sm:$0xf] %vm279_vm6, %v260_v7  ;;  %v270_v7 = vld [vmem:[%s4677_s19 + $0x88] sm:$0xf] }
  0x75   : > { %303 = vst.msk [vmem:[#allocation2 + $0xb8] sm:$0xf] %vm279_vm6, %v270_v7  ;;  %v4051_v7 = vld [vmem:[%s4677_s19 + $0x1c] sm:$0xf] }
  0x76   : > { %1087 = vrot.lane.b32.xlu2 %v978_v19, %s4627_s21  ;;  %v900_v19 = vld [vmem:[%s4677_s19 + $0x60] sm:$0xe] }
  0x77   : > { %v4040_v22 = vrot.slane %v900_v19, 9 }
  0x79   : > { %v1034_v34 = vsel %vm4878_vm5, %v4040_v22, %v1033_v15 }
  0x7a   : > { %1097 = vrot.lane.b32.xlu1 %v995_v20, %s4627_s21  ;;  %v1035_v20 = vrot.slane %v1033_v15, 4  ;;  %v914_v15 = vld [vmem:[%s4677_s19 + $0x98] sm:$0x1] }
  0x7b   : > { %1095 = vrot.lane.b32.xlu0 %v992_v23, %s4627_s21 }
  0x7c   : > { %v1037_v31 = vsel %vm4878_vm5, %v1035_v20, %v1036_v21  ;;  %v1064_v20 = vrot.slane %v914_v15, 5  ;;  %v4054_v15 = vld [vmem:[%s4677_s19 + $0x30] sm:$0xf] }
  0x7e   : > { %1093 = vrot.lane.b32.xlu2 %v988_v35, %s4627_s21  ;;  %v5006_v35 = vld [vmem:[%s4677_s19 + $0x7c] sm:$0xf] }
  0x80   : > { %v756_v47 = vpop.permute.xlu2 %755 }
  0x81   : > { %848 = vst.msk [vmem:[#allocation2 + $0x20] sm:$0xf] %vm843_vm7, %v756_v47 }
  0x82   : > { %1103 = vrot.lane.b32.xlu1 %v1006_v38, %s4627_s21  ;;  %v1028_v38 = vrot.slane %v1026_v0, 4  ;;  %v5039_v0 = vld [vmem:[%s4677_s19 + $0x94] sm:$0xf] }
  0x83   : > { %1101 = vrot.lane.b32.xlu0 %v1002_v40, %s4627_s21  ;;  %v1047_v40 = vrot.slane %v5006_v35, 5  ;;  %v1061_v11 = vrot.slane %v5039_v0, 5 }
  0x84   : > { %v1030_v49 = vsel %vm4878_vm5, %v1028_v38, %v1029_v39 }
  0x85   : > { %v1049_v16 = vrot.slane %v1047_v40, 4  ;;  %v1063_v5 = vrot.slane %v1061_v11, 4 }
  0x86   : > { %1099 = vrot.lane.b32.xlu2 %v999_v51, %s4627_s21  ;;  %v1048_v51 = vsel %vm4878_vm5, %v4042_v36, %v1047_v40  ;;  %v4046_v36 = vrot.slane %v918_v33, 9  ;;  %v275_v40 = vld [vmem:[%s4677_s19 + $0xa8] sm:$0xf] }
  0x87   : > { %308 = vst.msk [vmem:[#allocation2 + $0xe0] sm:$0xf] %vm279_vm6, %v275_v40 }
  0x88   : > { %v758_v3 = vpop.permute.xlu2 %757 }
  0x89   : > { %849 = vst.msk [vmem:[#allocation2 + $0x28] sm:$0xf] %vm843_vm7, %v758_v3  ;;  %v268_v3 = vld [vmem:[%s4677_s19 + $0x7c] sm:$0xf] }
  0x8a   : > { %1109 = vrot.lane.b32.xlu1 %v1016_v53, %s4627_s21  ;;  %v903_v53 = vld [vmem:[%s4677_s19 + $0x6c] sm:$0xe]  ;;  %301 = vst.msk [vmem:[#allocation2 + $0xa8] sm:$0xf] %vm279_vm6, %v268_v3 }
  0x8b   : > { %1107 = vrot.lane.b32.xlu0 %v1013_v56, %s4627_s21  ;;  %v909_v56 = vld [vmem:[%s4677_s19 + $0x84] sm:$0xe]  ;;  %v4041_v57 = vrot.slane %v903_v53, 9 }
  0x8c   : > { %v752_v4 = vpop.permute.xlu1 %751  ;;  %v4043_v61 = vrot.slane %v909_v56, 9  ;;  %v1085_v56 = vrot.slane %v923_v50, 5  ;;  %v4071_v50 = vld [vmem:[%s4677_s19 + $0x94] sm:$0xf] }
  0x8d   : > { %846 = vst.msk [vmem:[#allocation2 + $0x10] sm:$0xf] %vm843_vm7, %v752_v4  ;;  %v748_v8 = vpop.permute.xlu0 %747  ;;  %v915_v4 = vld [vmem:[%s4677_s19 + $0x9c] sm:$0xe]  ;;  %v1041_v6 = vsel %vm4878_vm5, %v4041_v57, %v1040_v32  ;;  %v920_v32 = vld [vmem:[%s4677_s19 + $0xb0] sm:$0x1] }
  0x8e   : > { %844 = vst.msk [vmem:[#allocation2] sm:$0xf] %vm843_vm7, %v748_v8  ;;  %1105 = vrot.lane.b32.xlu2 %v1009_v12, %s4627_s21  ;;  %v1058_v8 = vsel %vm4878_vm5, %v1056_v59, %v1057_v60  ;;  %v908_v12 = vld [vmem:[%s4677_s19 + $0x80] sm:$0x1]  ;;  %v1055_v13 = vsel %vm4878_vm5, %v4043_v61, %v1054_v52  ;;  %v4045_v18 = vrot.slane %v915_v4, 9  ;;  %v1078_v37 = vrot.slane %v920_v32, 5 }
  0x8f   : > { %v278_v57 = vld [vmem:[%s4677_s19 + $0xb8] sm:$0xf]  ;;  %v277_v60 = vld [vmem:[%s4677_s19 + $0xb4] sm:$0xf]  ;;  %v4062_v32 = vld [vmem:[%s4677_s19 + $0x60] sm:$0xf] }
  0x90   : > { %v764_v23 = vpop.permute.xlu2 %763  ;;  %311 = vst.msk [vmem:[#allocation2 + $0xf8] sm:$0xf] %vm279_vm6, %v278_v57 }
  0x91   : > { %852 = vst.msk [vmem:[#allocation2 + $0x40] sm:$0xf] %vm843_vm7, %v764_v23  ;;  %v919_v23 = vld [vmem:[%s4677_s19 + $0xac] sm:$0xf] }
  0x92   : > { %1115 = vrot.lane.b32.xlu1 %v1027_v14, %s4627_s21  ;;  %v916_v14 = vld [vmem:[%s4677_s19 + $0xa0] sm:$0xf]  ;;  %310 = vst.msk [vmem:[#allocation2 + $0xf0] sm:$0xf] %vm279_vm6, %v277_v60 }
  0x93   : > { %1113 = vrot.lane.b32.xlu0 %v1023_v17, %s4627_s21  ;;  %v1050_v17 = vrot.slane %v908_v12, 5  ;;  %v1068_v19 = vrot.slane %v916_v14, 5  ;;  %v4049_v14 = vld [vmem:[%s4677_s19 + $0x10] sm:$0xf] }
  0x94   : > { %v754_v24 = vpop.permute.xlu1 %753 }
  0x95   : > { %847 = vst.msk [vmem:[#allocation2 + $0x18] sm:$0xf] %vm843_vm7, %v754_v24  ;;  %v750_v10 = vpop.permute.xlu0 %749  ;;  %v272_v24 = vld [vmem:[%s4677_s19 + $0x94] sm:$0xf]  ;;  %v1069_v29 = vsel %vm4878_vm5, %v4045_v18, %v1068_v19 }
  0x96   : > { %845 = vst.msk [vmem:[#allocation2 + $0x8] sm:$0xf] %vm843_vm7, %v750_v10  ;;  %1111 = vrot.lane.b32.xlu2 %v1020_v9, %s4627_s21  ;;  %v1051_v10 = vsel %vm4878_vm5, %v1049_v16, %v1050_v17  ;;  %v1075_v9 = vrot.slane %v919_v23, 5  ;;  %v4053_v16 = vld [vmem:[%s4677_s19 + $0x28] sm:$0xf] }
  0x97   : > { %305 = vst.msk [vmem:[#allocation2 + $0xc8] sm:$0xf] %vm279_vm6, %v272_v24 }
  0x98   : > { %v770_v43 = vpop.permute.xlu2 %769  ;;  %v1077_v35 = vrot.slane %v1075_v9, 4  ;;  %v1076_v48 = vsel %vm4878_vm5, %v4046_v36, %v1075_v9 }
  0x99   : > { %855 = vst.msk [vmem:[#allocation2 + $0x58] sm:$0xf] %vm843_vm7, %v770_v43  ;;  %v274_v43 = vld [vmem:[%s4677_s19 + $0xa0] sm:$0xf] }
  0x9a   : > { %1121 = vrot.lane.b32.xlu1 %v1037_v31, %s4627_s21  ;;  %v1065_v31 = vsel %vm4878_vm5, %v1063_v5, %v1064_v20  ;;  %v1079_v46 = vsel %vm4878_vm5, %v1077_v35, %v1078_v37  ;;  %307 = vst.msk [vmem:[#allocation2 + $0xd8] sm:$0xf] %vm279_vm6, %v274_v43  ;;  %v4052_v5 = vld [vmem:[%s4677_s19 + $0x24] sm:$0xf]  ;;  %v4057_v20 = vld [vmem:[%s4677_s19 + $0x40] sm:$0xf] }
  0x9b   : > { %1119 = vrot.lane.b32.xlu0 %v1034_v34, %s4627_s21  ;;  %v4044_v34 = vrot.slane %v912_v30, 9  ;;  %v4058_v30 = vld [vmem:[%s4677_s19 + $0x48] sm:$0xf]  ;;  %v4061_v37 = vld [vmem:[%s4677_s19 + $0x58] sm:$0xf] }
  0x9c   : > { %v762_v44 = vpop.permute.xlu1 %761  ;;  %v4069_v43 = vld [vmem:[%s4677_s19 + $0x88] sm:$0xf] }
  0x9d   : > { %851 = vst.msk [vmem:[#allocation2 + $0x38] sm:$0xf] %vm843_vm7, %v762_v44  ;;  %v760_v47 = vpop.permute.xlu0 %759  ;;  %v1062_v44 = vsel %vm4878_vm5, %v4044_v34, %v1061_v11 }
  0x9e   : > { %850 = vst.msk [vmem:[#allocation2 + $0x30] sm:$0xf] %vm843_vm7, %v760_v47  ;;  %1117 = vrot.lane.b32.xlu2 %v1030_v49, %s4627_s21  ;;  %v917_v47 = vld [vmem:[%s4677_s19 + $0xa4] sm:$0x1]  ;;  %v1082_v49 = vrot.slane %v922_v42, 5 }
  0x9f   : > { %v1071_v52 = vrot.slane %v917_v47, 5  ;;  %v4064_v42 = vld [vmem:[%s4677_s19 + $0x6c] sm:$0xf] }
  0xa0   : > { %v776_v62 = vpop.permute.xlu2 %775  ;;  %v1084_v55 = vrot.slane %v1082_v49, 4 }
  0xa1   : > { %858 = vst.msk [vmem:[#allocation2 + $0x70] sm:$0xf] %vm843_vm7, %v776_v62  ;;  %v4048_v62 = vld [vmem:[%s4677_s19 + $0xc] sm:$0xf] }
  0xa2   : > { %1127 = vrot.lane.b32.xlu1 %v1048_v51, %s4627_s21  ;;  %v1070_v51 = vrot.slane %v1068_v19, 4  ;;  %v1086_v0 = vsel %vm4878_vm5, %v1084_v55, %v1085_v56 }
  0xa3   : > { %1125 = vrot.lane.b32.xlu0 %v1044_v54, %s4627_s21 }
  0xa4   : > { %v768_v63 = vpop.permute.xlu1 %767  ;;  %v1072_v61 = vsel %vm4878_vm5, %v1070_v51, %v1071_v52  ;;  %v4081_v51 = vld [vmem:[%s4677_s19 + $0x10] sm:$0xf] }
  0xa5   : > { %854 = vst.msk [vmem:[#allocation2 + $0x50] sm:$0xf] %vm843_vm7, %v768_v63  ;;  %v766_v2 = vpop.permute.xlu0 %765  ;;  %v921_v63 = vld [vmem:[%s4677_s19 + $0xb4] sm:$0xe]  ;;  %v1471_v56 = vshll.u32 %v4081_v51, 16  ;;  %v1475_v57 = vshrl.u32 %v4081_v51, 16 }
  0xa6   : > { %853 = vst.msk [vmem:[#allocation2 + $0x48] sm:$0xf] %vm843_vm7, %v766_v2  ;;  %1123 = vrot.lane.b32.xlu2 %v1041_v6, %s4627_s21  ;;  %v4047_v1 = vrot.slane %v921_v63, 9  ;;  %v4074_v63 = vld [vmem:[%s4677_s19 + $0xa8] sm:$0xf] }
  0xa8   : > { %v782_v21 = vpop.permute.xlu2 %781  ;;  %v1083_v6 = vsel %vm4878_vm5, %v4047_v1, %v1082_v49  ;;  %v4072_v49 = vld [vmem:[%s4677_s19 + $0x9c] sm:$0xf]  ;;  %v1477_v1 = vrot.slane %v1475_v57, 4 }
  0xa9   : > { %861 = vst.msk [vmem:[#allocation2 + $0x88] sm:$0xf] %vm843_vm7, %v782_v21  ;;  %v4056_v21 = vld [vmem:[%s4677_s19 + $0x3c] sm:$0xf] }
  0xaa   : > { %1133 = vrot.lane.b32.xlu1 %v1058_v8, %s4627_s21  ;;  %v4050_v8 = vld [vmem:[%s4677_s19 + $0x18] sm:$0xf] }
  0xab   : > { %1131 = vrot.lane.b32.xlu0 %v1055_v13, %s4627_s21 }
  0xac   : > { %v774_v22 = vpop.permute.xlu1 %773 }
  0xad   : > { %857 = vst.msk [vmem:[#allocation2 + $0x68] sm:$0xf] %vm843_vm7, %v774_v22  ;;  %v772_v26 = vpop.permute.xlu0 %771 }
  0xae   : > { %856 = vst.msk [vmem:[#allocation2 + $0x60] sm:$0xf] %vm843_vm7, %v772_v26  ;;  %1129 = vrot.lane.b32.xlu2 %v1051_v10, %s4627_s21  ;;  %v4055_v26 = vld [vmem:[%s4677_s19 + $0x34] sm:$0xf]  ;;  %v4059_v10 = vld [vmem:[%s4677_s19 + $0x4c] sm:$0xf] }
  0xb0   : > { %v788_v38 = vpop.permute.xlu2 %787 }
  0xb1   : > { %864 = vst.msk [vmem:[#allocation2 + $0xa0] sm:$0xf] %vm843_vm7, %v788_v38  ;;  %v4066_v38 = vld [vmem:[%s4677_s19 + $0x78] sm:$0xf] }
  0xb2   : > { %1139 = vrot.lane.b32.xlu1 %v1069_v29, %s4627_s21 }
  0xb3   : > { %1137 = vrot.lane.b32.xlu0 %v1065_v31, %s4627_s21  ;;  %v4063_v31 = vld [vmem:[%s4677_s19 + $0x64] sm:$0xf] }
  0xb4   : > { %v780_v39 = vpop.permute.xlu1 %779 }
  0xb5   : > { %860 = vst.msk [vmem:[#allocation2 + $0x80] sm:$0xf] %vm843_vm7, %v780_v39  ;;  %v778_v41 = vpop.permute.xlu0 %777  ;;  %v4065_v39 = vld [vmem:[%s4677_s19 + $0x70] sm:$0xf] }
  0xb6   : > { %859 = vst.msk [vmem:[#allocation2 + $0x78] sm:$0xf] %vm843_vm7, %v778_v41  ;;  %1135 = vrot.lane.b32.xlu2 %v1062_v44, %s4627_s21  ;;  %v4068_v44 = vld [vmem:[%s4677_s19 + $0x84] sm:$0xf] }
  0xb8   : > { %v794_v53 = vpop.permute.xlu2 %793 }
  0xb9   : > { %867 = vst.msk [vmem:[#allocation2 + $0xb8] sm:$0xf] %vm843_vm7, %v794_v53  ;;  %v4080_v53 = vld [vmem:[%s4677_s19 + $0xc] sm:$0xf] }
  0xba   : > { %1145 = vrot.lane.b32.xlu1 %v1079_v46, %s4627_s21  ;;  %v1462_v60 = vshrl.u32 %v4080_v53, 16 }
  0xbb   : > { %1143 = vrot.lane.b32.xlu0 %v1076_v48, %s4627_s21  ;;  %v4067_v48 = vld [vmem:[%s4677_s19 + $0x7c] sm:$0xf] }
  0xbc   : > { %v786_v54 = vpop.permute.xlu1 %785 }
  0xbd   : > { %863 = vst.msk [vmem:[#allocation2 + $0x98] sm:$0xf] %vm843_vm7, %v786_v54  ;;  %v784_v59 = vpop.permute.xlu0 %783 }
  0xbe   : > { %862 = vst.msk [vmem:[#allocation2 + $0x90] sm:$0xf] %vm843_vm7, %v784_v59  ;;  %1141 = vrot.lane.b32.xlu2 %v1072_v61, %s4627_s21  ;;  %v4070_v59 = vld [vmem:[%s4677_s19 + $0x90] sm:$0xf]  ;;  %v1465_v61 = vshll.u32 %v4080_v53, 16 }
  0xbf   : > { %v4091_v53 = vld [vmem:[%s4677_s19 + $0x38] sm:$0x1] }
  0xc0   : > { %v800_v2 = vpop.permute.xlu2 %799 }
  0xc1   : > { %870 = vst.msk [vmem:[#allocation2 + $0xd0] sm:$0xf] %vm843_vm7, %v800_v2  ;;  %v1464_v2 = vrot.slane %v1462_v60, 4  ;;  %v4095_v60 = vld [vmem:[%s4677_s19 + $0x48] sm:$0xf] }
  0xc2   : > { %1284 = vrot.lane.b32.xlu1 %v4048_v62, %s4628_s22  ;;  %v4075_v62 = vld [vmem:[%s4677_s19 + $0xac] sm:$0xf] }
  0xc3   : > { %1149 = vrot.lane.b32.xlu0 %v1086_v0, %s4627_s21  ;;  %v5204_v0 = vrot.slane %v1471_v56, 5 }
  0xc4   : > { %v792_v3 = vpop.permute.xlu1 %791 }
  0xc5   : > { %866 = vst.msk [vmem:[#allocation2 + $0xb0] sm:$0xf] %vm843_vm7, %v792_v3  ;;  %v790_v4 = vpop.permute.xlu0 %789  ;;  %v1467_v3 = vrot.slane %v1465_v61, 5 }
  0xc6   : > { %865 = vst.msk [vmem:[#allocation2 + $0xa8] sm:$0xf] %vm843_vm7, %v790_v4  ;;  %1147 = vrot.lane.b32.xlu2 %v1083_v6, %s4627_s21  ;;  %v4082_v6 = vld [vmem:[%s4677_s19 + $0x14] sm:$0x1] }
  0xc8   : > { %v806_v11 = vpop.permute.xlu2 %805 }
  0xc9   : > { %873 = vst.msk [vmem:[#allocation2 + $0xe8] sm:$0xf] %vm843_vm7, %v806_v11 }
  0xca   : > { %1290 = vrot.lane.b32.xlu1 %v4051_v7, %s4628_s22 }
  0xcb   : > { %1288 = vrot.lane.b32.xlu0 %v4050_v8, %s4628_s22  ;;  %v4086_v8 = vld [vmem:[%s4677_s19 + $0x24] sm:$0xf] }
  0xcc   : > { %v798_v12 = vpop.permute.xlu1 %797 }
  0xcd   : > { %869 = vst.msk [vmem:[#allocation2 + $0xc8] sm:$0xf] %vm843_vm7, %v798_v12  ;;  %v796_v13 = vpop.permute.xlu0 %795  ;;  %v1478_v12 = vor.u32 %v1477_v1, %v5204_v0 }
  0xce   : > { %868 = vst.msk [vmem:[#allocation2 + $0xc0] sm:$0xf] %vm843_vm7, %v796_v13  ;;  %1286 = vrot.lane.b32.xlu2 %v4049_v14, %s4628_s22  ;;  %v4084_v13 = vld [vmem:[%s4677_s19 + $0x1c] sm:$0xf]  ;;  %v1481_v14 = vshll.u32 %v4082_v6, 16 }
  0xd0   : > { %v1088_v17 = vpop.permute.xlu2 %1087 }
  0xd1   : > { %1184 = vst.msk [vmem:[#allocation2] sm:$0xf] %vm1183_vm8, %v1088_v17  ;;  %v4078_v17 = vld [vmem:[%s4677_s19 + $0xc0] sm:$0xf] }
  0xd2   : > { %1296 = vrot.lane.b32.xlu1 %v4054_v15, %s4628_s22  ;;  %v1468_v15 = vor.u32 %v1467_v3, %v1464_v2  ;;  %v1553_v3 = vshll.u32 %v4091_v53, 16 }
  0xd3   : > { %1294 = vrot.lane.b32.xlu0 %v4053_v16, %s4628_s22  ;;  %v4073_v16 = vld [vmem:[%s4677_s19 + $0xa0] sm:$0xf] }
  0xd4   : > { %v804_v18 = vpop.permute.xlu1 %803 }
  0xd5   : > { %872 = vst.msk [vmem:[#allocation2 + $0xe0] sm:$0xf] %vm843_vm7, %v804_v18  ;;  %v802_v19 = vpop.permute.xlu0 %801  ;;  %v1510_v18 = vshrl.u32 %v4086_v8, 16 }
  0xd6   : > { %871 = vst.msk [vmem:[#allocation2 + $0xd8] sm:$0xf] %vm843_vm7, %v802_v19  ;;  %1292 = vrot.lane.b32.xlu2 %v4052_v5, %s4628_s22  ;;  %v1513_v19 = vshll.u32 %v4086_v8, 16  ;;  %v4077_v5 = vld [vmem:[%s4677_s19 + $0xb8] sm:$0xf] }
  0xd7   : > { %v4079_v8 = vld [vmem:[%s4677_s19 + $0xc4] sm:$0xf] }
  0xd8   : > { %v1094_v22 = vpop.permute.xlu2 %1093 }
  0xd9   : > { %1187 = vst.msk [vmem:[#allocation2 + $0x18] sm:$0xf] %vm1183_vm8, %v1094_v22  ;;  %v1479_v22 = vrot.slane %v1478_v12, 4  ;;  %v1585_v12 = vshll.u32 %v4095_v60, 16 }
  0xda   : > { %1302 = vrot.lane.b32.xlu1 %v4057_v20, %s4628_s22  ;;  %v1495_v20 = vshll.u32 %v4084_v13, 16 }
  0xdb   : > { %1300 = vrot.lane.b32.xlu0 %v4056_v21, %s4628_s22  ;;  %v1499_v21 = vshrl.u32 %v4084_v13, 16 }
  0xdc   : > { %v810_v23 = vpop.permute.xlu1 %809 }
  0xdd   : > { %875 = vst.msk [vmem:[#allocation2 + $0xf8] sm:$0xf] %vm843_vm7, %v810_v23  ;;  %v808_v24 = vpop.permute.xlu0 %807  ;;  %v1483_v23 = vrot.slane %v1481_v14, 5 }
  0xde   : > { %874 = vst.msk [vmem:[#allocation2 + $0xf0] sm:$0xf] %vm843_vm7, %v808_v24  ;;  %1298 = vrot.lane.b32.xlu2 %v4055_v26, %s4628_s22  ;;  %v1469_v24 = vrot.slane %v1468_v15, 4  ;;  %v4090_v26 = vld [vmem:[%s4677_s19 + $0x34] sm:$0xf] }
  0xe0   : > { %v1100_v28 = vpop.permute.xlu2 %1099 }
  0xe1   : > { %1190 = vst.msk [vmem:[#allocation2 + $0x30] sm:$0xf] %vm1183_vm8, %v1100_v28  ;;  %v5224_v28 = vld [vmem:[%s4677_s19 + $0x28] sm:$0xf] }
  0xe2   : > { %1308 = vrot.lane.b32.xlu1 %v4060_v27, %s4628_s22  ;;  %v4083_v27 = vld [vmem:[%s4677_s19 + $0x18] sm:$0xf]  ;;  %v1523_v1 = vshrl.u32 %v5224_v28, 16 }
  0xe3   : > { %1306 = vrot.lane.b32.xlu0 %v4059_v10, %s4628_s22 }
  0xe4   : > { %v1092_v29 = vpop.permute.xlu1 %1091 }
  0xe5   : > { %1186 = vst.msk [vmem:[#allocation2 + $0x10] sm:$0xf] %vm1183_vm8, %v1092_v29  ;;  %v1090_v9 = vpop.permute.xlu0 %1089  ;;  %v1512_v29 = vrot.slane %v1510_v18, 4  ;;  %v1555_v18 = vrot.slane %v1553_v3, 5 }
  0xe6   : > { %1185 = vst.msk [vmem:[#allocation2 + $0x8] sm:$0xf] %vm1183_vm8, %v1090_v9  ;;  %1304 = vrot.lane.b32.xlu2 %v4058_v30, %s4628_s22  ;;  %v1515_v9 = vrot.slane %v1513_v19, 5  ;;  %v4089_v30 = vld [vmem:[%s4677_s19 + $0x30] sm:$0xf] }
  0xe8   : > { %v1106_v33 = vpop.permute.xlu2 %1105 }
  0xe9   : > { %1193 = vst.msk [vmem:[#allocation2 + $0x48] sm:$0xf] %vm1183_vm8, %v1106_v33  ;;  %v5229_v33 = vrot.slane %v1495_v20, 5 }
  0xea   : > { %1314 = vrot.lane.b32.xlu1 %v4063_v31, %s4628_s22 }
  0xeb   : > { %1312 = vrot.lane.b32.xlu0 %v4062_v32, %s4628_s22  ;;  %v4085_v32 = vld [vmem:[%s4677_s19 + $0x20] sm:$0x1] }
  0xec   : > { %v1098_v34 = vpop.permute.xlu1 %1097 }
  0xed   : > { %1189 = vst.msk [vmem:[#allocation2 + $0x28] sm:$0xf] %vm1183_vm8, %v1098_v34  ;;  %v1096_v35 = vpop.permute.xlu0 %1095  ;;  %v1501_v34 = vrot.slane %v1499_v21, 4 }
  0xee   : > { %1188 = vst.msk [vmem:[#allocation2 + $0x20] sm:$0xf] %vm1183_vm8, %v1096_v35  ;;  %1310 = vrot.lane.b32.xlu2 %v4061_v37, %s4628_s22  ;;  %v1543_v37 = vshll.u32 %v4090_v26, 16 }
  0xf0   : > { %v1112_v36 = vpop.permute.xlu2 %1111 }
  0xf1   : > { %1196 = vst.msk [vmem:[#allocation2 + $0x60] sm:$0xf] %vm1183_vm8, %v1112_v36  ;;  %v1489_v36 = vshll.u32 %v4083_v27, 16 }
  0xf2   : > { %1320 = vrot.lane.b32.xlu1 %v4066_v38, %s4628_s22  ;;  %v1547_v38 = vshrl.u32 %v4090_v26, 16 }
  0xf3   : > { %1318 = vrot.lane.b32.xlu0 %v4065_v39, %s4628_s22  ;;  %v1486_v39 = vshrl.u32 %v4083_v27, 16  ;;  %v5268_v27 = vld [vmem:[%s4677_s19 + $0x4c] sm:$0xf] }
  0xf4   : > { %v1104_v40 = vpop.permute.xlu1 %1103 }
  0xf5   : > { %1192 = vst.msk [vmem:[#allocation2 + $0x40] sm:$0xf] %vm1183_vm8, %v1104_v40  ;;  %v1102_v41 = vpop.permute.xlu0 %1101  ;;  %v4076_v40 = vld [vmem:[%s4677_s19 + $0xb4] sm:$0xf]  ;;  %v1488_v51 = vrot.slane %v1486_v39, 4 }
  0xf6   : > { %1191 = vst.msk [vmem:[#allocation2 + $0x38] sm:$0xf] %vm1183_vm8, %v1102_v41  ;;  %1316 = vrot.lane.b32.xlu2 %v4064_v42, %s4628_s22  ;;  %v1534_v41 = vshrl.u32 %v4089_v30, 16  ;;  %v1537_v42 = vshll.u32 %v4089_v30, 16 }
  0xf8   : > { %v1118_v45 = vpop.permute.xlu2 %1117 }
  0xf9   : > { %1199 = vst.msk [vmem:[#allocation2 + $0x78] sm:$0xf] %vm1183_vm8, %v1118_v45  ;;  %v1519_v45 = vshll.u32 %v5224_v28, 16  ;;  %v4092_v28 = vld [vmem:[%s4677_s19 + $0x3c] sm:$0xf] }
  0xfa   : > { %1326 = vrot.lane.b32.xlu1 %v4069_v43, %s4628_s22  ;;  %v1484_v43 = vsel %vm4688_vm2, %v1479_v22, %v1483_v23  ;;  %v1587_v22 = vrot.slane %v1585_v12, 5  ;;  %v4098_v23 = vld [vmem:[%s4677_s19 + $0x54] sm:$0xf] }
  0xfb   : > { %1324 = vrot.lane.b32.xlu0 %v4068_v44, %s4628_s22  ;;  %v1516_v44 = vor.u32 %v1515_v9, %v1512_v29  ;;  %v5247_v57 = vrot.slane %v1519_v45, 5  ;;  %v1609_v39 = vshll.u32 %v4098_v23, 16 }
  0xfc   : > { %v1110_v46 = vpop.permute.xlu1 %1109 }
  0xfd   : > { %1195 = vst.msk [vmem:[#allocation2 + $0x58] sm:$0xf] %vm1183_vm8, %v1110_v46  ;;  %v1108_v47 = vpop.permute.xlu0 %1107  ;;  %v1474_v46 = vsel %vm4688_vm2, %v1469_v24, %v5204_v0  ;;  %v1517_v56 = vrot.slane %v1516_v44, 4  ;;  %v1525_v24 = vrot.slane %v1523_v1, 4  ;;  %v1611_v53 = vrot.slane %v1609_v39, 5 }
  0xfe   : > { %1194 = vst.msk [vmem:[#allocation2 + $0x50] sm:$0xf] %vm1183_vm8, %v1108_v47  ;;  %1322 = vrot.lane.b32.xlu2 %v4067_v48, %s4628_s22  ;;  %v1502_v47 = vor.u32 %v1501_v34, %v5229_v33  ;;  %v1505_v48 = vshll.u32 %v4085_v32, 16 }
  0xff   : > { %v1522_v13 = vsel %vm4688_vm2, %v1517_v56, %v5247_v57 }
 0x100   : > { %v1124_v52 = vpop.permute.xlu2 %1123 }
 0x101   : > { %1202 = vst.msk [vmem:[#allocation2 + $0x90] sm:$0xf] %vm1183_vm8, %v1124_v52  ;;  %v1491_v52 = vrot.slane %v1489_v36, 5  ;;  %v1526_v36 = vor.u32 %v1525_v24, %v5247_v57 }
 0x102   : > { %1332 = vrot.lane.b32.xlu1 %v4072_v49, %s4628_s22  ;;  %v5242_v49 = vrot.slane %v1543_v37, 5 }
 0x103   : > { %1330 = vrot.lane.b32.xlu0 %v4071_v50, %s4628_s22  ;;  %v1549_v50 = vrot.slane %v1547_v38, 4  ;;  %v1492_v6 = vor.u32 %v1491_v52, %v1488_v51  ;;  %v1606_v38 = vshrl.u32 %v4098_v23, 16  ;;  %v4100_v51 = vld [vmem:[%s4677_s19 + $0x5c] sm:$0x1]  ;;  %v5315_v23 = vld [vmem:[%s4677_s19 + $0x70] sm:$0xf] }
 0x104   : > { %v1116_v54 = vpop.permute.xlu1 %1115 }
 0x105   : > { %1198 = vst.msk [vmem:[#allocation2 + $0x70] sm:$0xf] %vm1183_vm8, %v1116_v54  ;;  %v1114_v55 = vpop.permute.xlu0 %1113  ;;  %v1536_v54 = vrot.slane %v1534_v41, 4  ;;  %v1550_v2 = vor.u32 %v1549_v50, %v5242_v49  ;;  %v1493_v19 = vrot.slane %v1492_v6, 4  ;;  %v1558_v41 = vshrl.u32 %v4092_v28, 16 }
 0x106   : > { %1197 = vst.msk [vmem:[#allocation2 + $0x68] sm:$0xf] %vm1183_vm8, %v1114_v55  ;;  %1328 = vrot.lane.b32.xlu2 %v4070_v59, %s4628_s22  ;;  %v1539_v55 = vrot.slane %v1537_v42, 5  ;;  %v1561_v42 = vshll.u32 %v4092_v28, 16  ;;  %v1608_v52 = vrot.slane %v1606_v38, 4  ;;  %v1625_v6 = vshll.u32 %v4100_v51, 16 }
 0x107   : > { %v1498_v37 = vsel %vm4688_vm2, %v1493_v19, %v5229_v33  ;;  %v1591_v33 = vshll.u32 %v5268_v27, 16  ;;  %v1560_v56 = vrot.slane %v1558_v41, 4 }
 0x108   : > { %v1130_v4 = vpop.permute.xlu2 %1129  ;;  %v1563_v57 = vrot.slane %v1561_v42, 5  ;;  %v1627_v19 = vrot.slane %v1625_v6, 5  ;;  %v4117_v42 = vld [vmem:[%s4677_s19 + $0xa0] sm:$0xf] }
 0x109   : > { %1205 = vst.msk [vmem:[#allocation2 + $0xa8] sm:$0xf] %vm1183_vm8, %v1130_v4  ;;  %v4093_v4 = vld [vmem:[%s4677_s19 + $0x40] sm:$0xf] }
 0x10a   : > { %1338 = vrot.lane.b32.xlu1 %v4075_v62, %s4628_s22  ;;  %v1503_v62 = vrot.slane %v1502_v47, 4  ;;  %v1567_v15 = vshll.u32 %v4093_v4, 16 }
 0x10b   : > { %1336 = vrot.lane.b32.xlu0 %v4074_v63, %s4628_s22  ;;  %v1507_v63 = vrot.slane %v1505_v48, 5 }
 0x10c   : > { %v1122_v7 = vpop.permute.xlu1 %1121  ;;  %v5273_v9 = vrot.slane %v1567_v15, 5 }
 0x10d   : > { %1201 = vst.msk [vmem:[#allocation2 + $0x88] sm:$0xf] %vm1183_vm8, %v1122_v7  ;;  %v1120_v11 = vpop.permute.xlu0 %1119  ;;  %v1540_v7 = vor.u32 %v1539_v55, %v1536_v54  ;;  %v1508_v14 = vsel %vm4688_vm2, %v1503_v62, %v1507_v63  ;;  %v1527_v54 = vrot.slane %v1526_v36, 4 }
 0x10e   : > { %1200 = vst.msk [vmem:[#allocation2 + $0x80] sm:$0xf] %vm1183_vm8, %v1120_v11  ;;  %1334 = vrot.lane.b32.xlu2 %v4073_v16, %s4628_s22  ;;  %v1582_v11 = vshrl.u32 %v4095_v60, 16  ;;  %v1571_v16 = vshrl.u32 %v4093_v4, 16  ;;  %v5296_v60 = vrot.slane %v1591_v33, 5  ;;  %v1595_v4 = vshrl.u32 %v5268_v27, 16 }
 0x10f   : > { %v1541_v20 = vrot.slane %v1540_v7, 4  ;;  %v1612_v7 = vor.u32 %v1611_v53, %v1608_v52  ;;  %v4107_v27 = vld [vmem:[%s4677_s19 + $0x78] sm:$0xf] }
 0x110   : > { %v1136_v10 = vpop.permute.xlu2 %1135  ;;  %v1584_v21 = vrot.slane %v1582_v11, 4  ;;  %v1573_v30 = vrot.slane %v1571_v16, 4  ;;  %v1678_v36 = vshrl.u32 %v4107_v27, 16 }
 0x111   : > { %1208 = vst.msk [vmem:[#allocation2 + $0xc0] sm:$0xf] %vm1183_vm8, %v1136_v10  ;;  %v4088_v10 = vld [vmem:[%s4677_s19 + $0x2c] sm:$0x1]  ;;  %v1546_v44 = vsel %vm4688_vm2, %v1541_v20, %v5242_v49 }
 0x112   : > { %1344 = vrot.lane.b32.xlu1 %v4078_v17, %s4628_s22  ;;  %v1551_v17 = vrot.slane %v1550_v2, 4  ;;  %v1588_v45 = vor.u32 %v1587_v22, %v1584_v21  ;;  %v4104_v49 = vld [vmem:[%s4677_s19 + $0x6c] sm:$0xf]  ;;  %v4102_v2 = vld [vmem:[%s4677_s19 + $0x64] sm:$0xf]  ;;  %v1597_v22 = vrot.slane %v1595_v4, 4 }
 0x113   : > { %1342 = vrot.lane.b32.xlu0 %v4077_v5, %s4628_s22  ;;  %v4099_v5 = vld [vmem:[%s4677_s19 + $0x58] sm:$0xf]  ;;  %v1657_v12 = vshll.u32 %v4104_v49, 16  ;;  %v1639_v15 = vshll.u32 %v4102_v2, 16  ;;  %v1643_v16 = vshrl.u32 %v4102_v2, 16 }
 0x114   : > { %v1128_v31 = vpop.permute.xlu1 %1127  ;;  %v1619_v32 = vshrl.u32 %v4099_v5, 16  ;;  %v4108_v21 = vld [vmem:[%s4677_s19 + $0x7c] sm:$0xf]  ;;  %v1598_v41 = vor.u32 %v1597_v22, %v5296_v60 }
 0x115   : > { %1204 = vst.msk [vmem:[#allocation2 + $0xa0] sm:$0xf] %vm1183_vm8, %v1128_v31  ;;  %v1126_v35 = vpop.permute.xlu0 %1125  ;;  %v1615_v31 = vshll.u32 %v4099_v5, 16  ;;  %v1613_v5 = vrot.slane %v1612_v7, 4  ;;  %v1659_v24 = vrot.slane %v1657_v12, 5  ;;  %v5319_v28 = vrot.slane %v1639_v15, 5 }
 0x116   : > { %1203 = vst.msk [vmem:[#allocation2 + $0x98] sm:$0xf] %vm1183_vm8, %v1126_v35  ;;  %1340 = vrot.lane.b32.xlu2 %v4076_v40, %s4628_s22  ;;  %v4094_v35 = vld [vmem:[%s4677_s19 + $0x44] sm:$0x1]  ;;  %v1529_v40 = vshll.u32 %v4088_v10, 16  ;;  %v1621_v50 = vrot.slane %v1619_v32, 4 }
 0x117   : > { %v1577_v47 = vshll.u32 %v4094_v35, 16  ;;  %v5289_v48 = vrot.slane %v1615_v31, 5  ;;  %v4101_v31 = vld [vmem:[%s4677_s19 + $0x60] sm:$0xf]  ;;  %v1687_v35 = vshll.u32 %v4108_v21, 16 }
 0x118   : > { %v1142_v59 = vpop.permute.xlu2 %1141  ;;  %v1531_v55 = vrot.slane %v1529_v40, 5  ;;  %v1681_v40 = vshll.u32 %v4107_v27, 16  ;;  %v1633_v33 = vshll.u32 %v4101_v31, 16  ;;  %v4273_v27 = vld [vmem:[%s4677_s19 + $0x1c] sm:$0xf] }
 0x119   : > { %1211 = vst.msk [vmem:[#allocation2 + $0xd8] sm:$0xf] %vm1183_vm8, %v1142_v59  ;;  %v1589_v59 = vrot.slane %v1588_v45, 4  ;;  %v1622_v1 = vor.u32 %v1621_v50, %v5289_v48  ;;  %v1630_v45 = vshrl.u32 %v4101_v31, 16  ;;  %v1618_v52 = vsel %vm4688_vm2, %v1613_v5, %v5289_v48 }
 0x11a   : > { %1847 = vrot.lane.b32.xlu1 %v1484_v43, %s4629_s23  ;;  %v1556_v43 = vsel %vm4688_vm2, %v1551_v17, %v1555_v18  ;;  %v1532_v11 = vsel %vm4688_vm2, %v1527_v54, %v1531_v55  ;;  %v5339_v53 = vrot.slane %v1687_v35, 5  ;;  %v1759_v55 = vshll.u32 %v4117_v42, 16 }
 0x11b   : > { %1845 = vrot.lane.b32.xlu0 %v1474_v46, %s4629_s23  ;;  %v1574_v46 = vor.u32 %v1573_v30, %v5273_v9  ;;  %v1623_v18 = vrot.slane %v1622_v1, 4  ;;  %v4097_v30 = vld [vmem:[%s4677_s19 + $0x50] sm:$0x1]  ;;  %v3167_v31 = vrot.slane %v4273_v27, 5 }
 0x11c   : > { %v1134_v61 = vpop.permute.xlu1 %1133 }
 0x11d   : > { %1207 = vst.msk [vmem:[#allocation2 + $0xb8] sm:$0xf] %vm1183_vm8, %v1134_v61  ;;  %v1132_v0 = vpop.permute.xlu0 %1131  ;;  %v1575_v63 = vrot.slane %v1574_v46, 4  ;;  %v1628_v39 = vsel %vm4688_vm2, %v1623_v18, %v1627_v19 }
 0x11e   : > { %1206 = vst.msk [vmem:[#allocation2 + $0xb0] sm:$0xf] %vm1183_vm8, %v1132_v0  ;;  %1346 = vrot.lane.b32.xlu2 %v4079_v8, %s4628_s22  ;;  %v1579_v0 = vrot.slane %v1577_v47, 5  ;;  %v1654_v8 = vshrl.u32 %v4104_v49, 16  ;;  %v1663_v47 = vshll.u32 %v5315_v23, 16  ;;  %v1680_v49 = vrot.slane %v1678_v36, 4 }
 0x11f   : > { %v4112_v36 = vld [vmem:[%s4677_s19 + $0x8c] sm:$0x1] }
 0x120   : > { %v1148_v26 = vpop.permute.xlu2 %1147  ;;  %v1580_v17 = vsel %vm4688_vm2, %v1575_v63, %v1579_v0  ;;  %v1656_v20 = vrot.slane %v1654_v8, 4  ;;  %v1763_v63 = vshrl.u32 %v4117_v42, 16  ;;  %v5346_v0 = vrot.slane %v1663_v47, 5 }
 0x121   : > { %1214 = vst.msk [vmem:[#allocation2 + $0xf0] sm:$0xf] %vm1183_vm8, %v1148_v26  ;;  %v5350_v8 = vrot.slane %v1759_v55, 5 }
 0x122   : > { %1853 = vrot.lane.b32.xlu1 %v1522_v13, %s4629_s23  ;;  %v1564_v13 = vor.u32 %v1563_v57, %v1560_v56  ;;  %v1660_v46 = vor.u32 %v1659_v24, %v1656_v20  ;;  %v1683_v56 = vrot.slane %v1681_v40, 5  ;;  %v1599_v57 = vrot.slane %v1598_v41, 4  ;;  %v4106_v40 = vld [vmem:[%s4677_s19 + $0x74] sm:$0x1]  ;;  %v4274_v41 = vld [vmem:[%s4677_s19 + $0x20] sm:$0x1] }
 0x123   : > { %1851 = vrot.lane.b32.xlu0 %v1508_v14, %s4629_s23  ;;  %v1594_v14 = vsel %vm4688_vm2, %v1589_v59, %v5296_v60  ;;  %v4113_v60 = vld [vmem:[%s4677_s19 + $0x90] sm:$0xf] }
 0x124   : > { %v1140_v29 = vpop.permute.xlu1 %1139  ;;  %v1565_v26 = vrot.slane %v1564_v13, 4  ;;  %v1661_v48 = vrot.slane %v1660_v46, 4  ;;  %v1684_v13 = vor.u32 %v1683_v56, %v1680_v49  ;;  %v1729_v15 = vshll.u32 %v4113_v60, 16 }
 0x125   : > { %1210 = vst.msk [vmem:[#allocation2 + $0xd0] sm:$0xf] %vm1183_vm8, %v1140_v29  ;;  %v1138_v34 = vpop.permute.xlu0 %1137  ;;  %v1645_v29 = vrot.slane %v1643_v16, 4  ;;  %v4111_v16 = vld [vmem:[%s4677_s19 + $0x88] sm:$0xf]  ;;  %v3170_v46 = vrot.slane %v4274_v41, 5 }
 0x126   : > { %1209 = vst.msk [vmem:[#allocation2 + $0xc8] sm:$0xf] %vm1183_vm8, %v1138_v34  ;;  %1849 = vrot.lane.b32.xlu2 %v1498_v37, %s4629_s23  ;;  %v4103_v34 = vld [vmem:[%s4677_s19 + $0x68] sm:$0x1]  ;;  %v1691_v37 = vshrl.u32 %v4108_v21, 16  ;;  %v1666_v20 = vsel %vm4688_vm2, %v1661_v48, %v5346_v0  ;;  %v1673_v49 = vshll.u32 %v4106_v40, 16 }
 0x127   : > { %v1646_v50 = vor.u32 %v1645_v29, %v5319_v28  ;;  %v1649_v51 = vshll.u32 %v4103_v34, 16 }
 0x128   : > { %v1287_v61 = vpop.permute.xlu2 %1286  ;;  %v1693_v54 = vrot.slane %v1691_v37, 4  ;;  %v4110_v37 = vld [vmem:[%s4677_s19 + $0x84] sm:$0xf] }
 0x129   : > { %1382 = vst.msk [vmem:[#allocation2 + $0x8] sm:$0xf] %vm1380_vm9, %v1287_v61  ;;  %v1632_v61 = vrot.slane %v1630_v45, 4  ;;  %v1647_v1 = vrot.slane %v1646_v50, 4  ;;  %v1651_v2 = vrot.slane %v1649_v51, 5  ;;  %v1702_v51 = vshrl.u32 %v4110_v37, 16 }
 0x12a   : > { %1859 = vrot.lane.b32.xlu1 %v1556_v43, %s4629_s23  ;;  %v1570_v43 = vsel %vm4688_vm2, %v1565_v26, %v5273_v9  ;;  %v4109_v9 = vld [vmem:[%s4677_s19 + $0x80] sm:$0x1]  ;;  %v1694_v6 = vor.u32 %v1693_v54, %v5339_v53  ;;  %v1715_v26 = vshrl.u32 %v4111_v16, 16  ;;  %v4116_v50 = vld [vmem:[%s4677_s19 + $0x9c] sm:$0xf] }
 0x12b   : > { %1857 = vrot.lane.b32.xlu0 %v1546_v44, %s4629_s23  ;;  %v1601_v44 = vshll.u32 %v4097_v30, 16  ;;  %v1697_v7 = vshll.u32 %v4109_v9, 16  ;;  %v1652_v21 = vsel %vm4688_vm2, %v1647_v1, %v1651_v2  ;;  %v1731_v30 = vrot.slane %v1729_v15, 5 }
 0x12c   : > { %v1146_v62 = vpop.permute.xlu1 %1145  ;;  %v1695_v22 = vrot.slane %v1694_v6, 4  ;;  %v1753_v48 = vshll.u32 %v4116_v50, 16 }
 0x12d   : > { %1213 = vst.msk [vmem:[#allocation2 + $0xe8] sm:$0xf] %vm1183_vm8, %v1146_v62  ;;  %v1144_v3 = vpop.permute.xlu0 %1143  ;;  %v1603_v59 = vrot.slane %v1601_v44, 5  ;;  %v1635_v62 = vrot.slane %v1633_v33, 5  ;;  %v1699_v24 = vrot.slane %v1697_v7, 5  ;;  %v1717_v33 = vrot.slane %v1715_v26, 4 }
 0x12e   : > { %1212 = vst.msk [vmem:[#allocation2 + $0xe0] sm:$0xf] %vm1183_vm8, %v1144_v3  ;;  %1855 = vrot.lane.b32.xlu2 %v1532_v11, %s4629_s23  ;;  %v5352_v11 = vrot.slane %v1763_v63, 4  ;;  %v1721_v63 = vshll.u32 %v4112_v36, 16  ;;  %v4559_v7 = vld [vmem:[%s6426_s1 + $0x40] sm:$0xff] }
 0x12f   : > { %v1604_v18 = vsel %vm4688_vm2, %v1599_v57, %v1603_v59  ;;  %v1636_v19 = vor.u32 %v1635_v62, %v1632_v61  ;;  %v1700_v57 = vsel %vm4688_vm2, %v1695_v22, %v1699_v24  ;;  %3738 = vmatpush.bf16.msra.mxu1 %v4559_v7  ;;  %4568 = vmatpush.bf16.msra.mxu3 %v4559_v7  ;;  %v4152_v22 = vld [vmem:[%s4677_s19 + $0x6c] sm:$0xe]  ;;  %v5418_v24 = vld [vmem:[%s4677_s19 + $0x70] sm:$0xf]  ;;  %v4275_v36 = vld [vmem:[%s4677_s19 + $0x24] sm:$0xe] }
 0x130   : > { %v1293_v10 = vpop.permute.xlu2 %1292  ;;  %v1766_v5 = vor.u32 %v5352_v11, %v5350_v8  ;;  %v5465_v7 = vld [vmem:[%s4677_s19 + $0x10] sm:$0xf] }
 0x131   : > { %1385 = vst.msk [vmem:[#allocation2 + $0x20] sm:$0xf] %vm1380_vm9, %v1293_v10  ;;  %v1685_v10 = vrot.slane %v1684_v13, 4  ;;  %v1637_v34 = vrot.slane %v1636_v19, 4 }
 0x132   : > { %1865 = vrot.lane.b32.xlu1 %v1594_v14, %s4629_s23  ;;  %v1726_v14 = vshrl.u32 %v4113_v60, 16 }
 0x133   : > { %1863 = vrot.lane.b32.xlu0 %v1580_v17, %s4629_s23  ;;  %v1667_v17 = vshrl.u32 %v5315_v23, 16  ;;  %v1711_v23 = vshll.u32 %v4111_v16, 16  ;;  %v1642_v55 = vsel %vm4688_vm2, %v1637_v34, %v5319_v28  ;;  %v1690_v59 = vsel %vm4688_vm2, %v1685_v10, %v5339_v53 }
 0x134   : > { %v1285_v32 = vpop.permute.xlu1 %1284  ;;  %v1728_v29 = vrot.slane %v1726_v14, 4  ;;  %v1750_v28 = vshrl.u32 %v4116_v50, 16  ;;  %v1675_v53 = vrot.slane %v1673_v49, 5  ;;  %v1723_v14 = vrot.slane %v1721_v63, 5 }
 0x135   : > { %1381 = vst.msk [vmem:[#allocation2] sm:$0xf] %vm1380_vm9, %v1285_v32  ;;  %v1150_v38 = vpop.permute.xlu0 %1149  ;;  %v5371_v32 = vld [vmem:[%s4677_s19 + $0x94] sm:$0xf]  ;;  %v1669_v35 = vrot.slane %v1667_v17, 4  ;;  %v5380_v45 = vrot.slane %v1711_v23, 5 }
 0x136   : > { %1215 = vst.msk [vmem:[#allocation2 + $0xf8] sm:$0xf] %vm1183_vm8, %v1150_v38  ;;  %1861 = vrot.lane.b32.xlu2 %v1570_v43, %s4629_s23  ;;  %v4272_v38 = vld [vmem:[%s4677_s19 + $0x18] sm:$0xe]  ;;  %v3169_v43 = vrot.slane %v3167_v31, 4  ;;  %v1732_v60 = vor.u32 %v1731_v30, %v1728_v29  ;;  %v1735_v61 = vshll.u32 %v5371_v32, 16 }
 0x137   : > { %v4320_v42 = vrot.slane %v4272_v38, 9  ;;  %v1670_v9 = vor.u32 %v1669_v35, %v5346_v0  ;;  %v1718_v62 = vor.u32 %v1717_v33, %v5380_v45  ;;  %v1704_v0 = vrot.slane %v1702_v51, 4  ;;  %v4276_v29 = vld [vmem:[%s4677_s19 + $0x28] sm:$0xf]  ;;  %v4249_v33 = vld [vmem:[%s4677_s19 + $0x7c] sm:$0xf] }
 0x138   : > { %v1299_v3 = vpop.permute.xlu2 %1298  ;;  %v3171_v56 = vsel %vm4878_vm5, %v3169_v43, %v3170_v46  ;;  %v1752_v15 = vrot.slane %v1750_v28, 4  ;;  %v1755_v16 = vrot.slane %v1753_v48, 5  ;;  %v1739_v19 = vshrl.u32 %v5371_v32, 16  ;;  %v4277_v46 = vld [vmem:[%s4677_s19 + $0x2c] sm:$0x1] }
 0x139   : > { %1388 = vst.msk [vmem:[#allocation2 + $0x38] sm:$0xf] %vm1380_vm9, %v1299_v3  ;;  %v3168_v54 = vsel %vm4878_vm5, %v4320_v42, %v3167_v31  ;;  %v1671_v2 = vrot.slane %v1670_v9, 4  ;;  %v1733_v3 = vrot.slane %v1732_v60, 4  ;;  %v1719_v13 = vrot.slane %v1718_v62, 4 }
 0x13a   : > { %1871 = vrot.lane.b32.xlu1 %v1628_v39, %s4629_s23  ;;  %3309 = vst.msk [vmem:[#allocation2 + $0x4] sm:$0xf] %vm279_vm6, %v3168_v54  ;;  %v1756_v27 = vor.u32 %v1755_v16, %v1752_v15  ;;  %v1741_v32 = vrot.slane %v1739_v19, 4  ;;  %v3174_v34 = vrot.slane %v4276_v29, 5  ;;  %v4184_v35 = vrot.slane %v4152_v22, 9 }
 0x13b   : > { %1869 = vrot.lane.b32.xlu0 %v1618_v52, %s4629_s23  ;;  %v1705_v52 = vshll.u32 %v4110_v37, 16  ;;  %3310 = vst.msk [vmem:[#allocation2 + $0xc] sm:$0xf] %vm279_vm6, %v3171_v56  ;;  %v1724_v26 = vsel %vm4688_vm2, %v1719_v13, %v1723_v14  ;;  %v2128_v37 = vrot.slane %v5418_v24, 5  ;;  %v4321_v42 = vrot.slane %v4275_v36, 9 }
 0x13c   : > { %v1291_v4 = vpop.permute.xlu1 %1290  ;;  %v1757_v41 = vrot.slane %v1756_v27, 4  ;;  %v2762_v9 = vshrl.u32 %v4249_v33, 16  ;;  %v3177_v49 = vrot.slane %v4277_v46, 5  ;;  %v4279_v16 = vld [vmem:[%s4677_s19 + $0x34] sm:$0xf] }
 0x13d   : > { %1384 = vst.msk [vmem:[#allocation2 + $0x18] sm:$0xf] %vm1380_vm9, %v1291_v4  ;;  %v1289_v12 = vpop.permute.xlu0 %1288  ;;  %v1707_v1 = vrot.slane %v1705_v52, 5  ;;  %v1737_v4 = vrot.slane %v1735_v61, 5  ;;  %v3175_v51 = vsel %vm4878_vm5, %v4321_v42, %v3174_v34  ;;  %v3176_v52 = vrot.slane %v3174_v34, 4 }
 0x13e   : > { %1383 = vst.msk [vmem:[#allocation2 + $0x10] sm:$0xf] %vm1380_vm9, %v1289_v12  ;;  %1867 = vrot.lane.b32.xlu2 %v1604_v18, %s4629_s23  ;;  %v2129_v54 = vsel %vm4878_vm5, %v4184_v35, %v2128_v37  ;;  %v4248_v61 = vld [vmem:[%s4677_s19 + $0x78] sm:$0xf]  ;;  %v2764_v28 = vrot.slane %v2762_v9, 4  ;;  %v3181_v22 = vrot.slane %v4279_v16, 5 }
 0x13f   : > { %v1708_v18 = vor.u32 %v1707_v1, %v1704_v0  ;;  %3311 = vst.msk [vmem:[#allocation2 + $0x14] sm:$0xf] %vm279_vm6, %v3175_v51  ;;  %v4209_v0 = vld [vmem:[%s4677_s19 + $0x7c] sm:$0xf]  ;;  %v4250_v1 = vld [vmem:[%s4677_s19 + $0x80] sm:$0x1] }
 0x140   : > { %v1305_v39 = vpop.permute.xlu2 %1304  ;;  %v2768_v14 = vshll.u32 %v4250_v1, 16  ;;  %v4280_v35 = vld [vmem:[%s4677_s19 + $0x38] sm:$0x1]  ;;  %v3183_v36 = vrot.slane %v3181_v22, 4 }
 0x141   : > { %1391 = vst.msk [vmem:[#allocation2 + $0x50] sm:$0xf] %vm1380_vm9, %v1305_v39  ;;  %v4519_v23 = vld [vmem:[#allocation2 + $0x4] sm:$0xf]  ;;  %v1709_v30 = vrot.slane %v1708_v18, 4 }
 0x142   : > { %1877 = vrot.lane.b32.xlu1 %v1666_v20, %s4629_s23  ;;  %v1676_v20 = vsel %vm4688_vm2, %v1671_v2, %v1675_v53  ;;  %v4340_v10 = vld [vmem:[#allocation2 + $0x8] sm:$0xf0]  ;;  %v4115_v39 = vld [vmem:[%s4677_s19 + $0x98] sm:$0x1] }
 0x143   : > { %1875 = vrot.lane.b32.xlu0 %v1652_v21, %s4629_s23  ;;  %v1738_v21 = vsel %vm4688_vm2, %v1733_v3, %v1737_v4  ;;  %v4343_v31 = vor.u32 %v4519_v23, %v4340_v10  ;;  %v1745_v50 = vshll.u32 %v4115_v39, 16  ;;  %v4208_v2 = vld [vmem:[%s4677_s19 + $0x78] sm:$0xf]  ;;  %v2749_v3 = vshrl.u32 %v4248_v61, 16  ;;  %v4278_v10 = vld [vmem:[%s4677_s19 + $0x30] sm:$0xe] }
 0x144   : > { %v1297_v44 = vpop.permute.xlu1 %1296  ;;  %v2072_v23 = vrot.slane %v5465_v7, 5 }
 0x145   : > { %1387 = vst.msk [vmem:[#allocation2 + $0x30] sm:$0xf] %vm1380_vm9, %v1297_v44  ;;  %v1295_v47 = vpop.permute.xlu0 %1294  ;;  %4500 = vmatmul.msk.bf16.vlgmr.msra.gmra.mxu1 %vm3593_vm10, %v4343_v31  ;;  %v1714_v44 = vsel %vm4688_vm2, %v1709_v30, %v5380_v45  ;;  %v1762_v45 = vsel %vm4688_vm2, %v1757_v41, %v5350_v8  ;;  %v2751_v19 = vrot.slane %v2749_v3, 4  ;;  %v2770_v31 = vrot.slane %v2768_v14, 5 }
 0x146   : > { %1386 = vst.msk [vmem:[#allocation2 + $0x28] sm:$0xf] %vm1380_vm9, %v1295_v47  ;;  %1873 = vrot.lane.b32.xlu2 %v1642_v55, %s4629_s23  ;;  %v1742_v47 = vor.u32 %v1741_v32, %v1737_v4  ;;  %v2758_v55 = vshll.u32 %v4249_v33, 16  ;;  %v2752_v4 = vshll.u32 %v4248_v61, 16  ;;  %v4521_v15 = vld [vmem:[#allocation2 + $0x14] sm:$0xf] }
 0x147   : > { %v4225_v32 = vld [vmem:[%s4677_s19 + $0x1c] sm:$0xf]  ;;  %v3184_v33 = vrot.slane %v4280_v35, 5  ;;  %v4192_v61 = vld [vmem:[%s4677_s19 + $0x18] sm:$0xf]  ;;  %v2074_v3 = vrot.slane %v2072_v23, 4 }
 0x148   : > { %v1311_v6 = vpop.permute.xlu2 %1310  ;;  %v1743_v56 = vrot.slane %v1742_v47, 4  ;;  %v5454_v63 = vrot.slane %v2758_v55, 5  ;;  %v2566_v41 = vshll.u32 %v4225_v32, 16  ;;  %v2570_v42 = vshrl.u32 %v4225_v32, 16  ;;  %v4226_v55 = vld [vmem:[%s4677_s19 + $0x20] sm:$0x1] }
 0x149   : > { %1394 = vst.msk [vmem:[#allocation2 + $0x68] sm:$0xf] %vm1380_vm9, %v1311_v6  ;;  %v4128_v6 = vld [vmem:[%s4677_s19 + $0xc] sm:$0xe]  ;;  %v3185_v47 = vsel %vm4878_vm5, %v3183_v36, %v3184_v33  ;;  %v4210_v33 = vld [vmem:[%s4677_s19 + $0x84] sm:$0xf] }
 0x14a   : > { %1883 = vrot.lane.b32.xlu1 %v1700_v57, %s4629_s23  ;;  %v1747_v57 = vrot.slane %v1745_v50, 5  ;;  %v2765_v13 = vor.u32 %v2764_v28, %v5454_v63  ;;  %v4176_v24 = vrot.slane %v4128_v6, 9  ;;  %v5495_v51 = vrot.slane %v2566_v41, 5  ;;  %3314 = vst.msk [vmem:[#allocation2 + $0x2c] sm:$0xf] %vm279_vm6, %v3185_v47 }
 0x14b   : > { %1881 = vrot.lane.b32.xlu0 %v1690_v59, %s4629_s23  ;;  %v3178_v59 = vsel %vm4878_vm5, %v3176_v52, %v3177_v49  ;;  %v2572_v52 = vrot.slane %v2570_v42, 4  ;;  %v4193_v49 = vld [vmem:[%s4677_s19 + $0x1c] sm:$0xf]  ;;  %v2576_v28 = vshll.u32 %v4226_v55, 16 }
 0x14c   : > { %v1303_v12 = vpop.permute.xlu1 %1302  ;;  %3312 = vst.msk [vmem:[#allocation2 + $0x1c] sm:$0xf] %vm279_vm6, %v3178_v59  ;;  %v1748_v53 = vsel %vm4688_vm2, %v1743_v56, %v1747_v57  ;;  %v2766_v30 = vrot.slane %v2765_v13, 4  ;;  %v4155_v56 = vld [vmem:[%s4677_s19 + $0x78] sm:$0xe] }
 0x14d   : > { %1390 = vst.msk [vmem:[#allocation2 + $0x48] sm:$0xf] %vm1380_vm9, %v1303_v12  ;;  %v1301_v17 = vpop.permute.xlu0 %1300  ;;  %v4154_v12 = vld [vmem:[%s4677_s19 + $0x74] sm:$0x1] }
 0x14e   : > { %1389 = vst.msk [vmem:[#allocation2 + $0x40] sm:$0xf] %vm1380_vm9, %v1301_v17  ;;  %1879 = vrot.lane.b32.xlu2 %v1676_v20, %s4629_s23  ;;  %v2130_v17 = vrot.slane %v2128_v37, 4  ;;  %v2131_v18 = vrot.slane %v4154_v12, 5  ;;  %v2754_v20 = vrot.slane %v2752_v4, 5  ;;  %v4322_v37 = vrot.slane %v4278_v10, 9 }
 0x150   : > { %v1317_v38 = vpop.permute.xlu2 %1316  ;;  %v2755_v39 = vor.u32 %v2754_v20, %v2751_v19  ;;  %v4252_v20 = vld [vmem:[%s4677_s19 + $0x88] sm:$0xf] }
 0x151   : > { %1397 = vst.msk [vmem:[#allocation2 + $0x80] sm:$0xf] %vm1380_vm9, %v1317_v38  ;;  %v2132_v38 = vsel %vm4878_vm5, %v2130_v17, %v2131_v18  ;;  %v4356_v7 = vld [vmem:[#allocation2 + $0x28] sm:$0xf0]  ;;  %v4281_v18 = vld [vmem:[%s4677_s19 + $0x3c] sm:$0xe] }
 0x152   : > { %1889 = vrot.lane.b32.xlu1 %v1738_v21, %s4629_s23  ;;  %v2756_v46 = vrot.slane %v2755_v39, 4  ;;  %v4251_v39 = vld [vmem:[%s4677_s19 + $0x84] sm:$0xf] }
 0x153   : > { %1887 = vrot.lane.b32.xlu0 %v1724_v26, %s4629_s23  ;;  %v4348_v21 = vld [vmem:[#allocation2 + $0x18] sm:$0xf0]  ;;  %v2773_v47 = vshrl.u32 %v4251_v39, 16 }
 0x154   : > { %v1309_v40 = vpop.permute.xlu1 %1308  ;;  %v4351_v27 = vor.u32 %v4521_v15, %v4348_v21  ;;  %v2761_v57 = vsel %vm4688_vm2, %v2756_v46, %v5454_v63  ;;  %v2578_v15 = vrot.slane %v2576_v28, 5 }
 0x155   : > { %1393 = vst.msk [vmem:[#allocation2 + $0x60] sm:$0xf] %vm1380_vm9, %v1309_v40  ;;  %v1307_v43 = vpop.permute.xlu0 %1306  ;;  %v2073_v40 = vsel %vm4878_vm5, %v4176_v24, %v2072_v23  ;;  %v4323_v24 = vrot.slane %v4281_v18, 9 }
 0x156   : > { %1392 = vst.msk [vmem:[#allocation2 + $0x58] sm:$0xf] %vm1380_vm9, %v1307_v43  ;;  %1885 = vrot.lane.b32.xlu2 %v1714_v44, %s4629_s23  ;;  %4501 = vmatmul.msk.bf16.gmra.mxu1 %vm3593_vm10, %v4351_v27  ;;  %v2771_v43 = vsel %vm4688_vm2, %v2766_v30, %v2770_v31  ;;  %v3182_v44 = vsel %vm4878_vm5, %v4322_v37, %v3181_v22  ;;  %v4283_v22 = vld [vmem:[%s4677_s19 + $0x44] sm:$0x1]  ;;  %v2782_v30 = vshll.u32 %v4252_v20, 16  ;;  %v2786_v31 = vshrl.u32 %v4252_v20, 16 }
 0x157   : > { %3313 = vst.msk [vmem:[#allocation2 + $0x24] sm:$0xf] %vm279_vm6, %v3182_v44  ;;  %v4253_v44 = vld [vmem:[%s4677_s19 + $0x8c] sm:$0x1] }
 0x158   : > { %v1323_v60 = vpop.permute.xlu2 %1322  ;;  %v2788_v41 = vrot.slane %v2786_v31, 4 }
 0x159   : > { %1400 = vst.msk [vmem:[#allocation2 + $0x98] sm:$0xf] %vm1380_vm9, %v1323_v60 }
 0x15a   : > { %2214 = vrot.lane.b32.xlu1 %v2129_v54, %s4630_s26  ;;  %v4224_v54 = vld [vmem:[%s4677_s19 + $0x18] sm:$0xf] }
 0x15b   : > { %1893 = vrot.lane.b32.xlu0 %v1762_v45, %s4629_s23  ;;  %v2557_v59 = vshrl.u32 %v4224_v54, 16  ;;  %v2560_v60 = vshll.u32 %v4224_v54, 16  ;;  %v5555_v54 = vld [vmem:[%s4677_s19 + $0x1c] sm:$0xf] }
 0x15c   : > { %v1315_v62 = vpop.permute.xlu1 %1314 }
 0x15d   : > { %1396 = vst.msk [vmem:[#allocation2 + $0x78] sm:$0xf] %vm1380_vm9, %v1315_v62  ;;  %v1313_v48 = vpop.permute.xlu0 %1312  ;;  %v2573_v62 = vor.u32 %v2572_v52, %v5495_v51  ;;  %v2559_v4 = vrot.slane %v2557_v59, 4  ;;  %v2562_v6 = vrot.slane %v2560_v60, 5  ;;  %v4131_v52 = vld [vmem:[%s4677_s19 + $0x18] sm:$0xe] }
 0x15e   : > { %1395 = vst.msk [vmem:[#allocation2 + $0x70] sm:$0xf] %vm1380_vm9, %v1313_v48  ;;  %1891 = vrot.lane.b32.xlu2 %v1748_v53, %s4629_s23  ;;  %v4130_v48 = vld [vmem:[%s4677_s19 + $0x14] sm:$0x1]  ;;  %v4523_v1 = vld [vmem:[#allocation2 + $0x24] sm:$0xf] }
 0x15f   : > { %v4185_v53 = vrot.slane %v4155_v56, 9  ;;  %v2075_v63 = vrot.slane %v4130_v48, 5  ;;  %v2574_v14 = vrot.slane %v2573_v62, 4  ;;  %v4359_v17 = vor.u32 %v4523_v1, %v4356_v7  ;;  %v4285_v56 = vld [vmem:[%s4677_s19 + $0x4c] sm:$0xf] }
 0x160   : > { %v1329_v26 = vpop.permute.xlu2 %1328  ;;  %v3195_v62 = vrot.slane %v4285_v56, 5  ;;  %v4177_v28 = vrot.slane %v4131_v52, 9  ;;  %v2079_v48 = vrot.slane %v5555_v54, 5  ;;  %v4286_v7 = vld [vmem:[%s4677_s19 + $0x50] sm:$0x1] }
 0x161   : > { %1403 = vst.msk [vmem:[#allocation2 + $0xb0] sm:$0xf] %vm1380_vm9, %v1329_v26  ;;  %v2076_v23 = vsel %vm4878_vm5, %v2074_v3, %v2075_v63  ;;  %v2563_v26 = vor.u32 %v2562_v6, %v2559_v4  ;;  %v4228_v4 = vld [vmem:[%s4677_s19 + $0x28] sm:$0xf] }
 0x162   : > { %2413 = vrot.lane.b32.xlu1 %v4209_v0, %s4631_s27  ;;  %v5512_v0 = vld [vmem:[%s4677_s19 + $0x7c] sm:$0xf]  ;;  %v2594_v18 = vshrl.u32 %v4228_v4, 16 }
 0x163   : > { %2411 = vrot.lane.b32.xlu0 %v4208_v2, %s4631_s27  ;;  %v4282_v2 = vld [vmem:[%s4677_s19 + $0x40] sm:$0xf]  ;;  %v2135_v13 = vrot.slane %v5512_v0, 5  ;;  %v2564_v35 = vrot.slane %v2563_v26, 4 }
 0x164   : > { %v1321_v29 = vpop.permute.xlu1 %1320  ;;  %v3188_v12 = vrot.slane %v4282_v2, 5  ;;  %v4284_v2 = vld [vmem:[%s4677_s19 + $0x48] sm:$0xe] }
 0x165   : > { %1399 = vst.msk [vmem:[#allocation2 + $0x90] sm:$0xf] %vm1380_vm9, %v1321_v29  ;;  %v1319_v34 = vpop.permute.xlu0 %1318  ;;  %v2136_v10 = vsel %vm4878_vm5, %v4185_v53, %v2135_v13  ;;  %v2579_v29 = vsel %vm4688_vm2, %v2574_v14, %v2578_v15  ;;  %v2569_v46 = vsel %vm4688_vm2, %v2564_v35, %v5495_v51  ;;  %v2775_v51 = vrot.slane %v2773_v47, 4 }
 0x166   : > { %1398 = vst.msk [vmem:[#allocation2 + $0x88] sm:$0xf] %vm1380_vm9, %v1319_v34  ;;  %2216 = vrot.lane.b32.xlu2 %v2132_v38, %s4630_s26  ;;  %4502 = vmatmul.msk.bf16.gmra.mxu1 %vm3593_vm10, %v4359_v17  ;;  %v3190_v27 = vrot.slane %v3188_v12, 4  ;;  %v3189_v32 = vsel %vm4878_vm5, %v4323_v24, %v3188_v12  ;;  %v3191_v34 = vrot.slane %v4283_v22, 5  ;;  %v4324_v12 = vrot.slane %v4284_v2, 9 }
 0x167   : > { %3315 = vst.msk [vmem:[#allocation2 + $0x34] sm:$0xf] %vm279_vm6, %v3189_v32  ;;  %v3197_v15 = vrot.slane %v3195_v62, 4  ;;  %v2590_v17 = vshll.u32 %v4228_v4, 16  ;;  %v4195_v32 = vld [vmem:[%s4677_s19 + $0x28] sm:$0xf] }
 0x168   : > { %v1335_v50 = vpop.permute.xlu2 %1334  ;;  %v3192_v37 = vsel %vm4878_vm5, %v3190_v27, %v3191_v34  ;;  %v3196_v20 = vsel %vm4878_vm5, %v4324_v12, %v3195_v62  ;;  %v2596_v27 = vrot.slane %v2594_v18, 4  ;;  %v4158_v34 = vld [vmem:[%s4677_s19 + $0x84] sm:$0xe]  ;;  %v2081_v47 = vrot.slane %v2079_v48, 4  ;;  %v4289_v62 = vld [vmem:[%s4677_s19 + $0x5c] sm:$0x1] }
 0x169   : > { %1406 = vst.msk [vmem:[#allocation2 + $0xc8] sm:$0xf] %vm1380_vm9, %v1335_v50  ;;  %v2776_v50 = vshll.u32 %v4251_v39, 16  ;;  %v5585_v26 = vrot.slane %v2590_v17, 5  ;;  %v4194_v39 = vld [vmem:[%s4677_s19 + $0x24] sm:$0xf] }
 0x16a   : > { %2182 = vrot.lane.b32.xlu1 %v2073_v40, %s4630_s26  ;;  %3316 = vst.msk [vmem:[#allocation2 + $0x3c] sm:$0xf] %vm279_vm6, %v3192_v37  ;;  %v5543_v40 = vrot.slane %v2782_v30, 5  ;;  %v4229_v30 = vld [vmem:[%s4677_s19 + $0x2c] sm:$0x1] }
 0x16b   : > { %2974 = vrot.lane.b32.xlu0 %v2771_v43, %s4632_s28  ;;  %v4211_v43 = vld [vmem:[%s4677_s19 + $0x88] sm:$0xf]  ;;  %v2778_v60 = vrot.slane %v2776_v50, 5  ;;  %3317 = vst.msk [vmem:[#allocation2 + $0x44] sm:$0xf] %vm279_vm6, %v3196_v20 }
 0x16c   : > { %v1327_v45 = vpop.permute.xlu1 %1326  ;;  %v2789_v55 = vor.u32 %v2788_v41, %v5543_v40  ;;  %v2600_v41 = vshll.u32 %v4229_v30, 16  ;;  %v4256_v20 = vld [vmem:[%s4677_s19 + $0x98] sm:$0x1] }
 0x16d   : > { %1402 = vst.msk [vmem:[#allocation2 + $0xa8] sm:$0xf] %vm1380_vm9, %v1327_v45  ;;  %v1325_v9 = vpop.permute.xlu0 %1324  ;;  %v4157_v45 = vld [vmem:[%s4677_s19 + $0x80] sm:$0x1]  ;;  %v2779_v14 = vor.u32 %v2778_v60, %v2775_v51  ;;  %v4255_v60 = vld [vmem:[%s4677_s19 + $0x94] sm:$0xf] }
 0x16e   : > { %1401 = vst.msk [vmem:[#allocation2 + $0xa0] sm:$0xf] %vm1380_vm9, %v1325_v9  ;;  %2972 = vrot.lane.b32.xlu2 %v2761_v57, %s4632_s28  ;;  %v2792_v9 = vshll.u32 %v4253_v44, 16  ;;  %v2137_v57 = vrot.slane %v2135_v13, 4  ;;  %v2138_v59 = vrot.slane %v4157_v45, 5  ;;  %v2790_v3 = vrot.slane %v2789_v55, 4 }
 0x16f   : > { %v2780_v22 = vrot.slane %v2779_v14, 4  ;;  %v4254_v14 = vld [vmem:[%s4677_s19 + $0x90] sm:$0xf] }
 0x170   : > { %v1341_v16 = vpop.permute.xlu2 %1340  ;;  %v2794_v63 = vrot.slane %v2792_v9, 5  ;;  %v2139_v13 = vsel %vm4878_vm5, %v2137_v57, %v2138_v59  ;;  %v4287_v59 = vld [vmem:[%s4677_s19 + $0x54] sm:$0xe] }
 0x171   : > { %1409 = vst.msk [vmem:[#allocation2 + $0xe0] sm:$0xf] %vm1380_vm9, %v1341_v16  ;;  %v2080_v16 = vsel %vm4878_vm5, %v4177_v28, %v2079_v48  ;;  %v2785_v35 = vsel %vm4688_vm2, %v2780_v22, %v5543_v40  ;;  %v4325_v28 = vrot.slane %v4287_v59, 9 }
 0x172   : > { %2381 = vrot.lane.b32.xlu1 %v4193_v49, %s4631_s27  ;;  %v4525_v49 = vld [vmem:[#allocation2 + $0x34] sm:$0xf]  ;;  %v4527_v44 = vld [vmem:[#allocation2 + $0x44] sm:$0xf] }
 0x173   : > { %2379 = vrot.lane.b32.xlu0 %v4192_v61, %s4631_s27  ;;  %v4364_v61 = vld [vmem:[#allocation2 + $0x38] sm:$0xf0] }
 0x174   : > { %v1333_v19 = vpop.permute.xlu1 %1332  ;;  %v4367_v1 = vor.u32 %v4525_v49, %v4364_v61  ;;  %v2602_v49 = vrot.slane %v2600_v41, 5 }
 0x175   : > { %1405 = vst.msk [vmem:[#allocation2 + $0xc0] sm:$0xf] %vm1380_vm9, %v1333_v19  ;;  %v1331_v21 = vpop.permute.xlu0 %1330  ;;  %v2795_v19 = vsel %vm4688_vm2, %v2790_v3, %v2794_v63  ;;  %v2806_v3 = vshll.u32 %v4255_v60, 16  ;;  %v2810_v63 = vshrl.u32 %v4255_v60, 16 }
 0x176   : > { %1404 = vst.msk [vmem:[#allocation2 + $0xb8] sm:$0xf] %vm1380_vm9, %v1331_v21  ;;  %2184 = vrot.lane.b32.xlu2 %v2076_v23, %s4630_s26  ;;  %4503 = vmatmul.msk.bf16.gmra.mxu1 %vm3593_vm10, %v4367_v1  ;;  %v3198_v21 = vrot.slane %v4286_v7, 5 }
 0x177   : > { %v2812_v17 = vrot.slane %v2810_v63, 4 }
 0x178   : > { %v1347_v38 = vpop.permute.xlu2 %1346  ;;  %v3199_v24 = vsel %vm4878_vm5, %v3197_v15, %v3198_v21  ;;  %v4212_v21 = vld [vmem:[%s4677_s19 + $0x90] sm:$0xf] }
 0x179   : > { %1412 = vst.msk [vmem:[#allocation2 + $0xf8] sm:$0xf] %vm1380_vm9, %v1347_v38 }
 0x17a   : > { %2218 = vrot.lane.b32.xlu1 %v2136_v10, %s4630_s26  ;;  %v4227_v10 = vld [vmem:[%s4677_s19 + $0x24] sm:$0xf]  ;;  %3318 = vst.msk [vmem:[#allocation2 + $0x4c] sm:$0xf] %vm279_vm6, %v3199_v24  ;;  %v2797_v24 = vshrl.u32 %v4254_v14, 16 }
 0x17b   : > { %2942 = vrot.lane.b32.xlu0 %v2579_v29, %s4632_s28  ;;  %v2581_v37 = vshrl.u32 %v4227_v10, 16  ;;  %v2584_v38 = vshll.u32 %v4227_v10, 16  ;;  %v5645_v10 = vld [vmem:[%s4677_s19 + $0x28] sm:$0xf] }
 0x17c   : > { %v1339_v36 = vpop.permute.xlu1 %1338 }
 0x17d   : > { %1408 = vst.msk [vmem:[#allocation2 + $0xd8] sm:$0xf] %vm1380_vm9, %v1339_v36  ;;  %v1337_v42 = vpop.permute.xlu0 %1336  ;;  %v2597_v36 = vor.u32 %v2596_v27, %v5585_v26  ;;  %v2583_v50 = vrot.slane %v2581_v37, 4  ;;  %v2586_v52 = vrot.slane %v2584_v38, 5  ;;  %v4134_v27 = vld [vmem:[%s4677_s19 + $0x24] sm:$0xe] }
 0x17e   : > { %1407 = vst.msk [vmem:[#allocation2 + $0xd0] sm:$0xf] %vm1380_vm9, %v1337_v42  ;;  %2940 = vrot.lane.b32.xlu2 %v2569_v46, %s4632_s28  ;;  %v4133_v42 = vld [vmem:[%s4677_s19 + $0x20] sm:$0x1]  ;;  %v4186_v46 = vrot.slane %v4158_v34, 9  ;;  %v4178_v41 = vrot.slane %v4134_v27, 9 }
 0x17f   : > { %v2082_v40 = vrot.slane %v4133_v42, 5  ;;  %v2598_v9 = vrot.slane %v2597_v36, 4  ;;  %v4291_v34 = vld [vmem:[%s4677_s19 + $0x64] sm:$0xf]  ;;  %v2086_v42 = vrot.slane %v5645_v10, 5 }
 0x180   : > { %v1850_v0 = vpop.permute.xlu2 %1849  ;;  %v3209_v36 = vrot.slane %v4291_v34, 5 }
 0x181   : > { %1944 = vst.msk [vmem:[#allocation2 + $0x10] sm:$0xf] %vm1941_vm11, %v1850_v0  ;;  %v4372_v54 = vld [vmem:[#allocation2 + $0x48] sm:$0xf0]  ;;  %v2083_v48 = vsel %vm4878_vm5, %v2081_v47, %v2082_v40  ;;  %v2587_v0 = vor.u32 %v2586_v52, %v2583_v50  ;;  %v4231_v50 = vld [vmem:[%s4677_s19 + $0x34] sm:$0xf] }
 0x182   : > { %2417 = vrot.lane.b32.xlu1 %v4211_v43, %s4631_s27  ;;  %v5602_v43 = vld [vmem:[%s4677_s19 + $0x88] sm:$0xf]  ;;  %v4375_v57 = vor.u32 %v4527_v44, %v4372_v54  ;;  %v2614_v60 = vshll.u32 %v4231_v50, 16 }
 0x183   : > { %2415 = vrot.lane.b32.xlu0 %v4210_v33, %s4631_s27  ;;  %v4288_v33 = vld [vmem:[%s4677_s19 + $0x58] sm:$0xf]  ;;  %v2142_v55 = vrot.slane %v5602_v43, 5  ;;  %v2588_v7 = vrot.slane %v2587_v0, 4  ;;  %v4292_v54 = vld [vmem:[%s4677_s19 + $0x68] sm:$0x1] }
 0x184   : > { %v1345_v53 = vpop.permute.xlu1 %1344  ;;  %v3202_v45 = vrot.slane %v4288_v33, 5  ;;  %v4290_v33 = vld [vmem:[%s4677_s19 + $0x60] sm:$0xe] }
 0x185   : > { %1411 = vst.msk [vmem:[#allocation2 + $0xf0] sm:$0xf] %vm1380_vm9, %v1345_v53  ;;  %v1343_v6 = vpop.permute.xlu0 %1342  ;;  %v2143_v2 = vsel %vm4878_vm5, %v4186_v46, %v2142_v55  ;;  %v2603_v53 = vsel %vm4688_vm2, %v2598_v9, %v2602_v49  ;;  %v2593_v22 = vsel %vm4688_vm2, %v2588_v7, %v5585_v26  ;;  %v2799_v26 = vrot.slane %v2797_v24, 4  ;;  %v4558_v49 = vld [vmem:[%s6426_s1 + $0x38] sm:$0xff]  ;;  %v4136_v7 = vld [vmem:[%s4677_s19 + $0x2c] sm:$0x1] }
 0x186   : > { %1410 = vst.msk [vmem:[#allocation2 + $0xe8] sm:$0xf] %vm1380_vm9, %v1343_v6  ;;  %2220 = vrot.lane.b32.xlu2 %v2139_v13, %s4630_s26  ;;  %4504 = vmatmul.msk.bf16.gmra.mxu1 %vm3593_vm10, %v4375_v57  ;;  %v3204_v1 = vrot.slane %v3202_v45, 4  ;;  %v3203_v4 = vsel %vm4878_vm5, %v4325_v28, %v3202_v45  ;;  %v3205_v6 = vrot.slane %v4289_v62, 5  ;;  %v4326_v45 = vrot.slane %v4290_v33, 9 }
 0x187   : > { %3319 = vst.msk [vmem:[#allocation2 + $0x54] sm:$0xf] %vm279_vm6, %v3203_v4  ;;  %v2087_v57 = vsel %vm4878_vm5, %v4178_v41, %v2086_v42  ;;  %4560 = vmatpush.bf16.msra.mxu2 %v4558_v49  ;;  %v3212_v62 = vrot.slane %v4292_v54, 5  ;;  %3642 = vmatpush.bf16.msra.mxu0 %v4558_v49 }
 0x188   : > { %v1856_v23 = vpop.permute.xlu2 %1855  ;;  %v3206_v12 = vsel %vm4878_vm5, %v3204_v1, %v3205_v6  ;;  %v3210_v59 = vsel %vm4878_vm5, %v4326_v45, %v3209_v36  ;;  %v4230_v1 = vld [vmem:[%s4677_s19 + $0x30] sm:$0xf]  ;;  %v4232_v6 = vld [vmem:[%s4677_s19 + $0x38] sm:$0x1] }
 0x189   : > { %1947 = vst.msk [vmem:[#allocation2 + $0x28] sm:$0xf] %vm1941_vm11, %v1856_v23  ;;  %v2800_v23 = vshll.u32 %v4254_v14, 16  ;;  %v2608_v14 = vshll.u32 %v4230_v1, 16 }
 0x18a   : > { %2186 = vrot.lane.b32.xlu1 %v2080_v16, %s4630_s26  ;;  %3320 = vst.msk [vmem:[#allocation2 + $0x5c] sm:$0xf] %vm279_vm6, %v3206_v12  ;;  %v5633_v16 = vrot.slane %v2806_v3, 5  ;;  %v5684_v3 = vrot.slane %v2614_v60, 5  ;;  %v4257_v60 = vld [vmem:[%s4677_s19 + $0x9c] sm:$0xf] }
 0x18b   : > { %2978 = vrot.lane.b32.xlu0 %v2795_v19, %s4632_s28  ;;  %v4213_v19 = vld [vmem:[%s4677_s19 + $0x94] sm:$0xf]  ;;  %v2802_v38 = vrot.slane %v2800_v23, 5  ;;  %3321 = vst.msk [vmem:[#allocation2 + $0x64] sm:$0xf] %vm279_vm6, %v3210_v59  ;;  %v2089_v23 = vrot.slane %v4136_v7, 5 }
 0x18c   : > { %v1848_v29 = vpop.permute.xlu1 %1847  ;;  %v2813_v30 = vor.u32 %v2812_v17, %v5633_v16  ;;  %v4197_v17 = vld [vmem:[%s4677_s19 + $0x34] sm:$0xf]  ;;  %v2610_v10 = vrot.slane %v2608_v14, 5  ;;  %v4552_v7 = vld [vmem:[%s6426_s1 + $0x8] sm:$0xff]  ;;  %v4163_v14 = vld [vmem:[%s4677_s19 + $0x98] sm:$0x1] }
 0x18d   : > { %1943 = vst.msk [vmem:[#allocation2 + $0x8] sm:$0xf] %vm1941_vm11, %v1848_v29  ;;  %v1846_v31 = vpop.permute.xlu0 %1845  ;;  %v4160_v29 = vld [vmem:[%s4677_s19 + $0x8c] sm:$0x1]  ;;  %v2803_v9 = vor.u32 %v2802_v38, %v2799_v26  ;;  %v4555_v26 = vld [vmem:[%s6426_s1 + $0x20] sm:$0xff] }
 0x18e   : > { %1942 = vst.msk [vmem:[#allocation2] sm:$0xf] %vm1941_vm11, %v1846_v31  ;;  %2976 = vrot.lane.b32.xlu2 %v2785_v35, %s4632_s28  ;;  %v2816_v31 = vshll.u32 %v4256_v20, 16  ;;  %v2144_v35 = vrot.slane %v2142_v55, 4  ;;  %v2145_v37 = vrot.slane %v4160_v29, 5  ;;  %v2814_v47 = vrot.slane %v2813_v30, 4 }
 0x18f   : > { %v2804_v28 = vrot.slane %v2803_v9, 4  ;;  %v5700_v20 = vld [vmem:[%s4677_s19 + $0x94] sm:$0xf]  ;;  %v4294_v30 = vld [vmem:[%s4677_s19 + $0x70] sm:$0xf] }
 0x190   : > { %v1862_v56 = vpop.permute.xlu2 %1861  ;;  %v2818_v40 = vrot.slane %v2816_v31, 5  ;;  %v2146_v55 = vsel %vm4878_vm5, %v2144_v35, %v2145_v37  ;;  %v4258_v35 = vld [vmem:[%s4677_s19 + $0xa0] sm:$0xf] }
 0x191   : > { %1950 = vst.msk [vmem:[#allocation2 + $0x40] sm:$0xf] %vm1941_vm11, %v1862_v56  ;;  %v3211_v56 = vrot.slane %v3209_v36, 4  ;;  %v2809_v12 = vsel %vm4688_vm2, %v2804_v28, %v5633_v16  ;;  %v2088_v16 = vrot.slane %v2086_v42, 4  ;;  %v4293_v42 = vld [vmem:[%s4677_s19 + $0x6c] sm:$0xe] }
 0x192   : > { %2385 = vrot.lane.b32.xlu1 %v4195_v32, %s4631_s27  ;;  %v4529_v32 = vld [vmem:[#allocation2 + $0x54] sm:$0xf]  ;;  %v4531_v24 = vld [vmem:[#allocation2 + $0x64] sm:$0xf]  ;;  %v2830_v33 = vshll.u32 %v4258_v35, 16  ;;  %v4327_v45 = vrot.slane %v4293_v42, 9 }
 0x193   : > { %2383 = vrot.lane.b32.xlu0 %v4194_v39, %s4631_s27  ;;  %v4380_v39 = vld [vmem:[#allocation2 + $0x58] sm:$0xf0]  ;;  %v4259_v28 = vld [vmem:[%s4677_s19 + $0xa4] sm:$0x1] }
 0x194   : > { %v1854_v51 = vpop.permute.xlu1 %1853  ;;  %v4383_v44 = vor.u32 %v4529_v32, %v4380_v39  ;;  %v2149_v32 = vrot.slane %v5700_v20, 5  ;;  %v5731_v49 = vrot.slane %v2830_v33, 5 }
 0x195   : > { %1946 = vst.msk [vmem:[#allocation2 + $0x20] sm:$0xf] %vm1941_vm11, %v1854_v51  ;;  %v1852_v61 = vpop.permute.xlu0 %1851  ;;  %v2819_v51 = vsel %vm4688_vm2, %v2814_v47, %v2818_v40  ;;  %v2834_v40 = vshrl.u32 %v4258_v35, 16 }
 0x196   : > { %1945 = vst.msk [vmem:[#allocation2 + $0x18] sm:$0xf] %vm1941_vm11, %v1852_v61  ;;  %2188 = vrot.lane.b32.xlu2 %v2083_v48, %s4630_s26  ;;  %4505 = vmatmul.msk.bf16.gmra.mxu1 %vm3593_vm10, %v4383_v44  ;;  %v2618_v61 = vshrl.u32 %v4231_v50, 16  ;;  %v3213_v48 = vsel %vm4878_vm5, %v3211_v56, %v3212_v62  ;;  %v2090_v44 = vsel %vm4878_vm5, %v2088_v16, %v2089_v23  ;;  %v4554_v50 = vld [vmem:[%s6426_s1 + $0x18] sm:$0xff] }
 0x197   : > { %3322 = vst.msk [vmem:[#allocation2 + $0x6c] sm:$0xf] %vm279_vm6, %v3213_v48 }
 0x198   : > { %v1868_v13 = vpop.permute.xlu2 %1867  ;;  %v2620_v63 = vrot.slane %v2618_v61, 4  ;;  %v4553_v61 = vld [vmem:[%s6426_s1 + $0x10] sm:$0xff] }
 0x199   : > { %1953 = vst.msk [vmem:[#allocation2 + $0x58] sm:$0xf] %vm1941_vm11, %v1868_v13  ;;  %v2605_v13 = vshrl.u32 %v4230_v1, 16  ;;  %v4215_v1 = vld [vmem:[%s4677_s19 + $0xa0] sm:$0xf] }
 0x19a   : > { %2222 = vrot.lane.b32.xlu1 %v2143_v2, %s4630_s26  ;;  %v4557_v2 = vld [vmem:[%s6426_s1 + $0x30] sm:$0xff] }
 0x19b   : > { %2946 = vrot.lane.b32.xlu0 %v2603_v53, %s4632_s28  ;;  %4561 = vmatpush.bf16.msra.mxu2 %v4557_v2  ;;  %v2607_v27 = vrot.slane %v2605_v13, 4  ;;  %v2840_v13 = vshll.u32 %v4259_v28, 16 }
 0x19c   : > { %v1860_v15 = vpop.permute.xlu1 %1859  ;;  %3643 = vmatpush.bf16.msra.mxu0 %v4557_v2  ;;  %v4137_v2 = vld [vmem:[%s4677_s19 + $0x30] sm:$0xe] }
 0x19d   : > { %1949 = vst.msk [vmem:[#allocation2 + $0x38] sm:$0xf] %vm1941_vm11, %v1860_v15  ;;  %v1858_v18 = vpop.permute.xlu0 %1857  ;;  %v4556_v15 = vld [vmem:[%s6426_s1 + $0x28] sm:$0xff]  ;;  %v2842_v16 = vrot.slane %v2840_v13, 5  ;;  %v1767_v13 = vrot.slane %v1766_v5, 4 }
 0x19e   : > { %1948 = vst.msk [vmem:[#allocation2 + $0x30] sm:$0xf] %vm1941_vm11, %v1858_v18  ;;  %2944 = vrot.lane.b32.xlu2 %v2593_v22, %s4632_s28  ;;  %v4196_v18 = vld [vmem:[%s4677_s19 + $0x30] sm:$0xf]  ;;  %v2624_v22 = vshll.u32 %v4232_v6, 16  ;;  %v2824_v6 = vshll.u32 %v4257_v60, 16 }
 0x19f   : > { %4562 = vmatpush.bf16.msra.mxu2 %v4556_v15  ;;  %v4388_v29 = vld [vmem:[#allocation2 + $0x68] sm:$0xf0] }
 0x1a0   : > { %v1874_v43 = vpop.permute.xlu2 %1873  ;;  %3644 = vmatpush.bf16.msra.mxu0 %v4556_v15  ;;  %v4391_v37 = vor.u32 %v4531_v24, %v4388_v29  ;;  %v2626_v36 = vrot.slane %v2624_v22, 5  ;;  %v4214_v15 = vld [vmem:[%s4677_s19 + $0x9c] sm:$0xf]  ;;  %v2826_v22 = vrot.slane %v2824_v6, 5 }
 0x1a1   : > { %1956 = vst.msk [vmem:[#allocation2 + $0x70] sm:$0xf] %vm1941_vm11, %v1874_v43  ;;  %v3216_v43 = vrot.slane %v4294_v30, 5  ;;  %v4296_v30 = vld [vmem:[%s4677_s19 + $0x78] sm:$0xe] }
 0x1a2   : > { %2421 = vrot.lane.b32.xlu1 %v4213_v19, %s4631_s27  ;;  %v4161_v19 = vld [vmem:[%s4677_s19 + $0x90] sm:$0xe]  ;;  %v4328_v42 = vrot.slane %v4296_v30, 9 }
 0x1a3   : > { %2419 = vrot.lane.b32.xlu0 %v4212_v21, %s4631_s27  ;;  %v2621_v21 = vor.u32 %v2620_v63, %v5684_v3  ;;  %v4187_v31 = vrot.slane %v4161_v19, 9  ;;  %4563 = vmatpush.bf16.msra.mxu2 %v4555_v26  ;;  %v2152_v19 = vrot.slane %v4163_v14, 5 }
 0x1a4   : > { %v1866_v46 = vpop.permute.xlu1 %1865  ;;  %3645 = vmatpush.bf16.msra.mxu0 %v4555_v26 }
 0x1a5   : > { %1952 = vst.msk [vmem:[#allocation2 + $0x50] sm:$0xf] %vm1941_vm11, %v1866_v46  ;;  %v1864_v52 = vpop.permute.xlu0 %1863  ;;  %v2622_v39 = vrot.slane %v2621_v21, 4  ;;  %v2611_v46 = vor.u32 %v2610_v10, %v2607_v27  ;;  %v2150_v47 = vsel %vm4878_vm5, %v4187_v31, %v2149_v32  ;;  %v4234_v27 = vld [vmem:[%s4677_s19 + $0x40] sm:$0xf] }
 0x1a6   : > { %1951 = vst.msk [vmem:[#allocation2 + $0x48] sm:$0xf] %vm1941_vm11, %v1864_v52  ;;  %2224 = vrot.lane.b32.xlu2 %v2146_v55, %s4630_s26  ;;  %4506 = vmatmul.msk.bf16.gmra.mxu1 %vm3593_vm10, %v4391_v37  ;;  %v4295_v52 = vld [vmem:[%s4677_s19 + $0x74] sm:$0x1]  ;;  %v3218_v55 = vrot.slane %v3216_v43, 4  ;;  %v4551_v10 = vld [vmem:[%s6426_s1] sm:$0xff] }
 0x1a7   : > { %v2627_v54 = vsel %vm4688_vm2, %v2622_v39, %v2626_v36  ;;  %4564 = vmatpush.bf16.msra.mxu2 %v4554_v50  ;;  %v3219_v9 = vrot.slane %v4295_v52, 5  ;;  %v2612_v56 = vrot.slane %v2611_v46, 4  ;;  %v2642_v39 = vshrl.u32 %v4234_v27, 16 }
 0x1a8   : > { %v1880_v0 = vpop.permute.xlu2 %1879  ;;  %3646 = vmatpush.bf16.msra.mxu0 %v4554_v50 }
 0x1a9   : > { %1959 = vst.msk [vmem:[#allocation2 + $0x88] sm:$0xf] %vm1941_vm11, %v1880_v0  ;;  %v3220_v48 = vsel %vm4878_vm5, %v3218_v55, %v3219_v9  ;;  %v2617_v63 = vsel %vm4688_vm2, %v2612_v56, %v5684_v3  ;;  %v2151_v3 = vrot.slane %v2149_v32, 4  ;;  %v4297_v32 = vld [vmem:[%s4677_s19 + $0x7c] sm:$0xf] }
 0x1aa   : > { %2190 = vrot.lane.b32.xlu1 %v2087_v57, %s4630_s26  ;;  %v3217_v57 = vsel %vm4878_vm5, %v4327_v45, %v3216_v43  ;;  %3324 = vst.msk [vmem:[#allocation2 + $0x7c] sm:$0xf] %vm279_vm6, %v3220_v48  ;;  %v4233_v45 = vld [vmem:[%s4677_s19 + $0x3c] sm:$0xf]  ;;  %v4118_v9 = vld [vmem:[%s4677_s19 + $0xa4] sm:$0x1] }
 0x1ab   : > { %2982 = vrot.lane.b32.xlu0 %v2819_v51, %s4632_s28  ;;  %v2836_v51 = vrot.slane %v2834_v40, 4  ;;  %3323 = vst.msk [vmem:[#allocation2 + $0x74] sm:$0xf] %vm279_vm6, %v3217_v57  ;;  %4565 = vmatpush.bf16.msra.mxu2 %v4553_v61  ;;  %v2153_v35 = vsel %vm4878_vm5, %v2151_v3, %v2152_v19  ;;  %v4235_v56 = vld [vmem:[%s4677_s19 + $0x44] sm:$0x1]  ;;  %v1769_v28 = vshll.u32 %v4118_v9, 16 }
 0x1ac   : > { %v1872_v53 = vpop.permute.xlu1 %1871  ;;  %3647 = vmatpush.bf16.msra.mxu0 %v4553_v61  ;;  %v2629_v61 = vshrl.u32 %v4233_v45, 16  ;;  %v4261_v19 = vld [vmem:[%s4677_s19 + $0xac] sm:$0xf]  ;;  %v4216_v9 = vld [vmem:[%s4677_s19 + $0xa8] sm:$0xf] }
 0x1ad   : > { %1955 = vst.msk [vmem:[#allocation2 + $0x68] sm:$0xf] %vm1941_vm11, %v1872_v53  ;;  %v1870_v4 = vpop.permute.xlu0 %1869  ;;  %v5749_v53 = vld [vmem:[%s4677_s19 + $0x34] sm:$0xf]  ;;  %v1771_v14 = vrot.slane %v1769_v28, 5  ;;  %v2854_v11 = vshll.u32 %v4261_v19, 16 }
 0x1ae   : > { %1954 = vst.msk [vmem:[#allocation2 + $0x60] sm:$0xf] %vm1941_vm11, %v1870_v4  ;;  %2980 = vrot.lane.b32.xlu2 %v2809_v12, %s4632_s28  ;;  %v2821_v4 = vshrl.u32 %v4257_v60, 16  ;;  %v2837_v12 = vor.u32 %v2836_v51, %v5731_v49  ;;  %v4199_v51 = vld [vmem:[%s4677_s19 + $0x40] sm:$0xf]  ;;  %v2858_v5 = vshrl.u32 %v4261_v19, 16 }
 0x1af   : > { %4566 = vmatpush.bf16.msra.mxu2 %v4552_v7 }
 0x1b0   : > { %v1886_v34 = vpop.permute.xlu2 %1885  ;;  %v2823_v21 = vrot.slane %v2821_v4, 4  ;;  %3648 = vmatpush.bf16.msra.mxu0 %v4552_v7  ;;  %v2838_v24 = vrot.slane %v2837_v12, 4  ;;  %v2631_v7 = vrot.slane %v2629_v61, 4 }
 0x1b1   : > { %1962 = vst.msk [vmem:[#allocation2 + $0xa0] sm:$0xf] %vm1941_vm11, %v1886_v34  ;;  %v4396_v26 = vld [vmem:[#allocation2 + $0x78] sm:$0xf0] }
 0x1b2   : > { %2389 = vrot.lane.b32.xlu1 %v4197_v17, %s4631_s27  ;;  %v4179_v17 = vrot.slane %v4137_v2, 9  ;;  %v4533_v20 = vld [vmem:[#allocation2 + $0x74] sm:$0xf]  ;;  %v2827_v37 = vor.u32 %v2826_v22, %v2823_v21  ;;  %v2843_v43 = vsel %vm4688_vm2, %v2838_v24, %v2842_v16  ;;  %v4198_v2 = vld [vmem:[%s4677_s19 + $0x3c] sm:$0xf] }
 0x1b3   : > { %2387 = vrot.lane.b32.xlu0 %v4196_v18, %s4631_s27  ;;  %v2093_v18 = vrot.slane %v5749_v53, 5  ;;  %4567 = vmatpush.bf16.msra.mxu2 %v4551_v10  ;;  %v4399_v36 = vor.u32 %v4533_v20, %v4396_v26  ;;  %v4260_v22 = vld [vmem:[%s4677_s19 + $0xa8] sm:$0xf] }
 0x1b4   : > { %v1878_v38 = vpop.permute.xlu1 %1877  ;;  %3649 = vmatpush.bf16.msra.mxu0 %v4551_v10  ;;  %v2828_v46 = vrot.slane %v2827_v37, 4  ;;  %v2845_v10 = vshrl.u32 %v4260_v22, 16  ;;  %v2860_v37 = vrot.slane %v2858_v5, 4  ;;  %v4142_v5 = vld [vmem:[%s4677_s19 + $0x44] sm:$0x1] }
 0x1b5   : > { %1958 = vst.msk [vmem:[#allocation2 + $0x80] sm:$0xf] %vm1941_vm11, %v1878_v38  ;;  %v1876_v41 = vpop.permute.xlu0 %1875  ;;  %v2094_v34 = vsel %vm4878_vm5, %v4179_v17, %v2093_v18  ;;  %v2638_v38 = vshll.u32 %v4234_v27, 16  ;;  %v2095_v4 = vrot.slane %v2093_v18, 4  ;;  %v1772_v27 = vsel %vm4688_vm2, %v1767_v13, %v1771_v14 }
 0x1b6   : > { %1957 = vst.msk [vmem:[#allocation2 + $0x78] sm:$0xf] %vm1941_vm11, %v1876_v41  ;;  %2192 = vrot.lane.b32.xlu2 %v2090_v44, %s4630_s26  ;;  %v4298_v41 = vld [vmem:[%s4677_s19 + $0x80] sm:$0x1]  ;;  %v3223_v44 = vrot.slane %v4297_v32, 5  ;;  %4507 = vmatmul.msk.bf16.gmra.mxu1 %vm3593_vm10, %v4399_v36  ;;  %v2833_v60 = vsel %vm4688_vm2, %v2828_v46, %v5731_v49 }
 0x1b7   : > { %v3226_v33 = vrot.slane %v4298_v41, 5  ;;  %v5792_v52 = vrot.slane %v2638_v38, 5  ;;  %v5815_v49 = vld [vmem:[%s4677_s19 + $0xa0] sm:$0xf]  ;;  %v4300_v38 = vld [vmem:[%s4677_s19 + $0x88] sm:$0xf] }
 0x1b8   : > { %v1892_v59 = vpop.permute.xlu2 %1891  ;;  %v3225_v40 = vrot.slane %v3223_v44, 4  ;;  %v2156_v24 = vrot.slane %v5815_v49, 5  ;;  %v2847_v41 = vrot.slane %v2845_v10, 4  ;;  %v4299_v46 = vld [vmem:[%s4677_s19 + $0x84] sm:$0xe] }
 0x1b9   : > { %1965 = vst.msk [vmem:[#allocation2 + $0xb8] sm:$0xf] %vm1941_vm11, %v1892_v59 }
 0x1ba   : > { %2226 = vrot.lane.b32.xlu1 %v2150_v47, %s4630_s26  ;;  %v3224_v47 = vsel %vm4878_vm5, %v4328_v42, %v3223_v44  ;;  %v3227_v57 = vsel %vm4878_vm5, %v3225_v40, %v3226_v33  ;;  %v4262_v33 = vld [vmem:[%s4677_s19 + $0xb0] sm:$0x1] }
 0x1bb   : > { %2950 = vrot.lane.b32.xlu0 %v2627_v54, %s4632_s28  ;;  %v2644_v54 = vrot.slane %v2642_v39, 4  ;;  %3325 = vst.msk [vmem:[#allocation2 + $0x84] sm:$0xf] %vm279_vm6, %v3224_v47  ;;  %v4301_v47 = vld [vmem:[%s4677_s19 + $0x8c] sm:$0x1] }
 0x1bc   : > { %v1884_v62 = vpop.permute.xlu1 %1883  ;;  %3326 = vst.msk [vmem:[#allocation2 + $0x8c] sm:$0xf] %vm279_vm6, %v3227_v57 }
 0x1bd   : > { %1961 = vst.msk [vmem:[#allocation2 + $0x98] sm:$0xf] %vm1941_vm11, %v1884_v62  ;;  %v1882_v0 = vpop.permute.xlu0 %1881  ;;  %v2632_v62 = vshll.u32 %v4233_v45, 16  ;;  %v2645_v48 = vor.u32 %v2644_v54, %v5792_v52 }
 0x1be   : > { %1960 = vst.msk [vmem:[#allocation2 + $0x90] sm:$0xf] %vm1941_vm11, %v1882_v0  ;;  %2948 = vrot.lane.b32.xlu2 %v2617_v63, %s4632_s28  ;;  %v2648_v0 = vshll.u32 %v4235_v56, 16  ;;  %v2864_v56 = vshll.u32 %v4262_v33, 16 }
 0x1bf   : > { %v2634_v12 = vrot.slane %v2632_v62, 5 }
 0x1c0   : > { %v2217_v23 = vpop.permute.xlu2 %2216  ;;  %v2650_v17 = vrot.slane %v2648_v0, 5 }
 0x1c1   : > { %2296 = vst.msk [vmem:[#allocation2 + $0x88] sm:$0xf] %vm2278_vm12, %v2217_v23  ;;  %v2635_v16 = vor.u32 %v2634_v12, %v2631_v7  ;;  %v5874_v7 = vld [vmem:[%s4677_s19 + $0x40] sm:$0xf]  ;;  %v4237_v12 = vld [vmem:[%s4677_s19 + $0x4c] sm:$0xf] }
 0x1c2   : > { %2425 = vrot.lane.b32.xlu1 %v4215_v1, %s4631_s27  ;;  %v4139_v1 = vld [vmem:[%s4677_s19 + $0x38] sm:$0x1]  ;;  %v5810_v63 = vpop.f32.mrf.mxu1  ;;  %v4535_v53 = vld [vmem:[#allocation2 + $0x84] sm:$0xf] }
 0x1c3   : > { %2423 = vrot.lane.b32.xlu0 %v4214_v15, %s4631_s27  ;;  %v2096_v6 = vrot.slane %v4139_v1, 5  ;;  %v2646_v15 = vrot.slane %v2645_v48, 4  ;;  %v4404_v23 = vld [vmem:[#allocation2 + $0x88] sm:$0xf0]  ;;  %v2636_v26 = vrot.slane %v2635_v16, 4  ;;  %v2866_v1 = vrot.slane %v2864_v56, 5 }
 0x1c4   : > { %v1890_v29 = vpop.permute.xlu1 %1889  ;;  %v4407_v20 = vor.u32 %v4535_v53, %v4404_v23  ;;  %v4119_v56 = vld [vmem:[%s4677_s19 + $0xa8] sm:$0xf] }
 0x1c5   : > { %1964 = vst.msk [vmem:[#allocation2 + $0xb0] sm:$0xf] %vm1941_vm11, %v1890_v29  ;;  %v1888_v31 = vpop.permute.xlu0 %1887  ;;  %v2097_v8 = vsel %vm4878_vm5, %v2095_v4, %v2096_v6  ;;  %v2848_v29 = vshll.u32 %v4260_v22, 16  ;;  %v2651_v30 = vsel %vm4688_vm2, %v2646_v15, %v2650_v17  ;;  %v4236_v15 = vld [vmem:[%s4677_s19 + $0x48] sm:$0xf]  ;;  %v2666_v22 = vshrl.u32 %v4237_v12, 16 }
 0x1c6   : > { %1963 = vst.msk [vmem:[#allocation2 + $0xa8] sm:$0xf] %vm1941_vm11, %v1888_v31  ;;  %2228 = vrot.lane.b32.xlu2 %v2153_v35, %s4630_s26  ;;  %v4166_v31 = vld [vmem:[%s4677_s19 + $0xa4] sm:$0x1]  ;;  %4508 = vmatmul.msk.bf16.gmra.mxu1 %vm3593_vm10, %v4407_v20  ;;  %v5844_v35 = vrot.slane %v2854_v11, 5  ;;  %v2653_v49 = vshrl.u32 %v4236_v15, 16 }
 0x1c7   : > { %v2159_v39 = vrot.slane %v4166_v31, 5  ;;  %v2850_v42 = vrot.slane %v2848_v29, 5  ;;  %v2656_v11 = vshll.u32 %v4236_v15, 16  ;;  %v2668_v29 = vrot.slane %v2666_v22, 4 }
 0x1c8   : > { %v2973_v50 = vpop.permute.xlu2 %2972  ;;  %v2861_v45 = vor.u32 %v2860_v37, %v5844_v35  ;;  %v2103_v31 = vrot.slane %v4142_v5, 5  ;;  %v4264_v5 = vld [vmem:[%s4677_s19 + $0xb8] sm:$0xf] }
 0x1c9   : > { %v2851_v57 = vor.u32 %v2850_v42, %v2847_v41  ;;  %v2658_v37 = vrot.slane %v2656_v11, 5 }
 0x1ca   : > { %2194 = vrot.lane.b32.xlu1 %v2094_v34, %s4630_s26  ;;  %v5837_v32 = vpop.f32.mrf.mxu1  ;;  %v2158_v34 = vrot.slane %v2156_v24, 4  ;;  %v2862_v0 = vrot.slane %v2861_v45, 4 }
 0x1cb   : > { %2986 = vrot.lane.b32.xlu0 %v2843_v43, %s4632_s28  ;;  %v3230_v43 = vrot.slane %v4300_v38, 5  ;;  %v4120_v38 = vld [vmem:[%s4677_s19 + $0xac] sm:$0xf] }
 0x1cc   : > { %v2215_v55 = vpop.permute.xlu1 %2214  ;;  %v2160_v61 = vsel %vm4878_vm5, %v2158_v34, %v2159_v39  ;;  %v2867_v19 = vsel %vm4688_vm2, %v2862_v0, %v2866_v1  ;;  %v4238_v34 = vld [vmem:[%s4677_s19 + $0x50] sm:$0x1]  ;;  %v4217_v39 = vld [vmem:[%s4677_s19 + $0xac] sm:$0xf]  ;;  %v1774_v1 = vshrl.u32 %v4119_v56, 16 }
 0x1cd   : > { %2295 = vst.msk [vmem:[#allocation2 + $0x80] sm:$0xf] %vm2278_vm12, %v2215_v55  ;;  %v1894_v59 = vpop.permute.xlu0 %1893  ;;  %v3232_v54 = vrot.slane %v3230_v43, 4  ;;  %v2641_v55 = vsel %vm4688_vm2, %v2636_v26, %v5792_v52  ;;  %v2672_v42 = vshll.u32 %v4238_v34, 16  ;;  %v2882_v34 = vshrl.u32 %v4264_v5, 16 }
 0x1ce   : > { %1966 = vst.msk [vmem:[#allocation2 + $0xc0] sm:$0xf] %vm1941_vm11, %v1894_v59  ;;  %2984 = vrot.lane.b32.xlu2 %v2833_v60, %s4632_s28  ;;  %v4164_v59 = vld [vmem:[%s4677_s19 + $0x9c] sm:$0xe]  ;;  %v3233_v60 = vrot.slane %v4301_v47, 5  ;;  %v1787_v47 = vshrl.u32 %v4120_v38, 16 }
 0x1cf   : > { %v4188_v62 = vrot.slane %v4164_v59, 9  ;;  %v1776_v15 = vrot.slane %v1774_v1, 4 }
 0x1d0   : > { %v2185_v3 = vpop.permute.xlu2 %2184  ;;  %v3234_v52 = vsel %vm4878_vm5, %v3232_v54, %v3233_v60  ;;  %v1789_v60 = vrot.slane %v1787_v47, 4 }
 0x1d1   : > { %2280 = vst.msk [vmem:[#allocation2 + $0x8] sm:$0xf] %vm2278_vm12, %v2185_v3  ;;  %v2157_v3 = vsel %vm4878_vm5, %v4188_v62, %v2156_v24  ;;  %v4121_v62 = vld [vmem:[%s4677_s19 + $0xb0] sm:$0x1] }
 0x1d2   : > { %2393 = vrot.lane.b32.xlu1 %v4199_v51, %s4631_s27  ;;  %3328 = vst.msk [vmem:[#allocation2 + $0x9c] sm:$0xf] %vm279_vm6, %v3234_v52 }
 0x1d3   : > { %2391 = vrot.lane.b32.xlu0 %v4198_v2, %s4631_s27  ;;  %v5868_v28 = vpop.f32.mrf.mxu1  ;;  %v2852_v2 = vrot.slane %v2851_v57, 4 }
 0x1d4   : > { %v2414_v21 = vpop.permute.xlu1 %2413 }
 0x1d5   : > { %2493 = vst.msk [vmem:[#allocation2 + $0x88] sm:$0xf] %vm2475_vm13, %v2414_v21  ;;  %v2412_v18 = vpop.permute.xlu0 %2411  ;;  %v2662_v21 = vshll.u32 %v4237_v12, 16  ;;  %v5928_v12 = vld [vmem:[%s4677_s19 + $0xac] sm:$0xf] }
 0x1d6   : > { %2492 = vst.msk [vmem:[#allocation2 + $0x80] sm:$0xf] %vm2475_vm13, %v2412_v18  ;;  %2196 = vrot.lane.b32.xlu2 %v2097_v8, %s4630_s26  ;;  %v2857_v18 = vsel %vm4688_vm2, %v2852_v2, %v5844_v35  ;;  %v2100_v8 = vrot.slane %v5874_v7, 5  ;;  %v2655_v35 = vrot.slane %v2653_v49, 4  ;;  %v1777_v2 = vshll.u32 %v4119_v56, 16 }
 0x1d7   : > { %3053 = vst.msk [vmem:[#allocation2 + $0x80] sm:$0xf] %vm3036_vm14, %v2973_v50  ;;  %v4329_v50 = vrot.slane %v4299_v46, 9  ;;  %v2664_v10 = vrot.slane %v2662_v21, 5  ;;  %v1783_v46 = vshll.u32 %v4120_v38, 16  ;;  %v2163_v21 = vrot.slane %v5928_v12, 5 }
 0x1d8   : > { %v2941_v36 = vpop.permute.xlu2 %2940  ;;  %v2659_v33 = vor.u32 %v2658_v37, %v2655_v35  ;;  %v4167_v7 = vld [vmem:[%s4677_s19 + $0xa8] sm:$0xe]  ;;  %v4302_v49 = vld [vmem:[%s4677_s19 + $0x90] sm:$0xe]  ;;  %v4218_v56 = vld [vmem:[%s4677_s19 + $0xb4] sm:$0xf] }
 0x1d9   : > { %v3231_v51 = vsel %vm4878_vm5, %v4329_v50, %v3230_v43  ;;  %v4412_v24 = vld [vmem:[#allocation2 + $0x98] sm:$0xf0]  ;;  %v2669_v41 = vor.u32 %v2668_v29, %v2664_v10  ;;  %v4304_v29 = vld [vmem:[%s4677_s19 + $0x98] sm:$0x1] }
 0x1da   : > { %1895 = vrot.lane.b32.xlu1 %v1772_v27, %s4629_s23  ;;  %3327 = vst.msk [vmem:[#allocation2 + $0x94] sm:$0xf] %vm279_vm6, %v3231_v51  ;;  %v4140_v43 = vld [vmem:[%s4677_s19 + $0x3c] sm:$0xe]  ;;  %v2660_v59 = vrot.slane %v2659_v33, 4  ;;  %v5914_v51 = vrot.slane %v1783_v46, 5 }
 0x1db   : > { %2954 = vrot.lane.b32.xlu0 %v2651_v30, %s4632_s28  ;;  %v5894_v16 = vpop.f32.mrf.mxu1  ;;  %v2102_v30 = vrot.slane %v2100_v8, 4  ;;  %v2670_v45 = vrot.slane %v2669_v41, 4  ;;  %v3240_v37 = vrot.slane %v4304_v29, 5  ;;  %v2884_v33 = vrot.slane %v2882_v34, 4 }
 0x1dc   : > { %v2183_v44 = vpop.permute.xlu1 %2182 }
 0x1dd   : > { %2279 = vst.msk [vmem:[#allocation2] sm:$0xf] %vm2278_vm12, %v2183_v44  ;;  %v2975_v40 = vpop.permute.xlu0 %2974  ;;  %v2104_v44 = vsel %vm4878_vm5, %v2102_v30, %v2103_v31  ;;  %v2878_v31 = vshll.u32 %v4264_v5, 16 }
 0x1de   : > { %3054 = vst.msk [vmem:[#allocation2 + $0x88] sm:$0xf] %vm3036_vm14, %v2975_v40  ;;  %2952 = vrot.lane.b32.xlu2 %v2641_v55, %s4632_s28  ;;  %v4402_v48 = vld [vmem:[#allocation2 + $0x80] sm:$0xf]  ;;  %v4180_v40 = vrot.slane %v4140_v43, 9  ;;  %v2674_v55 = vrot.slane %v2672_v42, 5 }
 0x1df   : > { %v4263_v42 = vld [vmem:[%s4677_s19 + $0xb4] sm:$0xf] }
 0x1e0   : > { %v2221_v4 = vpop.permute.xlu2 %2220  ;;  %v2101_v0 = vsel %vm4878_vm5, %v4180_v40, %v2100_v8 }
 0x1e1   : > { %2298 = vst.msk [vmem:[#allocation2 + $0x98] sm:$0xf] %vm2278_vm12, %v2221_v4  ;;  %v4537_v53 = vld [vmem:[#allocation2 + $0x94] sm:$0xf]  ;;  %v2675_v4 = vsel %vm4688_vm2, %v2670_v45, %v2674_v55  ;;  %v4265_v45 = vld [vmem:[%s4677_s19 + $0xbc] sm:$0x1] }
 0x1e2   : > { %2427 = vrot.lane.b32.xlu1 %v4216_v9, %s4631_s27  ;;  %v4415_v23 = vor.u32 %v4537_v53, %v4412_v24  ;;  %v4303_v24 = vld [vmem:[%s4677_s19 + $0x94] sm:$0xf] }
 0x1e3   : > { %2232 = vrot.lane.b32.xlu0 %v2160_v61, %s4630_s26  ;;  %v5909_v50 = vpop.f32.mrf.mxu1  ;;  %v3237_v35 = vrot.slane %v4303_v24, 5 }
 0x1e4   : > { %v2382_v6 = vpop.permute.xlu1 %2381  ;;  %4509 = vmatmul.msk.bf16.vlgmr.msra.gmra.mxu3 %vm3593_vm10, %v4415_v23  ;;  %v4201_v23 = vld [vmem:[%s4677_s19 + $0x4c] sm:$0xf] }
 0x1e5   : > { %2477 = vst.msk [vmem:[#allocation2 + $0x8] sm:$0xf] %vm2475_vm13, %v2382_v6  ;;  %v2380_v13 = vpop.permute.xlu0 %2379  ;;  %v4536_v14 = vld [vmem:[#allocation2 + $0x84] sm:$0xf0]  ;;  %v2665_v6 = vsel %vm4688_vm2, %v2660_v59, %v2664_v10  ;;  %v2869_v59 = vshrl.u32 %v4263_v42, 16 }
 0x1e6   : > { %2476 = vst.msk [vmem:[#allocation2] sm:$0xf] %vm2475_vm13, %v2380_v13  ;;  %v4403_v17 = vor.u32 %v4536_v14, %v4402_v48  ;;  %2230 = vrot.lane.b32.xlu2 %v2157_v3, %s4630_s26  ;;  %v1790_v13 = vor.u32 %v1789_v60, %v5914_v51  ;;  %v1793_v14 = vshll.u32 %v4121_v62, 16  ;;  %v2872_v60 = vshll.u32 %v4263_v42, 16  ;;  %v5974_v62 = vld [vmem:[%s4677_s19 + $0x4c] sm:$0xf] }
 0x1e7   : > { %3037 = vst.msk [vmem:[#allocation2] sm:$0xf] %vm3036_vm14, %v2941_v36  ;;  %v4200_v36 = vld [vmem:[%s4677_s19 + $0x48] sm:$0xf]  ;;  %v2107_v12 = vrot.slane %v5974_v62, 5 }
 0x1e8   : > { %3690 = vmatmul.bf16.vlgmr.msra.gmra.mxu2 %v4403_v17  ;;  %v2977_v27 = vpop.permute.xlu2 %2976  ;;  %v1779_v17 = vrot.slane %v1777_v2, 5  ;;  %v1795_v8 = vrot.slane %v1793_v14, 5  ;;  %v4122_v2 = vld [vmem:[%s4677_s19 + $0xb4] sm:$0xf] }
 0x1ea   : > { %2990 = vrot.lane.b32.xlu1 %v2867_v19, %s4632_s28  ;;  %v4189_v19 = vrot.slane %v4167_v7, 9 }
 0x1eb   : > { %2988 = vrot.lane.b32.xlu0 %v2857_v18, %s4632_s28  ;;  %v5933_v3 = vpop.f32.mrf.mxu1  ;;  %v1791_v18 = vrot.slane %v1790_v13, 4 }
 0x1ec   : > { %v2219_v20 = vpop.permute.xlu1 %2218  ;;  %v2164_v10 = vsel %vm4878_vm5, %v4189_v19, %v2163_v21  ;;  %v4240_v19 = vld [vmem:[%s4677_s19 + $0x58] sm:$0xf] }
 0x1ed   : > { %2297 = vst.msk [vmem:[#allocation2 + $0x90] sm:$0xf] %vm2278_vm12, %v2219_v20  ;;  %v2943_v26 = vpop.permute.xlu0 %2942  ;;  %v4330_v20 = vrot.slane %v4302_v49, 9  ;;  %v1796_v30 = vsel %vm4688_vm2, %v1791_v18, %v1795_v8  ;;  %v1801_v18 = vshll.u32 %v4122_v2, 16 }
 0x1ee   : > { %3038 = vst.msk [vmem:[#allocation2 + $0x8] sm:$0xf] %vm3036_vm14, %v2943_v26  ;;  %2429 = vrot.lane.b32.xlu2 %v4217_v39, %s4631_s27  ;;  %v4338_v54 = vld [vmem:[#allocation2] sm:$0xf]  ;;  %v3239_v39 = vrot.slane %v3237_v35, 4 }
 0x1ef   : > { %v3238_v38 = vsel %vm4878_vm5, %v4330_v20, %v3237_v35 }
 0x1f0   : > { %v2189_v9 = vpop.permute.xlu2 %2188  ;;  %3329 = vst.msk [vmem:[#allocation2 + $0xa4] sm:$0xf] %vm279_vm6, %v3238_v38  ;;  %v3241_v55 = vsel %vm4878_vm5, %v3239_v39, %v3240_v37  ;;  %v4241_v39 = vld [vmem:[%s4677_s19 + $0x5c] sm:$0x1] }
 0x1f1   : > { %2282 = vst.msk [vmem:[#allocation2 + $0x18] sm:$0xf] %vm2278_vm12, %v2189_v9 }
 0x1f2   : > { %2395 = vrot.lane.b32.xlu1 %v4200_v36, %s4631_s27  ;;  %3330 = vst.msk [vmem:[#allocation2 + $0xac] sm:$0xf] %vm279_vm6, %v3241_v55 }
 0x1f3   : > { %2200 = vrot.lane.b32.xlu0 %v2104_v44, %s4630_s26  ;;  %v5956_v44 = vrot.slane %v2878_v31, 5  ;;  %v5958_v46 = vpop.f32.mrf.mxu1  ;;  %v5997_v31 = vld [vmem:[%s4677_s19 + $0xb8] sm:$0xf] }
 0x1f4   : > { %v2418_v57 = vpop.permute.xlu1 %2417 }
 0x1f5   : > { %2495 = vst.msk [vmem:[#allocation2 + $0x98] sm:$0xf] %vm2475_vm13, %v2418_v57  ;;  %v2416_v61 = vpop.permute.xlu0 %2415  ;;  %v4520_v52 = vld [vmem:[#allocation2 + $0x4] sm:$0xf0] }
 0x1f6   : > { %2494 = vst.msk [vmem:[#allocation2 + $0x90] sm:$0xf] %vm2475_vm13, %v2416_v61  ;;  %v4339_v48 = vor.u32 %v4520_v52, %v4338_v54  ;;  %2198 = vrot.lane.b32.xlu2 %v2101_v0, %s4630_s26  ;;  %v4219_v54 = vld [vmem:[%s4677_s19 + $0xb8] sm:$0xf]  ;;  %v4143_v61 = vld [vmem:[%s4677_s19 + $0x48] sm:$0xe] }
 0x1f7   : > { %3055 = vst.msk [vmem:[#allocation2 + $0x90] sm:$0xf] %vm3036_vm14, %v2977_v27  ;;  %v1780_v27 = vor.u32 %v1779_v17, %v1776_v15  ;;  %v4169_v52 = vld [vmem:[%s4677_s19 + $0xb0] sm:$0x1]  ;;  %v2888_v0 = vshll.u32 %v4265_v45, 16  ;;  %v4181_v7 = vrot.slane %v4143_v61, 9 }
 0x1f8   : > { %3650 = vmatmul.bf16.vlgmr.msra.gmra.mxu0 %v4339_v48  ;;  %v2945_v22 = vpop.permute.xlu2 %2944  ;;  %v2885_v48 = vor.u32 %v2884_v33, %v5956_v44  ;;  %v2166_v1 = vrot.slane %v4169_v52, 5 }
 0x1f9   : > { %v1781_v26 = vrot.slane %v1780_v27, 4  ;;  %v2890_v17 = vrot.slane %v2888_v0, 5  ;;  %v2108_v5 = vsel %vm4878_vm5, %v4181_v7, %v2107_v12  ;;  %v4420_v24 = vld [vmem:[#allocation2 + $0xa8] sm:$0xf0]  ;;  %v2686_v27 = vshll.u32 %v4240_v19, 16 }
 0x1fa   : > { %2958 = vrot.lane.b32.xlu1 %v2675_v4, %s4632_s28  ;;  %v2871_v4 = vrot.slane %v2869_v59, 4  ;;  %v2886_v15 = vrot.slane %v2885_v48, 4 }
 0x1fb   : > { %2956 = vrot.lane.b32.xlu0 %v2665_v6, %s4632_s28  ;;  %v1786_v57 = vsel %vm4688_vm2, %v1781_v26, %v5914_v51  ;;  %v2165_v51 = vrot.slane %v2163_v21, 4  ;;  %v2874_v6 = vrot.slane %v2872_v60, 5  ;;  %v4539_v21 = vld [vmem:[#allocation2 + $0xa4] sm:$0xf]  ;;  %v4239_v26 = vld [vmem:[%s4677_s19 + $0x54] sm:$0xf] }
 0x1fc   : > { %v2187_v53 = vpop.permute.xlu1 %2186  ;;  %v4423_v29 = vor.u32 %v4539_v21, %v4420_v24  ;;  %v2677_v45 = vshrl.u32 %v4239_v26, 16  ;;  %v2680_v55 = vshll.u32 %v4239_v26, 16  ;;  %v2696_v60 = vshll.u32 %v4241_v39, 16  ;;  %v4172_v24 = vld [vmem:[%s4677_s19 + $0xbc] sm:$0x1] }
 0x1fd   : > { %2281 = vst.msk [vmem:[#allocation2 + $0x10] sm:$0xf] %vm2278_vm12, %v2187_v53  ;;  %v2979_v11 = vpop.permute.xlu0 %2978  ;;  %v1798_v53 = vshrl.u32 %v4122_v2, 16  ;;  %v2167_v8 = vsel %vm4878_vm5, %v2165_v51, %v2166_v1  ;;  %v2875_v49 = vor.u32 %v2874_v6, %v2871_v4  ;;  %v4306_v1 = vld [vmem:[%s4677_s19 + $0xa0] sm:$0xf] }
 0x1fe   : > { %3056 = vst.msk [vmem:[#allocation2 + $0x98] sm:$0xf] %vm3036_vm14, %v2979_v11  ;;  %2397 = vrot.lane.b32.xlu2 %v4201_v23, %s4631_s27  ;;  %v4410_v36 = vld [vmem:[#allocation2 + $0x90] sm:$0xf]  ;;  %v5988_v11 = vpop.f32.mrf.mxu1  ;;  %v2891_v23 = vsel %vm4688_vm2, %v2886_v15, %v2890_v17  ;;  %4510 = vmatmul.msk.bf16.gmra.mxu3 %vm3593_vm10, %v4423_v29  ;;  %v2679_v0 = vrot.slane %v2677_v45, 4  ;;  %v2682_v51 = vrot.slane %v2680_v55, 5 }
 0x1ff   : > { %v1800_v20 = vrot.slane %v1798_v53, 4  ;;  %v2876_v34 = vrot.slane %v2875_v49, 4  ;;  %v4171_v4 = vld [vmem:[%s4677_s19 + $0xb8] sm:$0xf]  ;;  %v4266_v6 = vld [vmem:[%s4677_s19 + $0xc0] sm:$0xf] }
 0x200   : > { %v2225_v41 = vpop.permute.xlu2 %2224  ;;  %v3244_v7 = vrot.slane %v4306_v1, 5  ;;  %v2698_v15 = vrot.slane %v2696_v60, 5  ;;  %v4305_v17 = vld [vmem:[%s4677_s19 + $0x9c] sm:$0xe]  ;;  %v1811_v53 = vshrl.u32 %v5997_v31, 16  ;;  %v2170_v21 = vrot.slane %v4171_v4, 5 }
 0x201   : > { %2300 = vst.msk [vmem:[#allocation2 + $0xa8] sm:$0xf] %vm2278_vm12, %v2225_v41  ;;  %v2893_v49 = vshrl.u32 %v4266_v6, 16  ;;  %v4242_v1 = vld [vmem:[%s4677_s19 + $0x60] sm:$0xf] }
 0x202   : > { %2234 = vrot.lane.b32.xlu1 %v2164_v10, %s4630_s26  ;;  %v2690_v10 = vshrl.u32 %v4240_v19, 16  ;;  %v4307_v19 = vld [vmem:[%s4677_s19 + $0xa4] sm:$0x1] }
 0x203   : > { %1899 = vrot.lane.b32.xlu0 %v1796_v30, %s4629_s23  ;;  %v1803_v30 = vrot.slane %v1801_v18, 5  ;;  %v4331_v18 = vrot.slane %v4305_v17, 9  ;;  %v3247_v29 = vrot.slane %v4307_v19, 5  ;;  %v2701_v19 = vshrl.u32 %v4242_v1, 16 }
 0x204   : > { %v2386_v43 = vpop.permute.xlu1 %2385  ;;  %v2692_v41 = vrot.slane %v2690_v10, 4  ;;  %v3246_v10 = vrot.slane %v3244_v7, 4 }
 0x205   : > { %2479 = vst.msk [vmem:[#allocation2 + $0x18] sm:$0xf] %vm2475_vm13, %v2386_v43  ;;  %v2384_v47 = vpop.permute.xlu0 %2383  ;;  %v4538_v40 = vld [vmem:[#allocation2 + $0x94] sm:$0xf0]  ;;  %v1804_v33 = vor.u32 %v1803_v30, %v1800_v20  ;;  %v4170_v30 = vld [vmem:[%s4677_s19 + $0xb4] sm:$0xe] }
 0x206   : > { %2478 = vst.msk [vmem:[#allocation2 + $0x10] sm:$0xf] %vm2475_vm13, %v2384_v47  ;;  %v4411_v9 = vor.u32 %v4538_v40, %v4410_v36  ;;  %1897 = vrot.lane.b32.xlu2 %v1786_v57, %s4629_s23  ;;  %v6004_v36 = vrot.slane %v2686_v27, 5  ;;  %v1807_v47 = vshll.u32 %v5997_v31, 16  ;;  %v4202_v57 = vld [vmem:[%s4677_s19 + $0x54] sm:$0xf]  ;;  %v6017_v61 = vpop.f32.mrf.mxu1  ;;  %v3245_v27 = vsel %vm4878_vm5, %v4331_v18, %v3244_v7 }
 0x207   : > { %3039 = vst.msk [vmem:[#allocation2 + $0x10] sm:$0xf] %vm3036_vm14, %v2945_v22  ;;  %v1805_v52 = vrot.slane %v1804_v33, 4  ;;  %v3248_v31 = vsel %vm4878_vm5, %v3246_v10, %v3247_v29  ;;  %v4124_v33 = vld [vmem:[%s4677_s19 + $0xbc] sm:$0x1] }
 0x208   : > { %3695 = vmatmul.bf16.gmra.mxu2 %v4411_v9  ;;  %v2981_v13 = vpop.permute.xlu2 %2980  ;;  %v4203_v9 = vld [vmem:[%s4677_s19 + $0x58] sm:$0xf]  ;;  %v2693_v59 = vor.u32 %v2692_v41, %v6004_v36  ;;  %v6019_v62 = vrot.slane %v1807_v47, 5  ;;  %3331 = vst.msk [vmem:[#allocation2 + $0xb4] sm:$0xf] %vm279_vm6, %v3245_v27 }
 0x209   : > { %3332 = vst.msk [vmem:[#allocation2 + $0xbc] sm:$0xf] %vm279_vm6, %v3248_v31  ;;  %v6086_v27 = vld [vmem:[%s4677_s19 + $0x64] sm:$0xf] }
 0x20a   : > { %2433 = vrot.lane.b32.xlu1 %v4219_v54, %s4631_s27  ;;  %v2881_v54 = vsel %vm4688_vm2, %v2876_v34, %v5956_v44  ;;  %v2109_v44 = vrot.slane %v2107_v12, 4  ;;  %v1810_v12 = vsel %vm4688_vm2, %v1805_v52, %v6019_v62  ;;  %v2172_v34 = vrot.slane %v2170_v21, 4  ;;  %v4126_v10 = vld [vmem:[%s4677_s19 + $0xc4] sm:$0xf] }
 0x20b   : > { %2431 = vrot.lane.b32.xlu0 %v4218_v56, %s4631_s27  ;;  %v4145_v56 = vld [vmem:[%s4677_s19 + $0x50] sm:$0x1] }
 0x20c   : > { %v2223_v14 = vpop.permute.xlu1 %2222  ;;  %v2110_v48 = vrot.slane %v4145_v56, 5 }
 0x20d   : > { %2299 = vst.msk [vmem:[#allocation2 + $0xa0] sm:$0xf] %vm2278_vm12, %v2223_v14  ;;  %v2947_v22 = vpop.permute.xlu0 %2946  ;;  %v2694_v14 = vrot.slane %v2693_v59, 4  ;;  %v1817_v59 = vshll.u32 %v4124_v33, 16  ;;  %v2710_v33 = vshll.u32 %v6086_v27, 16 }
 0x20e   : > { %3040 = vst.msk [vmem:[#allocation2 + $0x18] sm:$0xf] %vm3036_vm14, %v2947_v22  ;;  %2236 = vrot.lane.b32.xlu2 %v2167_v8, %s4630_s26  ;;  %v4346_v35 = vld [vmem:[#allocation2 + $0x10] sm:$0xf]  ;;  %v2111_v8 = vsel %vm4878_vm5, %v2109_v44, %v2110_v48  ;;  %v6048_v26 = vpop.f32.mrf.mxu1 }
 0x20f   : > { %v2699_v20 = vsel %vm4688_vm2, %v2694_v14, %v2698_v15  ;;  %v4541_v48 = vld [vmem:[#allocation2 + $0xb4] sm:$0xf]  ;;  %v4147_v14 = vld [vmem:[%s4677_s19 + $0x58] sm:$0xf] }
 0x210   : > { %v2193_v37 = vpop.permute.xlu2 %2192 }
 0x211   : > { %2284 = vst.msk [vmem:[#allocation2 + $0x28] sm:$0xf] %vm2278_vm12, %v2193_v37 }
 0x212   : > { %2202 = vrot.lane.b32.xlu1 %v2108_v5, %s4630_s26  ;;  %v2683_v5 = vor.u32 %v2682_v51, %v2679_v0  ;;  %v4428_v51 = vld [vmem:[#allocation2 + $0xb8] sm:$0xf0] }
 0x213   : > { %2994 = vrot.lane.b32.xlu0 %v2891_v23, %s4632_s28  ;;  %v2896_v23 = vshll.u32 %v4266_v6, 16 }
 0x214   : > { %v2422_v38 = vpop.permute.xlu1 %2421  ;;  %v2684_v37 = vrot.slane %v2683_v5, 4  ;;  %v4146_v5 = vld [vmem:[%s4677_s19 + $0x54] sm:$0xe] }
 0x215   : > { %2497 = vst.msk [vmem:[#allocation2 + $0xa8] sm:$0xf] %vm2475_vm13, %v2422_v38  ;;  %v2420_v42 = vpop.permute.xlu0 %2419  ;;  %v4522_v43 = vld [vmem:[#allocation2 + $0x14] sm:$0xf0]  ;;  %v1813_v38 = vrot.slane %v1811_v53, 4 }
 0x216   : > { %2496 = vst.msk [vmem:[#allocation2 + $0xa0] sm:$0xf] %vm2475_vm13, %v2420_v42  ;;  %v4347_v40 = vor.u32 %v4522_v43, %v4346_v35  ;;  %2992 = vrot.lane.b32.xlu2 %v2881_v54, %s4632_s28  ;;  %v2173_v35 = vrot.slane %v4172_v24, 5  ;;  %v2895_v42 = vrot.slane %v2893_v49, 4  ;;  %v2898_v43 = vrot.slane %v2896_v23, 5  ;;  %v6071_v15 = vpop.f32.mrf.mxu1 }
 0x217   : > { %3057 = vst.msk [vmem:[#allocation2 + $0xa0] sm:$0xf] %vm3036_vm14, %v2981_v13  ;;  %v4267_v54 = vld [vmem:[%s4677_s19 + $0xc4] sm:$0xf]  ;;  %v2689_v56 = vsel %vm4688_vm2, %v2684_v37, %v6004_v36  ;;  %v4148_v49 = vld [vmem:[%s4677_s19 + $0x5c] sm:$0x1] }
 0x218   : > { %3655 = vmatmul.bf16.gmra.mxu0 %v4347_v40  ;;  %v2949_v2 = vpop.permute.xlu2 %2948  ;;  %v4190_v40 = vrot.slane %v4170_v30, 9  ;;  %v2174_v60 = vsel %vm4878_vm5, %v2172_v34, %v2173_v35  ;;  %v2899_v52 = vor.u32 %v2898_v43, %v2895_v42  ;;  %v2902_v44 = vshll.u32 %v4267_v54, 16  ;;  %v4268_v35 = vld [vmem:[%s4677_s19 + $0xc8] sm:$0x1] }
 0x219   : > { %v2703_v24 = vrot.slane %v2701_v19, 4  ;;  %v2117_v31 = vrot.slane %v4148_v49, 5  ;;  %v4310_v19 = vld [vmem:[%s4677_s19 + $0xb0] sm:$0x1] }
 0x21a   : > { %2401 = vrot.lane.b32.xlu1 %v4203_v9, %s4631_s27  ;;  %v2171_v0 = vsel %vm4878_vm5, %v4190_v40, %v2170_v21  ;;  %v2900_v4 = vrot.slane %v2899_v52, 4  ;;  %v2904_v6 = vrot.slane %v2902_v44, 5  ;;  %v2114_v21 = vrot.slane %v4147_v14, 5  ;;  %v4127_v14 = vld [vmem:[%s4677_s19 + $0xc8] sm:$0x1] }
 0x21b   : > { %2399 = vrot.lane.b32.xlu0 %v4202_v57, %s4631_s27  ;;  %v1814_v57 = vor.u32 %v1813_v38, %v6019_v62  ;;  %v1819_v62 = vrot.slane %v1817_v59, 5  ;;  %v4182_v38 = vrot.slane %v4146_v5, 9  ;;  %v1841_v5 = vshll.u32 %v4127_v14, 16 }
 0x21c   : > { %v2191_v13 = vpop.permute.xlu1 %2190  ;;  %v2905_v18 = vsel %vm4688_vm2, %v2900_v4, %v2904_v6  ;;  %v2116_v30 = vrot.slane %v2114_v21, 4 }
 0x21d   : > { %2283 = vst.msk [vmem:[#allocation2 + $0x20] sm:$0xf] %vm2278_vm12, %v2191_v13  ;;  %v2983_v22 = vpop.permute.xlu0 %2982  ;;  %v1815_v36 = vrot.slane %v1814_v57, 4  ;;  %v2115_v52 = vsel %vm4878_vm5, %v4182_v38, %v2114_v21  ;;  %v2714_v21 = vshrl.u32 %v6086_v27, 16 }
 0x21e   : > { %3058 = vst.msk [vmem:[#allocation2 + $0xa8] sm:$0xf] %vm3036_vm14, %v2983_v22  ;;  %2204 = vrot.lane.b32.xlu2 %v2111_v8, %s4630_s26  ;;  %v4418_v39 = vld [vmem:[#allocation2 + $0xa0] sm:$0xf]  ;;  %v2704_v22 = vshll.u32 %v4242_v1, 16  ;;  %v2118_v57 = vsel %vm4878_vm5, %v2116_v30, %v2117_v31 }
 0x21f   : > { %v1820_v53 = vsel %vm4688_vm2, %v1815_v36, %v1819_v62  ;;  %v4221_v8 = vld [vmem:[%s4677_s19 + $0xc4] sm:$0xf]  ;;  %v4309_v1 = vld [vmem:[%s4677_s19 + $0xac] sm:$0xf]  ;;  %v4270_v31 = vld [vmem:[%s4677_s19 + $0xd0] sm:$0xf] }
 0x220   : > { %v2229_v41 = vpop.permute.xlu2 %2228  ;;  %v2706_v23 = vrot.slane %v2704_v22, 5 }
 0x221   : > { %2302 = vst.msk [vmem:[#allocation2 + $0xb8] sm:$0xf] %vm2278_vm12, %v2229_v41 }
 0x222   : > { %1901 = vrot.lane.b32.xlu1 %v1810_v12, %s4629_s23  ;;  %v2906_v12 = vshrl.u32 %v4267_v54, 16  ;;  %v2707_v43 = vor.u32 %v2706_v23, %v2703_v24  ;;  %v4220_v54 = vld [vmem:[%s4677_s19 + $0xc0] sm:$0xf] }
 0x223   : > { %2962 = vrot.lane.b32.xlu0 %v2699_v20, %s4632_s28 }
 0x224   : > { %v2390_v47 = vpop.permute.xlu1 %2389  ;;  %v2908_v29 = vrot.slane %v2906_v12, 4  ;;  %v2708_v44 = vrot.slane %v2707_v43, 4  ;;  %v6140_v43 = vld [vmem:[%s4677_s19 + $0xc4] sm:$0xf] }
 0x225   : > { %2481 = vst.msk [vmem:[#allocation2 + $0x28] sm:$0xf] %vm2475_vm13, %v2390_v47  ;;  %v2388_v45 = vpop.permute.xlu0 %2387  ;;  %v4540_v55 = vld [vmem:[#allocation2 + $0xa4] sm:$0xf0]  ;;  %v1831_v47 = vshll.u32 %v4126_v10, 16 }
 0x226   : > { %2480 = vst.msk [vmem:[#allocation2 + $0x20] sm:$0xf] %vm2475_vm13, %v2388_v45  ;;  %v4419_v9 = vor.u32 %v4540_v55, %v4418_v39  ;;  %2960 = vrot.lane.b32.xlu2 %v2689_v56, %s4632_s28  ;;  %v4125_v39 = vld [vmem:[%s4677_s19 + $0xc0] sm:$0xf]  ;;  %v6097_v45 = vpop.f32.mrf.mxu1  ;;  %v1835_v55 = vshrl.u32 %v4126_v10, 16  ;;  %v2912_v56 = vshll.u32 %v4268_v35, 16 }
 0x227   : > { %3041 = vst.msk [vmem:[#allocation2 + $0x20] sm:$0xf] %vm3036_vm14, %v2949_v2  ;;  %v4431_v2 = vor.u32 %v4541_v48, %v4428_v51  ;;  %v1822_v59 = vshrl.u32 %v4125_v39, 16  ;;  %v6104_v48 = vrot.slane %v2710_v33, 5  ;;  %v3254_v10 = vrot.slane %v4310_v19, 5 }
 0x228   : > { %3700 = vmatmul.bf16.gmra.mxu2 %v4419_v9  ;;  %v2985_v7 = vpop.permute.xlu2 %2984  ;;  %v2909_v9 = vor.u32 %v2908_v29, %v2904_v6  ;;  %v1837_v51 = vrot.slane %v1835_v55, 4  ;;  %v2914_v62 = vrot.slane %v2912_v56, 5  ;;  %v4205_v29 = vld [vmem:[%s4677_s19 + $0x64] sm:$0xf]  ;;  %v4269_v33 = vld [vmem:[%s4677_s19 + $0xcc] sm:$0xf] }
 0x229   : > { %4511 = vmatmul.msk.bf16.gmra.mxu3 %vm3593_vm10, %v4431_v2  ;;  %v1824_v4 = vrot.slane %v1822_v59, 4  ;;  %v2930_v56 = vshrl.u32 %v4270_v31, 16 }
 0x22a   : > { %2240 = vrot.lane.b32.xlu1 %v2174_v60, %s4630_s26  ;;  %v1825_v60 = vshll.u32 %v4125_v39, 16  ;;  %v2910_v36 = vrot.slane %v2909_v9, 4  ;;  %v4204_v9 = vld [vmem:[%s4677_s19 + $0x60] sm:$0xf] }
 0x22b   : > { %2238 = vrot.lane.b32.xlu0 %v2171_v0, %s4630_s26  ;;  %v6108_v0 = vrot.slane %v1831_v47, 5 }
 0x22c   : > { %v2227_v13 = vpop.permute.xlu1 %2226  ;;  %v1827_v6 = vrot.slane %v1825_v60, 5  ;;  %v2915_v49 = vsel %vm4688_vm2, %v2910_v36, %v2914_v62  ;;  %v2177_v62 = vrot.slane %v6140_v43, 5 }
 0x22d   : > { %2301 = vst.msk [vmem:[#allocation2 + $0xb0] sm:$0xf] %vm2278_vm12, %v2227_v13  ;;  %v2951_v17 = vpop.permute.xlu0 %2950 }
 0x22e   : > { %3042 = vst.msk [vmem:[#allocation2 + $0x28] sm:$0xf] %vm3036_vm14, %v2951_v17  ;;  %1903 = vrot.lane.b32.xlu2 %v1820_v53, %s4629_s23  ;;  %v4354_v20 = vld [vmem:[#allocation2 + $0x20] sm:$0xf]  ;;  %v4308_v17 = vld [vmem:[%s4677_s19 + $0xa8] sm:$0xe]  ;;  %v1828_v24 = vor.u32 %v1827_v6, %v1824_v4 }
 0x22f   : > { %v4332_v12 = vrot.slane %v4308_v17, 9  ;;  %v2932_v6 = vrot.slane %v2930_v56, 4 }
 0x230   : > { %v2197_v34 = vpop.permute.xlu2 %2196  ;;  %v1829_v38 = vrot.slane %v1828_v24, 4  ;;  %v4222_v24 = vld [vmem:[%s4677_s19 + $0xcc] sm:$0xf] }
 0x231   : > { %2286 = vst.msk [vmem:[#allocation2 + $0x38] sm:$0xf] %vm2278_vm12, %v2197_v34  ;;  %v2716_v34 = vrot.slane %v2714_v21, 4 }
 0x232   : > { %2996 = vrot.lane.b32.xlu1 %v2905_v18, %s4632_s28  ;;  %v2713_v18 = vsel %vm4688_vm2, %v2708_v44, %v6104_v48  ;;  %v2920_v44 = vshll.u32 %v4269_v33, 16  ;;  %v1834_v36 = vsel %vm4688_vm2, %v1829_v38, %v6108_v0 }
 0x233   : > { %2437 = vrot.lane.b32.xlu0 %v4221_v8, %s4631_s27  ;;  %v1838_v8 = vor.u32 %v1837_v51, %v6108_v0  ;;  %v4271_v0 = vld [vmem:[%s4677_s19 + $0xd4] sm:$0x1] }
 0x234   : > { %v2426_v37 = vpop.permute.xlu1 %2425 }
 0x235   : > { %2499 = vst.msk [vmem:[#allocation2 + $0xb8] sm:$0xf] %vm2475_vm13, %v2426_v37  ;;  %v2424_v41 = vpop.permute.xlu0 %2423  ;;  %v4524_v42 = vld [vmem:[#allocation2 + $0x24] sm:$0xf0]  ;;  %v1839_v30 = vrot.slane %v1838_v8, 4  ;;  %v1843_v37 = vrot.slane %v1841_v5, 5 }
 0x236   : > { %2498 = vst.msk [vmem:[#allocation2 + $0xb0] sm:$0xf] %vm2475_vm13, %v2424_v41  ;;  %v4355_v40 = vor.u32 %v4524_v42, %v4354_v20  ;;  %2435 = vrot.lane.b32.xlu2 %v4220_v54, %s4631_s27  ;;  %v6127_v20 = vpop.f32.mrf.mxu1  ;;  %v4244_v41 = vld [vmem:[%s4677_s19 + $0x68] sm:$0x1]  ;;  %v2926_v54 = vshll.u32 %v4270_v31, 16 }
 0x237   : > { %3059 = vst.msk [vmem:[#allocation2 + $0xb0] sm:$0xf] %vm3036_vm14, %v2985_v7  ;;  %v3251_v7 = vrot.slane %v4309_v1, 5  ;;  %v2720_v59 = vshll.u32 %v4244_v41, 16  ;;  %v1844_v60 = vsel %vm4688_vm2, %v1839_v30, %v1843_v37  ;;  %v4175_v1 = vld [vmem:[%s4677_s19 + $0xc8] sm:$0x1] }
 0x238   : > { %3660 = vmatmul.bf16.gmra.mxu0 %v4355_v40  ;;  %v2953_v2 = vpop.permute.xlu2 %2952  ;;  %v4246_v41 = vld [vmem:[%s4677_s19 + $0x70] sm:$0xf] }
 0x239   : > { %v3253_v53 = vrot.slane %v3251_v7, 4  ;;  %v3252_v23 = vsel %vm4878_vm5, %v4332_v12, %v3251_v7  ;;  %v2738_v56 = vshrl.u32 %v4246_v41, 16 }
 0x23a   : > { %2208 = vrot.lane.b32.xlu1 %v2118_v57, %s4630_s26  ;;  %3333 = vst.msk [vmem:[#allocation2 + $0xc4] sm:$0xf] %vm279_vm6, %v3252_v23  ;;  %v2717_v57 = vor.u32 %v2716_v34, %v6104_v48  ;;  %v2928_v48 = vrot.slane %v2926_v54, 5 }
 0x23b   : > { %2206 = vrot.lane.b32.xlu0 %v2115_v52, %s4630_s26  ;;  %v3255_v27 = vsel %vm4878_vm5, %v3253_v53, %v3254_v10  ;;  %v2917_v52 = vshrl.u32 %v4269_v33, 16  ;;  %v2179_v53 = vrot.slane %v2177_v62, 4  ;;  %v4173_v10 = vld [vmem:[%s4677_s19 + $0xc0] sm:$0xe] }
 0x23c   : > { %v2195_v13 = vpop.permute.xlu1 %2194  ;;  %3334 = vst.msk [vmem:[#allocation2 + $0xcc] sm:$0xf] %vm279_vm6, %v3255_v27  ;;  %v2718_v7 = vrot.slane %v2717_v57, 4  ;;  %v2933_v8 = vor.u32 %v2932_v6, %v2928_v48  ;;  %v4191_v31 = vrot.slane %v4173_v10, 9 }
 0x23d   : > { %2285 = vst.msk [vmem:[#allocation2 + $0x30] sm:$0xf] %vm2278_vm12, %v2195_v13  ;;  %v2987_v22 = vpop.permute.xlu0 %2986  ;;  %v2722_v13 = vrot.slane %v2720_v59, 5  ;;  %v2919_v19 = vrot.slane %v2917_v52, 4 }
 0x23e   : > { %3060 = vst.msk [vmem:[#allocation2 + $0xb8] sm:$0xf] %vm3036_vm14, %v2987_v22  ;;  %2998 = vrot.lane.b32.xlu2 %v2915_v49, %s4632_s28  ;;  %v4426_v35 = vld [vmem:[#allocation2 + $0xb0] sm:$0xf]  ;;  %v2922_v22 = vrot.slane %v2920_v44, 5  ;;  %v2936_v49 = vshll.u32 %v4271_v0, 16 }
 0x23f   : > { %v2723_v5 = vsel %vm4688_vm2, %v2718_v7, %v2722_v13  ;;  %v2934_v27 = vrot.slane %v2933_v8, 4  ;;  %v4151_v44 = vld [vmem:[%s4677_s19 + $0x68] sm:$0x1]  ;;  %v4223_v0 = vld [vmem:[%s4677_s19 + $0xd0] sm:$0xf] }
 0x240   : > { %v2231_v39 = vpop.permute.xlu2 %2230  ;;  %v2923_v23 = vor.u32 %v2922_v22, %v2919_v19  ;;  %v2938_v30 = vrot.slane %v2936_v49, 5  ;;  %v2124_v13 = vrot.slane %v4151_v44, 5  ;;  %v4149_v19 = vld [vmem:[%s4677_s19 + $0x60] sm:$0xe]  ;;  %v4206_v22 = vld [vmem:[%s4677_s19 + $0x6c] sm:$0xf] }
 0x241   : > { %2303 = vst.msk [vmem:[#allocation2 + $0xc0] sm:$0xf] %vm2278_vm12, %v2231_v39  ;;  %v4543_v51 = vld [vmem:[#allocation2 + $0xc4] sm:$0xf]  ;;  %v4183_v8 = vrot.slane %v4149_v19, 9 }
 0x242   : > { %2964 = vrot.lane.b32.xlu1 %v2713_v18, %s4632_s28  ;;  %v2180_v18 = vrot.slane %v4175_v1, 5  ;;  %v2939_v54 = vsel %vm4688_vm2, %v2934_v27, %v2938_v30  ;;  %v4312_v49 = vld [vmem:[%s4677_s19 + $0xb8] sm:$0xf] }
 0x243   : > { %2405 = vrot.lane.b32.xlu0 %v4205_v29, %s4631_s27  ;;  %v4436_v4 = vld [vmem:[#allocation2 + $0xc8] sm:$0xf0] }
 0x244   : > { %v2394_v42 = vpop.permute.xlu1 %2393  ;;  %v4439_v14 = vor.u32 %v4543_v51, %v4436_v4  ;;  %v2181_v29 = vsel %vm4878_vm5, %v2179_v53, %v2180_v18 }
 0x245   : > { %2483 = vst.msk [vmem:[#allocation2 + $0x38] sm:$0xf] %vm2475_vm13, %v2394_v42  ;;  %v2392_v47 = vpop.permute.xlu0 %2391  ;;  %v4542_v40 = vld [vmem:[#allocation2 + $0xb4] sm:$0xf0]  ;;  %v4245_v42 = vld [vmem:[%s4677_s19 + $0x6c] sm:$0xf] }
 0x246   : > { %2482 = vst.msk [vmem:[#allocation2 + $0x30] sm:$0xf] %vm2475_vm13, %v2392_v47  ;;  %v4427_v55 = vor.u32 %v4542_v40, %v4426_v35  ;;  %2403 = vrot.lane.b32.xlu2 %v4204_v9, %s4631_s27  ;;  %4512 = vmatmul.msk.bf16.gmra.mxu3 %vm3593_vm10, %v4439_v14  ;;  %v2924_v35 = vrot.slane %v2923_v23, 4  ;;  %v4150_v47 = vld [vmem:[%s4677_s19 + $0x64] sm:$0xf]  ;;  %v2734_v9 = vshll.u32 %v4246_v41, 16 }
 0x247   : > { %3043 = vst.msk [vmem:[#allocation2 + $0x30] sm:$0xf] %vm3036_vm14, %v2953_v2  ;;  %v6157_v2 = vpop.f32.mrf.mxu1  ;;  %v2725_v57 = vshrl.u32 %v4245_v42, 16  ;;  %v2728_v59 = vshll.u32 %v4245_v42, 16  ;;  %v2121_v52 = vrot.slane %v4150_v47, 5 }
 0x248   : > { %3705 = vmatmul.bf16.gmra.mxu2 %v4427_v55  ;;  %v2430_v17 = vpop.permute.xlu2 %2429  ;;  %v2178_v55 = vsel %vm4878_vm5, %v4191_v31, %v2177_v62  ;;  %v2740_v62 = vrot.slane %v2738_v56, 4  ;;  %v4311_v31 = vld [vmem:[%s4677_s19 + $0xb4] sm:$0xe] }
 0x249   : > { %v2727_v1 = vrot.slane %v2725_v57, 4  ;;  %v2730_v4 = vrot.slane %v2728_v59, 5  ;;  %v2123_v7 = vrot.slane %v2121_v52, 4  ;;  %v4333_v42 = vrot.slane %v4311_v31, 9 }
 0x24a   : > { %1907 = vrot.lane.b32.xlu1 %v1844_v60, %s4629_s23  ;;  %v2929_v60 = vsel %vm4688_vm2, %v2924_v35, %v2928_v48  ;;  %v4247_v48 = vld [vmem:[%s4677_s19 + $0x74] sm:$0x1] }
 0x24b   : > { %1905 = vrot.lane.b32.xlu0 %v1834_v36, %s4629_s23  ;;  %v2736_v36 = vrot.slane %v2734_v9, 5  ;;  %v2744_v53 = vshll.u32 %v4247_v48, 16  ;;  %v2731_v18 = vor.u32 %v2730_v4, %v2727_v1 }
 0x24c   : > { %v1896_v12 = vpop.permute.xlu1 %1895 }
 0x24d   : > { %1967 = vst.msk [vmem:[#allocation2 + $0xc8] sm:$0xf] %vm1941_vm11, %v1896_v12  ;;  %v2955_v21 = vpop.permute.xlu0 %2954  ;;  %v2741_v12 = vor.u32 %v2740_v62, %v2736_v36  ;;  %v2732_v23 = vrot.slane %v2731_v18, 4 }
 0x24e   : > { %3044 = vst.msk [vmem:[#allocation2 + $0x38] sm:$0xf] %vm3036_vm14, %v2955_v21  ;;  %2966 = vrot.lane.b32.xlu2 %v2723_v5, %s4632_s28  ;;  %v4362_v34 = vld [vmem:[#allocation2 + $0x30] sm:$0xf]  ;;  %v2125_v21 = vsel %vm4878_vm5, %v2123_v7, %v2124_v13 }
 0x24f   : > { %v6173_v39 = vpop.f32.mrf.mxu1  ;;  %v2742_v5 = vrot.slane %v2741_v12, 4 }
 0x250   : > { %v2199_v37 = vpop.permute.xlu2 %2198 }
 0x251   : > { %2287 = vst.msk [vmem:[#allocation2 + $0x40] sm:$0xf] %vm2278_vm12, %v2199_v37  ;;  %v2122_v37 = vsel %vm4878_vm5, %v4183_v8, %v2121_v52 }
 0x252   : > { %2439 = vrot.lane.b32.xlu1 %v4222_v24, %s4631_s27  ;;  %v2746_v24 = vrot.slane %v2744_v53, 5 }
 0x253   : > { %2244 = vrot.lane.b32.xlu0 %v2181_v29, %s4630_s26  ;;  %v3258_v29 = vrot.slane %v4312_v49, 5 }
 0x254   : > { %v2428_v38 = vpop.permute.xlu1 %2427  ;;  %v2747_v47 = vsel %vm4688_vm2, %v2742_v5, %v2746_v24 }
 0x255   : > { %2500 = vst.msk [vmem:[#allocation2 + $0xc0] sm:$0xf] %vm2475_vm13, %v2428_v38  ;;  %v2233_v43 = vpop.permute.xlu0 %2232  ;;  %v4526_v33 = vld [vmem:[#allocation2 + $0x34] sm:$0xf0]  ;;  %v4313_v38 = vld [vmem:[%s4677_s19 + $0xbc] sm:$0x1]  ;;  %v3259_v9 = vsel %vm4878_vm5, %v4333_v42, %v3258_v29 }
 0x256   : > { %2304 = vst.msk [vmem:[#allocation2 + $0xc8] sm:$0xf] %vm2278_vm12, %v2233_v43  ;;  %v4363_v40 = vor.u32 %v4526_v33, %v4362_v34  ;;  %2242 = vrot.lane.b32.xlu2 %v2178_v55, %s4630_s26  ;;  %v3260_v43 = vrot.slane %v3258_v29, 4  ;;  %v3261_v33 = vrot.slane %v4313_v38, 5  ;;  %v4316_v42 = vld [vmem:[%s4677_s19 + $0xc8] sm:$0x1] }
 0x257   : > { %2501 = vst.msk [vmem:[#allocation2 + $0xc8] sm:$0xf] %vm2475_vm13, %v2430_v17  ;;  %v6195_v17 = vpop.f32.mrf.mxu1 }
 0x258   : > { %3665 = vmatmul.bf16.gmra.mxu0 %v4363_v40  ;;  %v2398_v51 = vpop.permute.xlu2 %2397  ;;  %v2737_v40 = vsel %vm4688_vm2, %v2732_v23, %v2736_v36  ;;  %v3262_v56 = vsel %vm4878_vm5, %v3260_v43, %v3261_v33  ;;  %3335 = vst.msk [vmem:[#allocation2 + $0xd4] sm:$0xf] %vm279_vm6, %v3259_v9 }
 0x259   : > { %3336 = vst.msk [vmem:[#allocation2 + $0xdc] sm:$0xf] %vm279_vm6, %v3262_v56 }
 0x25a   : > { %3002 = vrot.lane.b32.xlu1 %v2939_v54, %s4632_s28  ;;  %v6221_v54 = vld [vmem:[%s6427_s2] ss:$0 sm:$0xff] }
 0x25b   : > { %3000 = vrot.lane.b32.xlu0 %v2929_v60, %s4632_s28 }
 0x25c   : > { %v2991_v6 = vpop.permute.xlu1 %2990 }
 0x25d   : > { %3062 = vst.msk [vmem:[#allocation2 + $0xc8] sm:$0xf] %vm3036_vm14, %v2991_v6  ;;  %v2989_v14 = vpop.permute.xlu0 %2988 }
 0x25e   : > { %3061 = vst.msk [vmem:[#allocation2 + $0xc0] sm:$0xf] %vm3036_vm14, %v2989_v14  ;;  %2441 = vrot.lane.b32.xlu2 %v4223_v0, %s4631_s27 }
 0x25f   : > { %v3780_v55 = vpop.f32.mrf.mxu1  ;;  %v4545_v62 = vld [vmem:[#allocation2 + $0xd4] sm:$0xf] }
 0x260   : > { %v1898_v10 = vpop.permute.xlu2 %1897  ;;  %v4444_v1 = vld [vmem:[#allocation2 + $0xd8] sm:$0xf0] }
 0x261   : > { %1968 = vst.msk [vmem:[#allocation2 + $0xd0] sm:$0xf] %vm1941_vm11, %v1898_v10  ;;  %v4447_v6 = vor.u32 %v4545_v62, %v4444_v1 }
 0x262   : > { %2407 = vrot.lane.b32.xlu1 %v4206_v22, %s4631_s27 }
 0x263   : > { %2212 = vrot.lane.b32.xlu0 %v2125_v21, %s4630_s26  ;;  %4513 = vmatmul.msk.bf16.gmra.mxu3 %vm3593_vm10, %v4447_v6 }
 0x264   : > { %v2396_v27 = vpop.permute.xlu1 %2395  ;;  %v4544_v30 = vld [vmem:[#allocation2 + $0xc4] sm:$0xf0] }
 0x265   : > { %2484 = vst.msk [vmem:[#allocation2 + $0x40] sm:$0xf] %vm2475_vm13, %v2396_v27  ;;  %v2201_v34 = vpop.permute.xlu0 %2200  ;;  %v4434_v35 = vld [vmem:[#allocation2 + $0xc0] sm:$0xf] }
 0x266   : > { %2288 = vst.msk [vmem:[#allocation2 + $0x48] sm:$0xf] %vm2278_vm12, %v2201_v34  ;;  %v4435_v41 = vor.u32 %v4544_v30, %v4434_v35  ;;  %2210 = vrot.lane.b32.xlu2 %v2122_v37, %s4630_s26  ;;  %v4315_v34 = vld [vmem:[%s4677_s19 + $0xc4] sm:$0xf] }
 0x267   : > { %2485 = vst.msk [vmem:[#allocation2 + $0x48] sm:$0xf] %vm2475_vm13, %v2398_v51  ;;  %v4207_v51 = vld [vmem:[%s4677_s19 + $0x70] sm:$0xf]  ;;  %v3782_v4 = vpop.f32.mrf.mxu1  ;;  %v3265_v37 = vrot.slane %v4315_v34, 5 }
 0x268   : > { %3710 = vmatmul.bf16.gmra.mxu2 %v4435_v41  ;;  %v2237_v57 = vpop.permute.xlu2 %2236  ;;  %v4314_v41 = vld [vmem:[%s4677_s19 + $0xc0] sm:$0xe] }
 0x269   : > { %v4334_v43 = vrot.slane %v4314_v41, 9  ;;  %v3267_v33 = vrot.slane %v3265_v37, 4 }
 0x26a   : > { %2970 = vrot.lane.b32.xlu1 %v2747_v47, %s4632_s28  ;;  %v3268_v47 = vrot.slane %v4316_v42, 5 }
 0x26b   : > { %2968 = vrot.lane.b32.xlu0 %v2737_v40, %s4632_s28  ;;  %v3691_v25 = vpop.f32.mrf.mxu2  ;;  %v3266_v40 = vsel %vm4878_vm5, %v4334_v43, %v3265_v37  ;;  %v4318_v37 = vld [vmem:[%s4677_s19 + $0xd0] sm:$0xf] }
 0x26c   : > { %v3692_v59 = vadd.f32 %v6221_v54, %v3691_v25  ;;  %v2959_v60 = vpop.permute.xlu1 %2958  ;;  %3337 = vst.msk [vmem:[#allocation2 + $0xe4] sm:$0xf] %vm279_vm6, %v3266_v40 }
 0x26d   : > { %3046 = vst.msk [vmem:[#allocation2 + $0x48] sm:$0xf] %vm3036_vm14, %v2959_v60  ;;  %v2957_v52 = vpop.permute.xlu0 %2956 }
 0x26e   : > { %v3781_v44 = vadd.f32 %v3780_v55, %v3692_v59  ;;  %3045 = vst.msk [vmem:[#allocation2 + $0x40] sm:$0xf] %vm3036_vm14, %v2957_v52  ;;  %2409 = vrot.lane.b32.xlu2 %v4207_v51, %s4631_s27  ;;  %v3269_v55 = vsel %vm4878_vm5, %v3267_v33, %v3268_v47  ;;  %v4317_v47 = vld [vmem:[%s4677_s19 + $0xcc] sm:$0xe] }
 0x26f   : > { %3338 = vst.msk [vmem:[#allocation2 + $0xec] sm:$0xf] %vm279_vm6, %v3269_v55  ;;  %v4335_v55 = vrot.slane %v4317_v47, 9 }
 0x270   : > { %v3836_v36 = vmax.f32 %v3781_v44, 0.0  ;;  %v2993_v13 = vpop.permute.xlu2 %2992 }
 0x272   : > { %3869 = vst.msk [vmem:[%s6240_s30 + $0x80] sm:$0xff] %vm3852_vm15, %v3836_v36 }
 0x273   : > { %v3693_v7 = vpop.f32.mrf.mxu2  ;;  %v4547_v62 = vld [vmem:[#allocation2 + $0xe4] sm:$0xf] }
 0x274   : > { %v3694_v48 = vadd.f32 %v6221_v54, %v3693_v7  ;;  %v2235_v14 = vpop.permute.xlu1 %2234  ;;  %v4528_v0 = vld [vmem:[#allocation2 + $0x44] sm:$0xf0] }
 0x275   : > { %2305 = vst.msk [vmem:[#allocation2 + $0xd0] sm:$0xf] %vm2278_vm12, %v2235_v14  ;;  %v1900_v19 = vpop.permute.xlu0 %1899  ;;  %v3651_v22 = vpop.f32.mrf.mxu0  ;;  %v4370_v12 = vld [vmem:[#allocation2 + $0x40] sm:$0xf] }
 0x276   : > { %v3783_v53 = vadd.f32 %v3782_v4, %v3694_v48  ;;  %1969 = vst.msk [vmem:[#allocation2 + $0xd8] sm:$0xf] %vm1941_vm11, %v1900_v19  ;;  %v3652_v18 = vadd.f32 %v6221_v54, %v3651_v22  ;;  %v4371_v21 = vor.u32 %v4528_v0, %v4370_v12  ;;  %v4452_v1 = vld [vmem:[#allocation2 + $0xe8] sm:$0xf0] }
 0x277   : > { %2306 = vst.msk [vmem:[#allocation2 + $0xd8] sm:$0xf] %vm2278_vm12, %v2237_v57  ;;  %v4455_v6 = vor.u32 %v4547_v62, %v4452_v1 }
 0x278   : > { %v3837_v8 = vmax.f32 %v3783_v53, 0.0  ;;  %v3741_v49 = vadd.f32 %v5810_v63, %v3652_v18  ;;  %3670 = vmatmul.bf16.gmra.mxu0 %v4371_v21  ;;  %v2205_v24 = vpop.permute.xlu2 %2204 }
 0x279   : > { %2290 = vst.msk [vmem:[#allocation2 + $0x58] sm:$0xf] %vm2278_vm12, %v2205_v24  ;;  %4514 = vmatmul.msk.bf16.gmra.mxu3 %vm3593_vm10, %v4455_v6 }
 0x27a   : > { %3870 = vst.msk [vmem:[%s6240_s30 + $0x88] sm:$0xff] %vm3852_vm15, %v3837_v8  ;;  %v3820_v5 = vmax.f32 %v3741_v49, 0.0 }
 0x27c   : > { %3853 = vst.msk [vmem:[%s6240_s30] sm:$0xff] %vm3852_vm15, %v3820_v5  ;;  %v2434_v23 = vpop.permute.xlu1 %2433 }
 0x27d   : > { %2503 = vst.msk [vmem:[#allocation2 + $0xd8] sm:$0xf] %vm2475_vm13, %v2434_v23  ;;  %v2432_v10 = vpop.permute.xlu0 %2431  ;;  %v3653_v29 = vpop.f32.mrf.mxu0 }
 0x27e   : > { %2502 = vst.msk [vmem:[#allocation2 + $0xd0] sm:$0xf] %vm2475_vm13, %v2432_v10  ;;  %v3654_v63 = vadd.f32 %v6221_v54, %v3653_v29 }
 0x27f   : > { %3063 = vst.msk [vmem:[#allocation2 + $0xd0] sm:$0xf] %vm3036_vm14, %v2993_v13 }
 0x280   : > { %v3743_v27 = vadd.f32 %v5837_v32, %v3654_v63  ;;  %v2961_v31 = vpop.permute.xlu2 %2960  ;;  %v3785_v32 = vpop.f32.mrf.mxu3 }
 0x282   : > { %v3821_v30 = vmax.f32 %v3743_v27, 0.0 }
 0x284   : > { %3854 = vst.msk [vmem:[%s6240_s30 + $0x8] sm:$0xff] %vm3852_vm15, %v3821_v30  ;;  %v2203_v35 = vpop.permute.xlu1 %2202 }
 0x285   : > { %2289 = vst.msk [vmem:[#allocation2 + $0x50] sm:$0xf] %vm2278_vm12, %v2203_v35  ;;  %v2995_v38 = vpop.permute.xlu0 %2994 }
 0x286   : > { %3064 = vst.msk [vmem:[#allocation2 + $0xd8] sm:$0xf] %vm3036_vm14, %v2995_v38  ;;  %v4442_v56 = vld [vmem:[#allocation2 + $0xd0] sm:$0xf] }
 0x288   : > { %v1904_v25 = vpop.permute.xlu2 %1903  ;;  %v3787_v4 = vpop.f32.mrf.mxu3 }
 0x289   : > { %1971 = vst.msk [vmem:[#allocation2 + $0xe8] sm:$0xf] %vm1941_vm11, %v1904_v25 }
 0x28b   : > { %v3696_v9 = vpop.f32.mrf.mxu2 }
 0x28c   : > { %v3697_v57 = vadd.f32 %v6221_v54, %v3696_v9  ;;  %v2402_v59 = vpop.permute.xlu1 %2401 }
 0x28d   : > { %2487 = vst.msk [vmem:[#allocation2 + $0x58] sm:$0xf] %vm2475_vm13, %v2402_v59  ;;  %v2400_v60 = vpop.permute.xlu0 %2399  ;;  %v4546_v52 = vld [vmem:[#allocation2 + $0xd4] sm:$0xf0] }
 0x28e   : > { %v3786_v44 = vadd.f32 %v3785_v32, %v3697_v57  ;;  %2486 = vst.msk [vmem:[#allocation2 + $0x50] sm:$0xf] %vm2475_vm13, %v2400_v60  ;;  %v4443_v51 = vor.u32 %v4546_v52, %v4442_v56  ;;  %v4319_v32 = vld [vmem:[%s4677_s19 + $0xd4] sm:$0x1] }
 0x28f   : > { %3047 = vst.msk [vmem:[#allocation2 + $0x50] sm:$0xf] %vm3036_vm14, %v2961_v31  ;;  %v3275_v56 = vrot.slane %v4319_v32, 5 }
 0x290   : > { %v3838_v36 = vmax.f32 %v3786_v44, 0.0  ;;  %3715 = vmatmul.bf16.gmra.mxu2 %v4443_v51  ;;  %v2436_v13 = vpop.permute.xlu2 %2435  ;;  %v3790_v35 = vpop.f32.mrf.mxu3 }
 0x292   : > { %3871 = vst.msk [vmem:[%s6240_s30 + $0x90] sm:$0xff] %vm3852_vm15, %v3838_v36 }
 0x293   : > { %v3698_v7 = vpop.f32.mrf.mxu2 }
 0x294   : > { %v3699_v48 = vadd.f32 %v6221_v54, %v3698_v7  ;;  %v1902_v14 = vpop.permute.xlu1 %1901 }
 0x295   : > { %1970 = vst.msk [vmem:[#allocation2 + $0xe0] sm:$0xf] %vm1941_vm11, %v1902_v14  ;;  %v2963_v0 = vpop.permute.xlu0 %2962  ;;  %v3656_v19 = vpop.f32.mrf.mxu0 }
 0x296   : > { %v3788_v22 = vadd.f32 %v3787_v4, %v3699_v48  ;;  %3048 = vst.msk [vmem:[#allocation2 + $0x58] sm:$0xf] %vm3036_vm14, %v2963_v0  ;;  %v3657_v12 = vadd.f32 %v6221_v54, %v3656_v19  ;;  %v4378_v8 = vld [vmem:[#allocation2 + $0x50] sm:$0xf] }
 0x298   : > { %v3839_v53 = vmax.f32 %v3788_v22, 0.0  ;;  %v3746_v18 = vadd.f32 %v5868_v28, %v3657_v12  ;;  %v2999_v49 = vpop.permute.xlu2 %2998  ;;  %v3792_v51 = vpop.f32.mrf.mxu3 }
 0x29a   : > { %3872 = vst.msk [vmem:[%s6240_s30 + $0x98] sm:$0xff] %vm3852_vm15, %v3839_v53  ;;  %v3822_v21 = vmax.f32 %v3746_v18, 0.0 }
 0x29c   : > { %3855 = vst.msk [vmem:[%s6240_s30 + $0x10] sm:$0xff] %vm3852_vm15, %v3822_v21  ;;  %v2241_v5 = vpop.permute.xlu1 %2240 }
 0x29d   : > { %2308 = vst.msk [vmem:[#allocation2 + $0xe8] sm:$0xf] %vm2278_vm12, %v2241_v5  ;;  %v2239_v24 = vpop.permute.xlu0 %2238  ;;  %v3658_v23 = vpop.f32.mrf.mxu0  ;;  %v4530_v10 = vld [vmem:[#allocation2 + $0x54] sm:$0xf0] }
 0x29e   : > { %2307 = vst.msk [vmem:[#allocation2 + $0xe0] sm:$0xf] %vm2278_vm12, %v2239_v24  ;;  %v3659_v29 = vadd.f32 %v6221_v54, %v3658_v23  ;;  %v4379_v28 = vor.u32 %v4530_v10, %v4378_v8 }
 0x29f   : > { %2504 = vst.msk [vmem:[#allocation2 + $0xe0] sm:$0xf] %vm2475_vm13, %v2436_v13 }
 0x2a0   : > { %v3748_v63 = vadd.f32 %v5894_v16, %v3659_v29  ;;  %3675 = vmatmul.bf16.gmra.mxu0 %v4379_v28  ;;  %v2404_v30 = vpop.permute.xlu2 %2403  ;;  %v3272_v16 = vrot.slane %v4318_v37, 5 }
 0x2a2   : > { %v3823_v27 = vmax.f32 %v3748_v63, 0.0  ;;  %v3274_v9 = vrot.slane %v3272_v16, 4  ;;  %v3273_v60 = vsel %vm4878_vm5, %v4335_v55, %v3272_v16 }
 0x2a3   : > { %3339 = vst.msk [vmem:[#allocation2 + $0xf4] sm:$0xf] %vm279_vm6, %v3273_v60 }
 0x2a4   : > { %3856 = vst.msk [vmem:[%s6240_s30 + $0x18] sm:$0xff] %vm3852_vm15, %v3823_v27  ;;  %v2997_v31 = vpop.permute.xlu1 %2996  ;;  %v3276_v52 = vsel %vm4878_vm5, %v3274_v9, %v3275_v56 }
 0x2a5   : > { %3065 = vst.msk [vmem:[#allocation2 + $0xe0] sm:$0xf] %vm3036_vm14, %v2997_v31  ;;  %v2438_v34 = vpop.permute.xlu0 %2437 }
 0x2a6   : > { %2505 = vst.msk [vmem:[#allocation2 + $0xe8] sm:$0xf] %vm2475_vm13, %v2438_v34 }
 0x2a7   : > { %3066 = vst.msk [vmem:[#allocation2 + $0xe8] sm:$0xf] %vm3036_vm14, %v2999_v49 }
 0x2a8   : > { %v2967_v41 = vpop.permute.xlu2 %2966  ;;  %3340 = vst.msk [vmem:[#allocation2 + $0xfc] sm:$0xf] %vm279_vm6, %v3276_v52 }
 0x2aa   : > { %v4549_v48 = vld [vmem:[#allocation2 + $0xf4] sm:$0xf] }
 0x2ab   : > { %v3701_v38 = vpop.f32.mrf.mxu2 }
 0x2ac   : > { %v3702_v42 = vadd.f32 %v6221_v54, %v3701_v38  ;;  %v2209_v43 = vpop.permute.xlu1 %2208  ;;  %v4450_v33 = vld [vmem:[#allocation2 + $0xe0] sm:$0xf]  ;;  %v3795_v27 = vpop.f32.mrf.mxu3 }
 0x2ad   : > { %2292 = vst.msk [vmem:[#allocation2 + $0x68] sm:$0xf] %vm2278_vm12, %v2209_v43  ;;  %v2207_v40 = vpop.permute.xlu0 %2206 }
 0x2ae   : > { %v3791_v25 = vadd.f32 %v3790_v35, %v3702_v42  ;;  %2291 = vst.msk [vmem:[#allocation2 + $0x60] sm:$0xf] %vm2278_vm12, %v2207_v40  ;;  %v4548_v57 = vld [vmem:[#allocation2 + $0xe4] sm:$0xf0] }
 0x2af   : > { %2488 = vst.msk [vmem:[#allocation2 + $0x60] sm:$0xf] %vm2475_vm13, %v2404_v30  ;;  %v4451_v59 = vor.u32 %v4548_v57, %v4450_v33  ;;  %v4460_v19 = vld [vmem:[#allocation2 + $0xf8] sm:$0xf0] }
 0x2b0   : > { %v3840_v44 = vmax.f32 %v3791_v25, 0.0  ;;  %v2243_v62 = vpop.permute.xlu2 %2242  ;;  %v4463_v22 = vor.u32 %v4549_v48, %v4460_v19 }
 0x2b1   : > { %3720 = vmatmul.bf16.gmra.mxu2 %v4451_v59 }
 0x2b2   : > { %3873 = vst.msk [vmem:[%s6240_s30 + $0xa0] sm:$0xff] %vm3852_vm15, %v3840_v44  ;;  %4515 = vmatmul.msk.bf16.gmra.mxu3 %vm3593_vm10, %v4463_v22 }
 0x2b3   : > { %v3703_v36 = vpop.f32.mrf.mxu2 }
 0x2b4   : > { %v3704_v1 = vadd.f32 %v6221_v54, %v3703_v36  ;;  %v2965_v4 = vpop.permute.xlu1 %2964 }
 0x2b5   : > { %3049 = vst.msk [vmem:[#allocation2 + $0x60] sm:$0xf] %vm3036_vm14, %v2965_v4  ;;  %v2406_v58 = vpop.permute.xlu0 %2405  ;;  %v3661_v6 = vpop.f32.mrf.mxu0 }
 0x2b6   : > { %v3793_v7 = vadd.f32 %v3792_v51, %v3704_v1  ;;  %2489 = vst.msk [vmem:[#allocation2 + $0x68] sm:$0xf] %vm2475_vm13, %v2406_v58  ;;  %v3662_v13 = vadd.f32 %v6221_v54, %v3661_v6 }
 0x2b7   : > { %3050 = vst.msk [vmem:[#allocation2 + $0x68] sm:$0xf] %vm3036_vm14, %v2967_v41  ;;  %v3797_v41 = vpop.f32.mrf.mxu3 }
 0x2b8   : > { %v3841_v14 = vmax.f32 %v3793_v7, 0.0  ;;  %v3751_v0 = vadd.f32 %v5909_v50, %v3662_v13  ;;  %v2442_v53 = vpop.permute.xlu2 %2441 }
 0x2ba   : > { %3874 = vst.msk [vmem:[%s6240_s30 + $0xa8] sm:$0xff] %vm3852_vm15, %v3841_v14  ;;  %v3824_v12 = vmax.f32 %v3751_v0, 0.0 }
 0x2bc   : > { %3857 = vst.msk [vmem:[%s6240_s30 + $0x20] sm:$0xff] %vm3852_vm15, %v3824_v12  ;;  %v1908_v18 = vpop.permute.xlu1 %1907  ;;  %v4386_v21 = vld [vmem:[#allocation2 + $0x60] sm:$0xf] }
 0x2bd   : > { %1973 = vst.msk [vmem:[#allocation2 + $0xf8] sm:$0xf] %vm1941_vm11, %v1908_v18  ;;  %v1906_v8 = vpop.permute.xlu0 %1905  ;;  %v3663_v49 = vpop.f32.mrf.mxu0 }
 0x2be   : > { %1972 = vst.msk [vmem:[#allocation2 + $0xf0] sm:$0xf] %vm1941_vm11, %v1906_v8  ;;  %v3664_v50 = vadd.f32 %v6221_v54, %v3663_v49  ;;  %v4532_v5 = vld [vmem:[#allocation2 + $0x64] sm:$0xf0] }
 0x2bf   : > { %v4387_v24 = vor.u32 %v4532_v5, %v4386_v21  ;;  %2309 = vst.msk [vmem:[#allocation2 + $0xf0] sm:$0xf] %vm2278_vm12, %v2243_v62 }
 0x2c0   : > { %v3753_v23 = vadd.f32 %v5933_v3, %v3664_v50  ;;  %v2211_v63 = vpop.permute.xlu2 %2210 }
 0x2c1   : > { %3680 = vmatmul.bf16.gmra.mxu0 %v4387_v24  ;;  %2293 = vst.msk [vmem:[#allocation2 + $0x70] sm:$0xf] %vm2278_vm12, %v2211_v63 }
 0x2c2   : > { %v3825_v10 = vmax.f32 %v3753_v23, 0.0 }
 0x2c4   : > { %3858 = vst.msk [vmem:[%s6240_s30 + $0x28] sm:$0xff] %vm3852_vm15, %v3825_v10  ;;  %v2440_v29 = vpop.permute.xlu1 %2439 }
 0x2c5   : > { %2506 = vst.msk [vmem:[#allocation2 + $0xf0] sm:$0xf] %vm2475_vm13, %v2440_v29  ;;  %v2245_v28 = vpop.permute.xlu0 %2244 }
 0x2c6   : > { %2310 = vst.msk [vmem:[#allocation2 + $0xf8] sm:$0xf] %vm2278_vm12, %v2245_v28 }
 0x2c7   : > { %2507 = vst.msk [vmem:[#allocation2 + $0xf8] sm:$0xf] %vm2475_vm13, %v2442_v53 }
 0x2c8   : > { %v2410_v33 = vpop.permute.xlu2 %2409 }
 0x2c9   : > { %v3800_v58 = vpop.f32.mrf.mxu3 }
 0x2cb   : > { %v3706_v30 = vpop.f32.mrf.mxu2 }
 0x2cc   : > { %v3707_v3 = vadd.f32 %v6221_v54, %v3706_v30  ;;  %v3003_v31 = vpop.permute.xlu1 %3002 }
 0x2cd   : > { %3068 = vst.msk [vmem:[#allocation2 + $0xf8] sm:$0xf] %vm3036_vm14, %v3003_v31  ;;  %v3001_v34 = vpop.permute.xlu0 %3000 }
 0x2ce   : > { %v3796_v35 = vadd.f32 %v3795_v27, %v3707_v3  ;;  %3067 = vst.msk [vmem:[#allocation2 + $0xf0] sm:$0xf] %vm3036_vm14, %v3001_v34 }
 0x2d0   : > { %v3842_v37 = vmax.f32 %v3796_v35, 0.0 }
 0x2d2   : > { %3875 = vst.msk [vmem:[%s6240_s30 + $0xb0] sm:$0xff] %vm3852_vm15, %v3842_v37 }
 0x2d3   : > { %v3708_v38 = vpop.f32.mrf.mxu2 }
 0x2d4   : > { %v3709_v16 = vadd.f32 %v6221_v54, %v3708_v38  ;;  %v2408_v42 = vpop.permute.xlu1 %2407  ;;  %v4550_v43 = vld [vmem:[#allocation2 + $0xf4] sm:$0xf0] }
 0x2d5   : > { %2490 = vst.msk [vmem:[#allocation2 + $0x70] sm:$0xf] %vm2475_vm13, %v2408_v42  ;;  %v2213_v47 = vpop.permute.xlu0 %2212  ;;  %v3666_v32 = vpop.f32.mrf.mxu0  ;;  %v4458_v40 = vld [vmem:[#allocation2 + $0xf0] sm:$0xf] }
 0x2d6   : > { %v3798_v55 = vadd.f32 %v3797_v41, %v3709_v16  ;;  %2294 = vst.msk [vmem:[#allocation2 + $0x78] sm:$0xf] %vm2278_vm12, %v2213_v47  ;;  %v3667_v9 = vadd.f32 %v6221_v54, %v3666_v32  ;;  %v4459_v56 = vor.u32 %v4550_v43, %v4458_v40 }
 0x2d7   : > { %2491 = vst.msk [vmem:[#allocation2 + $0x78] sm:$0xf] %vm2475_vm13, %v2410_v33 }
 0x2d8   : > { %v3843_v25 = vmax.f32 %v3798_v55, 0.0  ;;  %v3756_v57 = vadd.f32 %v5958_v46, %v3667_v9  ;;  %3725 = vmatmul.bf16.gmra.mxu2 %v4459_v56 }
 0x2da   : > { %3876 = vst.msk [vmem:[%s6240_s30 + $0xb8] sm:$0xff] %vm3852_vm15, %v3843_v25  ;;  %v3826_v59 = vmax.f32 %v3756_v57, 0.0 }
 0x2dc   : > { %3859 = vst.msk [vmem:[%s6240_s30 + $0x30] sm:$0xff] %vm3852_vm15, %v3826_v59  ;;  %v2971_v60 = vpop.permute.xlu1 %2970 }
 0x2dd   : > { %3052 = vst.msk [vmem:[#allocation2 + $0x78] sm:$0xf] %vm3036_vm14, %v2971_v60  ;;  %v2969_v52 = vpop.permute.xlu0 %2968  ;;  %v3668_v44 = vpop.f32.mrf.mxu0 }
 0x2de   : > { %3051 = vst.msk [vmem:[#allocation2 + $0x70] sm:$0xf] %vm3036_vm14, %v2969_v52  ;;  %v3669_v51 = vadd.f32 %v6221_v54, %v3668_v44 }
 0x2e0   : > { %v3758_v36 = vadd.f32 %v5988_v11, %v3669_v51  ;;  %v3802_v11 = vpop.f32.mrf.mxu3 }
 0x2e2   : > { %v3827_v62 = vmax.f32 %v3758_v36, 0.0 }
 0x2e4   : > { %3860 = vst.msk [vmem:[%s6240_s30 + $0x38] sm:$0xff] %vm3852_vm15, %v3827_v62  ;;  %v4534_v46 = vld [vmem:[#allocation2 + $0x74] sm:$0xf0] }
 0x2e5   : > { %v4394_v1 = vld [vmem:[#allocation2 + $0x70] sm:$0xf] }
 0x2e6   : > { %v4395_v4 = vor.u32 %v4534_v46, %v4394_v1 }
 0x2e8   : > { %3685 = vmatmul.bf16.gmra.mxu0 %v4395_v4  ;;  %v3805_v24 = vpop.f32.mrf.mxu3 }
 0x2eb   : > { %v3711_v6 = vpop.f32.mrf.mxu2 }
 0x2ec   : > { %v3712_v7 = vadd.f32 %v6221_v54, %v3711_v6 }
 0x2ee   : > { %v3801_v13 = vadd.f32 %v3800_v58, %v3712_v7 }
 0x2f0   : > { %v3844_v48 = vmax.f32 %v3801_v13, 0.0  ;;  %v3807_v63 = vpop.f32.mrf.mxu3 }
 0x2f2   : > { %3877 = vst.msk [vmem:[%s6240_s30 + $0xc0] sm:$0xff] %vm3852_vm15, %v3844_v48 }
 0x2f3   : > { %v3713_v14 = vpop.f32.mrf.mxu2 }
 0x2f4   : > { %v3714_v0 = vadd.f32 %v6221_v54, %v3713_v14 }
 0x2f5   : > { %v3671_v19 = vpop.f32.mrf.mxu0 }
 0x2f6   : > { %v3672_v22 = vadd.f32 %v6221_v54, %v3671_v19  ;;  %v3803_v12 = vadd.f32 %v3802_v11, %v3714_v0 }
 0x2f8   : > { %v3761_v53 = vadd.f32 %v6017_v61, %v3672_v22  ;;  %v3845_v18 = vmax.f32 %v3803_v12, 0.0 }
 0x2fa   : > { %v3828_v21 = vmax.f32 %v3761_v53, 0.0  ;;  %3878 = vst.msk [vmem:[%s6240_s30 + $0xc8] sm:$0xff] %vm3852_vm15, %v3845_v18 }
 0x2fc   : > { %3861 = vst.msk [vmem:[%s6240_s30 + $0x40] sm:$0xff] %vm3852_vm15, %v3828_v21  ;;  %v3810_v42 = vpop.f32.mrf.mxu3 }
 0x2fd   : > { %v3673_v8 = vpop.f32.mrf.mxu0 }
 0x2fe   : > { %v3674_v49 = vadd.f32 %v6221_v54, %v3673_v8 }
 0x300   : > { %v3763_v50 = vadd.f32 %v6048_v26, %v3674_v49 }
 0x302   : > { %v3829_v5 = vmax.f32 %v3763_v50, 0.0 }
 0x304   : > { %3862 = vst.msk [vmem:[%s6240_s30 + $0x48] sm:$0xff] %vm3852_vm15, %v3829_v5  ;;  %v3812_v40 = vpop.f32.mrf.mxu3 }
 0x313   : > { %v3716_v23 = vpop.f32.mrf.mxu2 }
 0x314   : > { %v3717_v61 = vadd.f32 %v6221_v54, %v3716_v23 }
 0x316   : > { %v3806_v10 = vadd.f32 %v3805_v24, %v3717_v61 }
 0x318   : > { %v3846_v29 = vmax.f32 %v3806_v10, 0.0 }
 0x31a   : > { %3879 = vst.msk [vmem:[%s6240_s30 + $0xd0] sm:$0xff] %vm3852_vm15, %v3846_v29 }
 0x31b   : > { %v3718_v28 = vpop.f32.mrf.mxu2 }
 0x31c   : > { %v3719_v27 = vadd.f32 %v6221_v54, %v3718_v28 }
 0x31d   : > { %v3676_v30 = vpop.f32.mrf.mxu0 }
 0x31e   : > { %v3677_v26 = vadd.f32 %v6221_v54, %v3676_v30  ;;  %v3808_v3 = vadd.f32 %v3807_v63, %v3719_v27 }
 0x320   : > { %v3766_v31 = vadd.f32 %v6071_v15, %v3677_v26  ;;  %v3847_v34 = vmax.f32 %v3808_v3, 0.0 }
 0x322   : > { %v3830_v35 = vmax.f32 %v3766_v31, 0.0  ;;  %3880 = vst.msk [vmem:[%s6240_s30 + $0xd8] sm:$0xff] %vm3852_vm15, %v3847_v34 }
 0x324   : > { %3863 = vst.msk [vmem:[%s6240_s30 + $0x50] sm:$0xff] %vm3852_vm15, %v3830_v35 }
 0x325   : > { %v3678_v37 = vpop.f32.mrf.mxu0 }
 0x326   : > { %v3679_v38 = vadd.f32 %v6221_v54, %v3678_v37 }
 0x328   : > { %v3768_v41 = vadd.f32 %v6097_v45, %v3679_v38 }
 0x32a   : > { %v3831_v16 = vmax.f32 %v3768_v41, 0.0 }
 0x32c   : > { %3864 = vst.msk [vmem:[%s6240_s30 + $0x58] sm:$0xff] %vm3852_vm15, %v3831_v16 }
 0x334   : > { %v3721_v43 = vpop.f32.mrf.mxu2 }
 0x335   : > { %v3722_v15 = vadd.f32 %v6221_v54, %v3721_v43  ;;  %v3815_v36 = vpop.f32.mrf.mxu3 }
 0x337   : > { %v3811_v33 = vadd.f32 %v3810_v42, %v3722_v15 }
 0x339   : > { %v3848_v47 = vmax.f32 %v3811_v33, 0.0 }
 0x33b   : > { %3881 = vst.msk [vmem:[%s6240_s30 + $0xe0] sm:$0xff] %vm3852_vm15, %v3848_v47 }
 0x33c   : > { %v3723_v32 = vpop.f32.mrf.mxu2 }
 0x33d   : > { %v3724_v55 = vadd.f32 %v6221_v54, %v3723_v32  ;;  %v3817_v58 = vpop.f32.mrf.mxu3 }
 0x33e   : > { %v3681_v9 = vpop.f32.mrf.mxu0 }
 0x33f   : > { %v3682_v45 = vadd.f32 %v6221_v54, %v3681_v9  ;;  %v3813_v56 = vadd.f32 %v3812_v40, %v3724_v55 }
 0x341   : > { %v3771_v25 = vadd.f32 %v6127_v20, %v3682_v45  ;;  %v3849_v57 = vmax.f32 %v3813_v56, 0.0 }
 0x343   : > { %v3832_v59 = vmax.f32 %v3771_v25, 0.0  ;;  %3882 = vst.msk [vmem:[%s6240_s30 + $0xe8] sm:$0xff] %vm3852_vm15, %v3849_v57 }
 0x345   : > { %3865 = vst.msk [vmem:[%s6240_s30 + $0x60] sm:$0xff] %vm3852_vm15, %v3832_v59 }
 0x346   : > { %v3683_v60 = vpop.f32.mrf.mxu0 }
 0x347   : > { %v3684_v52 = vadd.f32 %v6221_v54, %v3683_v60 }
 0x349   : > { %v3773_v44 = vadd.f32 %v6157_v2, %v3684_v52 }
 0x34b   : > { %v3833_v51 = vmax.f32 %v3773_v44, 0.0 }
 0x34d   : > { %3866 = vst.msk [vmem:[%s6240_s30 + $0x68] sm:$0xff] %vm3852_vm15, %v3833_v51 }
 0x35b   : > { %v3726_v62 = vpop.f32.mrf.mxu2 }
 0x35c   : > { %v3727_v20 = vadd.f32 %v6221_v54, %v3726_v62 }
 0x35e   : > { %v3816_v46 = vadd.f32 %v3815_v36, %v3727_v20 }
 0x360   : > { %v3850_v1 = vmax.f32 %v3816_v46, 0.0 }
 0x362   : > { %3883 = vst.msk [vmem:[%s6240_s30 + $0xf0] sm:$0xff] %vm3852_vm15, %v3850_v1 }
 0x363   : > { %v3728_v4 = vpop.f32.mrf.mxu2 }
 0x364   : > { %v3729_v6 = vadd.f32 %v6221_v54, %v3728_v4 }
 0x365   : > { %v3686_v7 = vpop.f32.mrf.mxu0 }
 0x366   : > { %v3687_v2 = vadd.f32 %v6221_v54, %v3686_v7  ;;  %v3818_v13 = vadd.f32 %v3817_v58, %v3729_v6 }
 0x368   : > { %v3776_v48 = vadd.f32 %v6173_v39, %v3687_v2  ;;  %v3851_v14 = vmax.f32 %v3818_v13, 0.0 }
 0x36a   : > { %v3834_v11 = vmax.f32 %v3776_v48, 0.0  ;;  %3884 = vst.msk [vmem:[%s6240_s30 + $0xf8] sm:$0xff] %vm3852_vm15, %v3851_v14 }
 0x36c   : > { %3867 = vst.msk [vmem:[%s6240_s30 + $0x70] sm:$0xff] %vm3852_vm15, %v3834_v11 }
 0x36d   : > { %v3688_v0 = vpop.f32.mrf.mxu0 }
 0x36e   : > { %v3689_v19 = vadd.f32 %v6221_v54, %v3688_v0 }
 0x370   : > { %v3778_v22 = vadd.f32 %v6195_v17, %v3689_v19 }
 0x372   : > { %v3835_v12 = vmax.f32 %v3778_v22, 0.0 }
 0x374   : > { %3868 = vst.msk [vmem:[%s6240_s30 + $0x78] sm:$0xff] %vm3852_vm15, %v3835_v12 }
 0x375 PF: > { %s13_s14 = sadd.s32 1, %s4624_s14   ;;  %s6433_s12 = smov %s4620_s13 }
 0x376   : > { %p10_p5 = scmp.ge.s32.totalorder %s13_s14, 4   ;;  %s6434_s13 = smov %s6436_s15 }
 0x378   :  { %12 = sbr.rel (!%p10_p5) target bundleno = 2 (0x2), region = 71 }

</bundles_post_ra>
